<compile_context>
chip_gen: v6e
topology: v6e:2x2x1
jax: 0.10.0
libtpu: 0.0.40
codegen_flags: <defaults>
</compile_context>

<pallas_src>
import jax
import jax.numpy as jnp
import numpy as np
from jax.experimental import pallas as pl
from jax.experimental.pallas import tpu as pltpu

# ---- model hyperparameters (small, consistent with the module) ----
N_GRAPHS = 16            # graphs per batch -> 128 nodes (lane/sublane dense)
NODES_PER_GRAPH = 8
N_NODES = N_GRAPHS * NODES_PER_GRAPH   # 128
IN_DIM = 8
HIDDEN = 32
OUT_DIM = 32             # == HIDDEN so residual connections are active (as in GMMLayer)
N_CLASSES = 4
PAD_CLASSES = 128        # lane-dense per-step output; sliced to N_CLASSES on host
KERNELS = 3              # net_params['kernel']
PSEUDO_DIM = 2           # net_params['pseudo_dim_MoNet']
N_LAYERS = 2             # net_params['L']
BN_EPS = 1e-5
B_BATCHES = 4            # grid axis ("parallel") over independent graph-batches


def monet_kernel(
    # --- per-batch VMEM tensors (gridded) ---
    x_ref, adj_ref, psrc_ref, pdstc_ref,
    # --- grid-invariant VMEM weights ---
    gmat_ref, wemb_ref, bemb_ref, wfc_ref, bnscale_ref, bnshift_ref,
    w1_ref, b1_ref, w2_ref, b2_ref, w3_ref, b3_ref,
    # --- SMEM flat scalar-parameter tables ---
    wp_s, bp_s, c2_s, c1_s, c0_s,
    # --- output ---
    out_ref,
):
    f32 = jnp.float32
    N = adj_ref.shape[0]
    K = KERNELS
    D = PSEUDO_DIM
    P = NODES_PER_GRAPH

    # --- node embedding: h = x @ Wemb + b ---
    h = jnp.dot(x_ref[...], wemb_ref[...], preferred_element_type=f32) + bemb_ref[...]

    adj = adj_ref[...]                                    # (N, N), adj[dst, src]
    # graph-packed compressed pseudo coordinates, hoisted out of the layer loop:
    # lanes = src node (128), sublanes = local dst index within src's graph (8)
    cp_src = jnp.broadcast_to(psrc_ref[...], (P, N))      # 1/sqrt(deg_src + 1)
    cp_dst = pdstc_ref[...]                               # 1/sqrt(deg_dst + 1), host-packed

    for l in range(N_LAYERS):
        # tanh pseudo projection on the compressed layout, once per (layer, d),
        # shared over all K kernels. Scalars from SMEM = free splats.
        projs = []
        for d in range(D):
            w_src = wp_s[(l * 2 + 0) * D + d]
            w_dst = wp_s[(l * 2 + 1) * D + d]
            b = bp_s[l * D + d]
            projs.append(jnp.tanh(cp_src * w_src + cp_dst * w_dst + b))

        agg = jnp.zeros((N, OUT_DIM), f32)
        for k in range(K):
            # Gaussian edge weight = exp(c0 + sum_d p*(c2*p + c1))  (Horner,
            # coefficients + (mu, inv_sigma) folded on the host).
            acc = c0_s[l * K + k]
            for d in range(D):
                idx = (l * K + k) * D + d
                acc = acc + projs[d] * (c2_s[idx] * projs[d] + c1_s[idx])
            wk_comp = jnp.exp(acc)                        # (8, N) compressed

            # Expand compressed -> dense via a sublane-replicating broadcast
            # (tile-aligned reshape), THEN mask: adj zeroes every cross-graph
            # position so the expansion is exact. (== jnp.tile(wk_comp,(16,1)))
            wk = adj * jnp.broadcast_to(wk_comp, (N_GRAPHS, P, N)).reshape(N, N)

            # per-kernel fc + accumulating aggregation dot (no concat slabs;
            # MRB-friendly accumulation on v7x).
            hfc = jnp.dot(h, wfc_ref[l * K + k], preferred_element_type=f32)   # (N, C)
            agg = agg + jnp.dot(wk, hfc, preferred_element_type=f32)           # (N, C)

        # BatchNorm1d(eval) folded to scale/shift -> ReLU -> residual
        # (dropout is identity at inference)
        h = h + jnp.maximum(agg * bnscale_ref[l] + bnshift_ref[l], 0.0)

    # --- mean readout per graph + MLPReadout (32 -> 16 -> 8 -> n_classes_pad) ---
    hg = jnp.dot(gmat_ref[...], h, preferred_element_type=f32)                 # (G, C)
    y = jnp.maximum(jnp.dot(hg, w1_ref[...], preferred_element_type=f32) + b1_ref[...], 0.0)
    y = jnp.maximum(jnp.dot(y, w2_ref[...], preferred_element_type=f32) + b2_ref[...], 0.0)
    out_ref[...] = jnp.dot(y, w3_ref[...], preferred_element_type=f32) + b3_ref[...]


def monet_forward(batched, const_vmem, smem_tables):
    """batched: [h0 (B,N,in), adj (B,N,N), psrc (B,1,N), pdstc (B,8,N)]."""
    B = batched[0].shape[0]

    def per_batch(shape):
        n = len(shape)
        return pl.BlockSpec(shape, lambda b, _n=n: (b,) + (0,) * (_n - 1))

    def const(shape):
        n = len(shape)
        return pl.BlockSpec(shape, lambda b, _n=n: (0,) * _n)

    smem = pl.BlockSpec(memory_space=pltpu.MemorySpace.SMEM)

    in_specs = (
        [per_batch((None, N_NODES, IN_DIM)),
         per_batch((None, N_NODES, N_NODES)),
         per_batch((None, 1, N_NODES)),
         per_batch((None, NODES_PER_GRAPH, N_NODES))]
        + [const(a.shape) for a in const_vmem]
        + [smem] * len(smem_tables)
    )

    out = pl.pallas_call(
        monet_kernel,
        out_shape=jax.ShapeDtypeStruct((B, N_GRAPHS, PAD_CLASSES), jnp.float32),
        grid=(B,),
        in_specs=in_specs,
        out_specs=pl.BlockSpec((None, N_GRAPHS, PAD_CLASSES), lambda b: (b, 0, 0)),
        compiler_params=pltpu.CompilerParams(dimension_semantics=("parallel",)),
    )(*batched, *const_vmem, *smem_tables)
    return out[:, :, :N_CLASSES]


# ---------------- pure-JAX reference (same math, for validation) ----------------
def reference_forward(h0, adj, dinv, gmat, p):
    h = h0 @ p["wemb"] + p["bemb"]
    N = h0.shape[0]
    p_src = jnp.broadcast_to(dinv[None, :], (N, N))
    p_dst = jnp.broadcast_to(dinv[:, None], (N, N))
    pseudo = jnp.stack([p_src, p_dst], axis=-1)                  # (N, N, 2)
    for l in range(N_LAYERS):
        proj = jnp.tanh(pseudo @ p["wp"][l] + p["bp"][l][0])      # (N, N, D)
        diff = proj[:, :, None, :] - p["mu"][l][None, None]       # (N, N, K, D)
        gauss = jnp.exp(jnp.sum(-0.5 * diff * diff *
                                (p["isig"][l] ** 2)[None, None], axis=-1))  # (N, N, K)
        hfc = (h @ p["wfc"][l]).reshape(N, KERNELS, -1)
        agg = jnp.einsum("vuk,ukc->vc", adj[:, :, None] * gauss, hfc)
        hn = (agg - p["rmean"][l][0]) * p["gamma"][l][0] / jnp.sqrt(p["rvar"][l][0] + BN_EPS) \
             + p["beta"][l][0]
        h = h + jnp.maximum(hn, 0.0)
    hg = gmat @ h
    y = jnp.maximum(hg @ p["w1"] + p["b1"], 0.0)
    y = jnp.maximum(y @ p["w2"] + p["b2"], 0.0)
    return y @ p["w3"] + p["b3"]


if __name__ == "__main__":
    key = jax.random.PRNGKey(0)
    ks = jax.random.split(key, 20)

    # ---- deterministic synthetic batched graphs: B batches of 16 graphs x 8 nodes ----
    adj_list, dinv_list, psrc_list, pdstc_list = [], [], [], []
    for b in range(B_BATCHES):
        src, dst = [], []
        for g in range(N_GRAPHS):
            off = g * NODES_PER_GRAPH
            for i in range(NODES_PER_GRAPH):
                j = (i + 1) % NODES_PER_GRAPH
                src += [off + i, off + j]
                dst += [off + j, off + i]
            for i in range(0, NODES_PER_GRAPH, 2):      # chords, vary per batch
                src.append(off + i)
                dst.append(off + (i + 3 + b) % NODES_PER_GRAPH)
        src = np.array(src)
        dst = np.array(dst)

        adj_np = np.zeros((N_NODES, N_NODES), np.float32)
        adj_np[dst, src] = 1.0                          # adj[dst, src]
        in_deg = np.zeros((N_NODES,), np.float32)
        np.add.at(in_deg, dst, 1.0)                     # in_degrees
        dinv_np = (1.0 / np.sqrt(in_deg + 1.0)).astype(np.float32)   # compute_pseudo

        # graph-packed dst pseudo coord: pdstc[i, src] = dinv[(src//8)*8 + i]
        pdstc_np = np.repeat(
            dinv_np.reshape(N_GRAPHS, NODES_PER_GRAPH).T,
            NODES_PER_GRAPH, axis=1).astype(np.float32)              # (8, 128)

        adj_list.append(adj_np)
        dinv_list.append(dinv_np)
        psrc_list.append(dinv_np.reshape(1, N_NODES))
        pdstc_list.append(pdstc_np)

    adj_all = jnp.asarray(np.stack(adj_list))            # (B, 128, 128)
    dinv_all = jnp.asarray(np.stack(dinv_list))          # (B, 128)
    psrc_all = jnp.asarray(np.stack(psrc_list))          # (B, 1, 128)
    pdstc_all = jnp.asarray(np.stack(pdstc_list))        # (B, 8, 128)

    gmat = jnp.asarray(np.kron(np.eye(N_GRAPHS, dtype=np.float32),
                               np.full((1, NODES_PER_GRAPH), 1.0 / NODES_PER_GRAPH,
                                       np.float32)))     # mean readout (G, N)

    # node features
    h0_all = jax.random.normal(ks[12], (B_BATCHES, N_NODES, IN_DIM), jnp.float32)

    # ---- deterministic parameter init (synthetic; mirrors module shapes) ----
    nrm = lambda k, s, scale=0.1: (scale * jax.random.normal(k, s)).astype(jnp.float32)
    params = {
        "wemb": nrm(ks[0], (IN_DIM, HIDDEN)),
        "bemb": nrm(ks[1], (1, HIDDEN)),
        # per-layer pseudo_proj Linear(2, dim) + Tanh
        "wp": nrm(ks[2], (N_LAYERS, 2, PSEUDO_DIM), 0.5),
        "bp": nrm(ks[3], (N_LAYERS, 1, PSEUDO_DIM), 0.1),
        # GMMLayer params: mu ~ N(0, 0.1), inv_sigma = 1, fc (bias-free)
        "mu": nrm(ks[4], (N_LAYERS, KERNELS, PSEUDO_DIM), 0.1),
        "isig": jnp.ones((N_LAYERS, KERNELS, PSEUDO_DIM), jnp.float32),
        "wfc": nrm(ks[5], (N_LAYERS, HIDDEN, KERNELS * OUT_DIM)),
        # BatchNorm1d (eval): gamma=1, beta=0, running stats 0/1
        "gamma": jnp.ones((N_LAYERS, 1, OUT_DIM), jnp.float32),
        "beta": jnp.zeros((N_LAYERS, 1, OUT_DIM), jnp.float32),
        "rmean": jnp.zeros((N_LAYERS, 1, OUT_DIM), jnp.float32),
        "rvar": jnp.ones((N_LAYERS, 1, OUT_DIM), jnp.float32),
        # MLPReadout: 32 -> 16 -> 8 -> n_classes
        "w1": nrm(ks[6], (OUT_DIM, OUT_DIM // 2)),
        "b1": nrm(ks[7], (1, OUT_DIM // 2)),
        "w2": nrm(ks[8], (OUT_DIM // 2, OUT_DIM // 4)),
        "b2": nrm(ks[9], (1, OUT_DIM // 4)),
        "w3": nrm(ks[10], (OUT_DIM // 4, N_CLASSES)),
        "b3": nrm(ks[11], (1, N_CLASSES)),
    }

    # ---- host-side weight folding (inference-time preprocessing) ----
    # fc weight split per Gaussian kernel: (L, C_in, K*C_out) -> (L*K, C_in, C_out)
    wfc_blocks = params["wfc"].reshape(N_LAYERS, HIDDEN, KERNELS, OUT_DIM) \
                              .transpose(0, 2, 1, 3) \
                              .reshape(N_LAYERS * KERNELS, HIDDEN, OUT_DIM)
    # eval BatchNorm folded to scale/shift
    bn_scale = params["gamma"] / jnp.sqrt(params["rvar"] + BN_EPS)      # (L,1,C)
    bn_shift = params["beta"] - params["rmean"] * bn_scale              # (L,1,C)
    # Gaussian kernel quadratic coefficients: -0.5*isig^2*(p-mu)^2 = c2*p^2 + c1*p + c0
    s2 = params["isig"] ** 2                                            # (L,K,D)
    c2 = (-0.5 * s2).reshape(-1)                                        # (L*K*D,)
    c1 = (s2 * params["mu"]).reshape(-1)                                # (L*K*D,)
    c0 = (-0.5 * s2 * params["mu"] ** 2).sum(axis=-1).reshape(-1)       # (L*K,)
    # pseudo-projection weights flattened for SMEM scalar reads
    wp_flat = params["wp"].reshape(-1)                                  # (L*2*D,)
    bp_flat = params["bp"].reshape(-1)                                  # (L*D,)
    # final readout layer padded to 128 lanes (lane-dense output store)
    w3_pad = jnp.zeros((OUT_DIM // 4, PAD_CLASSES), jnp.float32).at[:, :N_CLASSES].set(params["w3"])
    b3_pad = jnp.zeros((1, PAD_CLASSES), jnp.float32).at[:, :N_CLASSES].set(params["b3"])

    batched = [h0_all, adj_all, psrc_all, pdstc_all]
    const_vmem = [
        gmat,
        params["wemb"], params["bemb"],
        wfc_blocks, bn_scale, bn_shift,
        params["w1"], params["b1"], params["w2"], params["b2"],
        w3_pad, b3_pad,
    ]
    smem_tables = [wp_flat, bp_flat, c2, c1, c0]

    out = monet_forward(batched, const_vmem, smem_tables)
    out = jax.block_until_ready(out)                      # (B, G, N_CLASSES)

    ref = jnp.stack([reference_forward(h0_all[b], adj_all[b], dinv_all[b], gmat, params)
                     for b in range(B_BATCHES)])
    ref = jax.block_until_ready(ref)
    np.testing.assert_allclose(np.asarray(out), np.asarray(ref), rtol=2e-3, atol=2e-3)

    print("KERNEL_OK")
</pallas_src>

<mosaic_0001>
module attributes {stable_mosaic.version = 11 : i64} {
  func.func @monet_kernel(%arg0: i32, %arg1: memref<1x128x8xf32, #tpu.memory_space<vmem>>, %arg2: memref<1x128x128xf32, #tpu.memory_space<vmem>>, %arg3: memref<1x1x128xf32, #tpu.memory_space<vmem>>, %arg4: memref<1x8x128xf32, #tpu.memory_space<vmem>>, %arg5: memref<16x128xf32, #tpu.memory_space<vmem>>, %arg6: memref<8x32xf32, #tpu.memory_space<vmem>>, %arg7: memref<1x32xf32, #tpu.memory_space<vmem>>, %arg8: memref<6x32x32xf32, #tpu.memory_space<vmem>>, %arg9: memref<2x1x32xf32, #tpu.memory_space<vmem>>, %arg10: memref<2x1x32xf32, #tpu.memory_space<vmem>>, %arg11: memref<32x16xf32, #tpu.memory_space<vmem>>, %arg12: memref<1x16xf32, #tpu.memory_space<vmem>>, %arg13: memref<16x8xf32, #tpu.memory_space<vmem>>, %arg14: memref<1x8xf32, #tpu.memory_space<vmem>>, %arg15: memref<8x128xf32, #tpu.memory_space<vmem>>, %arg16: memref<1x128xf32, #tpu.memory_space<vmem>>, %arg17: memref<8xf32, #tpu.memory_space<smem>>, %arg18: memref<4xf32, #tpu.memory_space<smem>>, %arg19: memref<12xf32, #tpu.memory_space<smem>>, %arg20: memref<12xf32, #tpu.memory_space<smem>>, %arg21: memref<6xf32, #tpu.memory_space<smem>>, %arg22: memref<1x16x128xf32, #tpu.memory_space<vmem>>) attributes {dimension_semantics = [#tpu.dimension_semantics<parallel>], iteration_bounds = array<i64: 4>, scalar_prefetch = 0 : i64, scratch_operands = 0 : i64, tpu.core_type = #tpu.core_type<tc>, window_params = [{transform_indices = @transform_0, window_bounds = array<i64: 1, 128, 8>}, {transform_indices = @transform_1, window_bounds = array<i64: 1, 128, 128>}, {transform_indices = @transform_2, window_bounds = array<i64: 1, 1, 128>}, {transform_indices = @transform_3, window_bounds = array<i64: 1, 8, 128>}, {pipeline_mode = #tpu.pipeline_mode<synchronous>, transform_indices = @transform_4, window_bounds = array<i64: 16, 128>}, {pipeline_mode = #tpu.pipeline_mode<synchronous>, transform_indices = @transform_5, window_bounds = array<i64: 8, 32>}, {pipeline_mode = #tpu.pipeline_mode<synchronous>, transform_indices = @transform_6, window_bounds = array<i64: 1, 32>}, {pipeline_mode = #tpu.pipeline_mode<synchronous>, transform_indices = @transform_7, window_bounds = array<i64: 6, 32, 32>}, {pipeline_mode = #tpu.pipeline_mode<synchronous>, transform_indices = @transform_8, window_bounds = array<i64: 2, 1, 32>}, {pipeline_mode = #tpu.pipeline_mode<synchronous>, transform_indices = @transform_9, window_bounds = array<i64: 2, 1, 32>}, {pipeline_mode = #tpu.pipeline_mode<synchronous>, transform_indices = @transform_10, window_bounds = array<i64: 32, 16>}, {pipeline_mode = #tpu.pipeline_mode<synchronous>, transform_indices = @transform_11, window_bounds = array<i64: 1, 16>}, {pipeline_mode = #tpu.pipeline_mode<synchronous>, transform_indices = @transform_12, window_bounds = array<i64: 16, 8>}, {pipeline_mode = #tpu.pipeline_mode<synchronous>, transform_indices = @transform_13, window_bounds = array<i64: 1, 8>}, {pipeline_mode = #tpu.pipeline_mode<synchronous>, transform_indices = @transform_14, window_bounds = array<i64: 8, 128>}, {pipeline_mode = #tpu.pipeline_mode<synchronous>, transform_indices = @transform_15, window_bounds = array<i64: 1, 128>}, {transform_indices = @transform_16, window_bounds = array<i64: 8>}, {transform_indices = @transform_17, window_bounds = array<i64: 4>}, {transform_indices = @transform_18, window_bounds = array<i64: 12>}, {transform_indices = @transform_19, window_bounds = array<i64: 12>}, {transform_indices = @transform_20, window_bounds = array<i64: 6>}, {transform_indices = @transform_21, window_bounds = array<i64: 1, 16, 128>}]} {
    %c0 = arith.constant 0 : index
    %c0_0 = arith.constant 0 : index
    %c0_1 = arith.constant 0 : index
    %0 = vector.load %arg1[%c0, %c0_0, %c0_1] : memref<1x128x8xf32, #tpu.memory_space<vmem>>, vector<1x128x8xf32>
    %1 = vector.shape_cast %0 : vector<1x128x8xf32> to vector<128x8xf32>
    %c0_2 = arith.constant 0 : index
    %c0_3 = arith.constant 0 : index
    %2 = vector.load %arg6[%c0_2, %c0_3] : memref<8x32xf32, #tpu.memory_space<vmem>>, vector<8x32xf32>
    %cst = arith.constant dense<0.000000e+00> : vector<128x32xf32>
    %3 = tpu.matmul %1, %2, %cst {dimension_numbers = #tpu.dot_dimension_numbers<[1], [0], [0], [1], [0, 0, 1, 1], [], []>} : vector<128x8xf32>, vector<8x32xf32>, vector<128x32xf32> -> vector<128x32xf32>
    %c0_4 = arith.constant 0 : index
    %c0_5 = arith.constant 0 : index
    %4 = vector.load %arg7[%c0_4, %c0_5] : memref<1x32xf32, #tpu.memory_space<vmem>>, vector<1x32xf32>
    %5 = vector.broadcast %4 : vector<1x32xf32> to vector<128x32xf32>
    %6 = arith.addf %3, %5 : vector<128x32xf32>
    %c0_6 = arith.constant 0 : index
    %c0_7 = arith.constant 0 : index
    %c0_8 = arith.constant 0 : index
    %7 = vector.load %arg2[%c0_6, %c0_7, %c0_8] : memref<1x128x128xf32, #tpu.memory_space<vmem>>, vector<1x128x128xf32>
    %8 = vector.shape_cast %7 : vector<1x128x128xf32> to vector<128x128xf32>
    %c0_9 = arith.constant 0 : index
    %c0_10 = arith.constant 0 : index
    %c0_11 = arith.constant 0 : index
    %9 = vector.load %arg3[%c0_9, %c0_10, %c0_11] : memref<1x1x128xf32, #tpu.memory_space<vmem>>, vector<1x1x128xf32>
    %10 = vector.shape_cast %9 : vector<1x1x128xf32> to vector<1x128xf32>
    %11 = vector.shape_cast %10 : vector<1x128xf32> to vector<1x128xf32>
    %12 = vector.broadcast %11 : vector<1x128xf32> to vector<8x128xf32>
    %c0_12 = arith.constant 0 : index
    %c0_13 = arith.constant 0 : index
    %c0_14 = arith.constant 0 : index
    %13 = vector.load %arg4[%c0_12, %c0_13, %c0_14] : memref<1x8x128xf32, #tpu.memory_space<vmem>>, vector<1x8x128xf32>
    %14 = vector.shape_cast %13 : vector<1x8x128xf32> to vector<8x128xf32>
    %c0_15 = arith.constant 0 : index
    %15 = memref.load %arg17[%c0_15] : memref<8xf32, #tpu.memory_space<smem>>
    %c2 = arith.constant 2 : index
    %16 = memref.load %arg17[%c2] : memref<8xf32, #tpu.memory_space<smem>>
    %c0_16 = arith.constant 0 : index
    %17 = memref.load %arg18[%c0_16] : memref<4xf32, #tpu.memory_space<smem>>
    %18 = vector.broadcast %15 : f32 to vector<8x128xf32>
    %19 = arith.mulf %12, %18 : vector<8x128xf32>
    %20 = vector.broadcast %16 : f32 to vector<8x128xf32>
    %21 = arith.mulf %14, %20 : vector<8x128xf32>
    %22 = arith.addf %19, %21 : vector<8x128xf32>
    %23 = vector.broadcast %17 : f32 to vector<8x128xf32>
    %24 = arith.addf %22, %23 : vector<8x128xf32>
    %25 = math.tanh %24 : vector<8x128xf32>
    %c1 = arith.constant 1 : index
    %26 = memref.load %arg17[%c1] : memref<8xf32, #tpu.memory_space<smem>>
    %c3 = arith.constant 3 : index
    %27 = memref.load %arg17[%c3] : memref<8xf32, #tpu.memory_space<smem>>
    %c1_17 = arith.constant 1 : index
    %28 = memref.load %arg18[%c1_17] : memref<4xf32, #tpu.memory_space<smem>>
    %29 = vector.broadcast %26 : f32 to vector<8x128xf32>
    %30 = arith.mulf %12, %29 : vector<8x128xf32>
    %31 = vector.broadcast %27 : f32 to vector<8x128xf32>
    %32 = arith.mulf %14, %31 : vector<8x128xf32>
    %33 = arith.addf %30, %32 : vector<8x128xf32>
    %34 = vector.broadcast %28 : f32 to vector<8x128xf32>
    %35 = arith.addf %33, %34 : vector<8x128xf32>
    %36 = math.tanh %35 : vector<8x128xf32>
    %cst_18 = arith.constant 0.000000e+00 : f32
    %37 = vector.broadcast %cst_18 : f32 to vector<128x32xf32>
    %c0_19 = arith.constant 0 : index
    %38 = memref.load %arg21[%c0_19] : memref<6xf32, #tpu.memory_space<smem>>
    %c0_20 = arith.constant 0 : index
    %39 = memref.load %arg19[%c0_20] : memref<12xf32, #tpu.memory_space<smem>>
    %40 = vector.broadcast %39 : f32 to vector<8x128xf32>
    %41 = arith.mulf %40, %25 : vector<8x128xf32>
    %c0_21 = arith.constant 0 : index
    %42 = memref.load %arg20[%c0_21] : memref<12xf32, #tpu.memory_space<smem>>
    %43 = vector.broadcast %42 : f32 to vector<8x128xf32>
    %44 = arith.addf %41, %43 : vector<8x128xf32>
    %45 = arith.mulf %25, %44 : vector<8x128xf32>
    %46 = vector.broadcast %38 : f32 to vector<8x128xf32>
    %47 = arith.addf %46, %45 : vector<8x128xf32>
    %c1_22 = arith.constant 1 : index
    %48 = memref.load %arg19[%c1_22] : memref<12xf32, #tpu.memory_space<smem>>
    %49 = vector.broadcast %48 : f32 to vector<8x128xf32>
    %50 = arith.mulf %49, %36 : vector<8x128xf32>
    %c1_23 = arith.constant 1 : index
    %51 = memref.load %arg20[%c1_23] : memref<12xf32, #tpu.memory_space<smem>>
    %52 = vector.broadcast %51 : f32 to vector<8x128xf32>
    %53 = arith.addf %50, %52 : vector<8x128xf32>
    %54 = arith.mulf %36, %53 : vector<8x128xf32>
    %55 = arith.addf %47, %54 : vector<8x128xf32>
    %56 = math.exp %55 : vector<8x128xf32>
    %57 = vector.shape_cast %56 : vector<8x128xf32> to vector<1x8x128xf32>
    %58 = vector.broadcast %57 : vector<1x8x128xf32> to vector<16x8x128xf32>
    %59 = vector.shape_cast %58 : vector<16x8x128xf32> to vector<128x128xf32>
    %60 = arith.mulf %8, %59 : vector<128x128xf32>
    %c0_24 = arith.constant 0 : index
    %c0_25 = arith.constant 0 : index
    %c0_26 = arith.constant 0 : index
    %61 = vector.load %arg8[%c0_24, %c0_25, %c0_26] : memref<6x32x32xf32, #tpu.memory_space<vmem>>, vector<1x32x32xf32>
    %62 = vector.shape_cast %61 : vector<1x32x32xf32> to vector<32x32xf32>
    %cst_27 = arith.constant dense<0.000000e+00> : vector<128x32xf32>
    %63 = tpu.matmul %6, %62, %cst_27 {dimension_numbers = #tpu.dot_dimension_numbers<[1], [0], [0], [1], [0, 0, 1, 1], [], []>} : vector<128x32xf32>, vector<32x32xf32>, vector<128x32xf32> -> vector<128x32xf32>
    %cst_28 = arith.constant dense<0.000000e+00> : vector<128x32xf32>
    %64 = tpu.matmul %60, %63, %cst_28 {dimension_numbers = #tpu.dot_dimension_numbers<[1], [0], [0], [1], [0, 0, 1, 1], [], []>} : vector<128x128xf32>, vector<128x32xf32>, vector<128x32xf32> -> vector<128x32xf32>
    %65 = arith.addf %37, %64 : vector<128x32xf32>
    %c1_29 = arith.constant 1 : index
    %66 = memref.load %arg21[%c1_29] : memref<6xf32, #tpu.memory_space<smem>>
    %c2_30 = arith.constant 2 : index
    %67 = memref.load %arg19[%c2_30] : memref<12xf32, #tpu.memory_space<smem>>
    %68 = vector.broadcast %67 : f32 to vector<8x128xf32>
    %69 = arith.mulf %68, %25 : vector<8x128xf32>
    %c2_31 = arith.constant 2 : index
    %70 = memref.load %arg20[%c2_31] : memref<12xf32, #tpu.memory_space<smem>>
    %71 = vector.broadcast %70 : f32 to vector<8x128xf32>
    %72 = arith.addf %69, %71 : vector<8x128xf32>
    %73 = arith.mulf %25, %72 : vector<8x128xf32>
    %74 = vector.broadcast %66 : f32 to vector<8x128xf32>
    %75 = arith.addf %74, %73 : vector<8x128xf32>
    %c3_32 = arith.constant 3 : index
    %76 = memref.load %arg19[%c3_32] : memref<12xf32, #tpu.memory_space<smem>>
    %77 = vector.broadcast %76 : f32 to vector<8x128xf32>
    %78 = arith.mulf %77, %36 : vector<8x128xf32>
    %c3_33 = arith.constant 3 : index
    %79 = memref.load %arg20[%c3_33] : memref<12xf32, #tpu.memory_space<smem>>
    %80 = vector.broadcast %79 : f32 to vector<8x128xf32>
    %81 = arith.addf %78, %80 : vector<8x128xf32>
    %82 = arith.mulf %36, %81 : vector<8x128xf32>
    %83 = arith.addf %75, %82 : vector<8x128xf32>
    %84 = math.exp %83 : vector<8x128xf32>
    %85 = vector.shape_cast %84 : vector<8x128xf32> to vector<1x8x128xf32>
    %86 = vector.broadcast %85 : vector<1x8x128xf32> to vector<16x8x128xf32>
    %87 = vector.shape_cast %86 : vector<16x8x128xf32> to vector<128x128xf32>
    %88 = arith.mulf %8, %87 : vector<128x128xf32>
    %c1_34 = arith.constant 1 : index
    %c0_35 = arith.constant 0 : index
    %c0_36 = arith.constant 0 : index
    %89 = vector.load %arg8[%c1_34, %c0_35, %c0_36] : memref<6x32x32xf32, #tpu.memory_space<vmem>>, vector<1x32x32xf32>
    %90 = vector.shape_cast %89 : vector<1x32x32xf32> to vector<32x32xf32>
    %cst_37 = arith.constant dense<0.000000e+00> : vector<128x32xf32>
    %91 = tpu.matmul %6, %90, %cst_37 {dimension_numbers = #tpu.dot_dimension_numbers<[1], [0], [0], [1], [0, 0, 1, 1], [], []>} : vector<128x32xf32>, vector<32x32xf32>, vector<128x32xf32> -> vector<128x32xf32>
    %cst_38 = arith.constant dense<0.000000e+00> : vector<128x32xf32>
    %92 = tpu.matmul %88, %91, %cst_38 {dimension_numbers = #tpu.dot_dimension_numbers<[1], [0], [0], [1], [0, 0, 1, 1], [], []>} : vector<128x128xf32>, vector<128x32xf32>, vector<128x32xf32> -> vector<128x32xf32>
    %93 = arith.addf %65, %92 : vector<128x32xf32>
    %c2_39 = arith.constant 2 : index
    %94 = memref.load %arg21[%c2_39] : memref<6xf32, #tpu.memory_space<smem>>
    %c4 = arith.constant 4 : index
    %95 = memref.load %arg19[%c4] : memref<12xf32, #tpu.memory_space<smem>>
    %96 = vector.broadcast %95 : f32 to vector<8x128xf32>
    %97 = arith.mulf %96, %25 : vector<8x128xf32>
    %c4_40 = arith.constant 4 : index
    %98 = memref.load %arg20[%c4_40] : memref<12xf32, #tpu.memory_space<smem>>
    %99 = vector.broadcast %98 : f32 to vector<8x128xf32>
    %100 = arith.addf %97, %99 : vector<8x128xf32>
    %101 = arith.mulf %25, %100 : vector<8x128xf32>
    %102 = vector.broadcast %94 : f32 to vector<8x128xf32>
    %103 = arith.addf %102, %101 : vector<8x128xf32>
    %c5 = arith.constant 5 : index
    %104 = memref.load %arg19[%c5] : memref<12xf32, #tpu.memory_space<smem>>
    %105 = vector.broadcast %104 : f32 to vector<8x128xf32>
    %106 = arith.mulf %105, %36 : vector<8x128xf32>
    %c5_41 = arith.constant 5 : index
    %107 = memref.load %arg20[%c5_41] : memref<12xf32, #tpu.memory_space<smem>>
    %108 = vector.broadcast %107 : f32 to vector<8x128xf32>
    %109 = arith.addf %106, %108 : vector<8x128xf32>
    %110 = arith.mulf %36, %109 : vector<8x128xf32>
    %111 = arith.addf %103, %110 : vector<8x128xf32>
    %112 = math.exp %111 : vector<8x128xf32>
    %113 = vector.shape_cast %112 : vector<8x128xf32> to vector<1x8x128xf32>
    %114 = vector.broadcast %113 : vector<1x8x128xf32> to vector<16x8x128xf32>
    %115 = vector.shape_cast %114 : vector<16x8x128xf32> to vector<128x128xf32>
    %116 = arith.mulf %8, %115 : vector<128x128xf32>
    %c2_42 = arith.constant 2 : index
    %c0_43 = arith.constant 0 : index
    %c0_44 = arith.constant 0 : index
    %117 = vector.load %arg8[%c2_42, %c0_43, %c0_44] : memref<6x32x32xf32, #tpu.memory_space<vmem>>, vector<1x32x32xf32>
    %118 = vector.shape_cast %117 : vector<1x32x32xf32> to vector<32x32xf32>
    %cst_45 = arith.constant dense<0.000000e+00> : vector<128x32xf32>
    %119 = tpu.matmul %6, %118, %cst_45 {dimension_numbers = #tpu.dot_dimension_numbers<[1], [0], [0], [1], [0, 0, 1, 1], [], []>} : vector<128x32xf32>, vector<32x32xf32>, vector<128x32xf32> -> vector<128x32xf32>
    %cst_46 = arith.constant dense<0.000000e+00> : vector<128x32xf32>
    %120 = tpu.matmul %116, %119, %cst_46 {dimension_numbers = #tpu.dot_dimension_numbers<[1], [0], [0], [1], [0, 0, 1, 1], [], []>} : vector<128x128xf32>, vector<128x32xf32>, vector<128x32xf32> -> vector<128x32xf32>
    %121 = arith.addf %93, %120 : vector<128x32xf32>
    %c0_47 = arith.constant 0 : index
    %c0_48 = arith.constant 0 : index
    %c0_49 = arith.constant 0 : index
    %122 = vector.load %arg9[%c0_47, %c0_48, %c0_49] : memref<2x1x32xf32, #tpu.memory_space<vmem>>, vector<1x1x32xf32>
    %123 = vector.shape_cast %122 : vector<1x1x32xf32> to vector<1x32xf32>
    %124 = vector.broadcast %123 : vector<1x32xf32> to vector<128x32xf32>
    %125 = arith.mulf %121, %124 : vector<128x32xf32>
    %c0_50 = arith.constant 0 : index
    %c0_51 = arith.constant 0 : index
    %c0_52 = arith.constant 0 : index
    %126 = vector.load %arg10[%c0_50, %c0_51, %c0_52] : memref<2x1x32xf32, #tpu.memory_space<vmem>>, vector<1x1x32xf32>
    %127 = vector.shape_cast %126 : vector<1x1x32xf32> to vector<1x32xf32>
    %128 = vector.broadcast %127 : vector<1x32xf32> to vector<128x32xf32>
    %129 = arith.addf %125, %128 : vector<128x32xf32>
    %cst_53 = arith.constant 0.000000e+00 : f32
    %130 = vector.broadcast %cst_53 : f32 to vector<128x32xf32>
    %131 = arith.maximumf %129, %130 : vector<128x32xf32>
    %132 = arith.addf %6, %131 : vector<128x32xf32>
    %c4_54 = arith.constant 4 : index
    %133 = memref.load %arg17[%c4_54] : memref<8xf32, #tpu.memory_space<smem>>
    %c6 = arith.constant 6 : index
    %134 = memref.load %arg17[%c6] : memref<8xf32, #tpu.memory_space<smem>>
    %c2_55 = arith.constant 2 : index
    %135 = memref.load %arg18[%c2_55] : memref<4xf32, #tpu.memory_space<smem>>
    %136 = vector.broadcast %133 : f32 to vector<8x128xf32>
    %137 = arith.mulf %12, %136 : vector<8x128xf32>
    %138 = vector.broadcast %134 : f32 to vector<8x128xf32>
    %139 = arith.mulf %14, %138 : vector<8x128xf32>
    %140 = arith.addf %137, %139 : vector<8x128xf32>
    %141 = vector.broadcast %135 : f32 to vector<8x128xf32>
    %142 = arith.addf %140, %141 : vector<8x128xf32>
    %143 = math.tanh %142 : vector<8x128xf32>
    %c5_56 = arith.constant 5 : index
    %144 = memref.load %arg17[%c5_56] : memref<8xf32, #tpu.memory_space<smem>>
    %c7 = arith.constant 7 : index
    %145 = memref.load %arg17[%c7] : memref<8xf32, #tpu.memory_space<smem>>
    %c3_57 = arith.constant 3 : index
    %146 = memref.load %arg18[%c3_57] : memref<4xf32, #tpu.memory_space<smem>>
    %147 = vector.broadcast %144 : f32 to vector<8x128xf32>
    %148 = arith.mulf %12, %147 : vector<8x128xf32>
    %149 = vector.broadcast %145 : f32 to vector<8x128xf32>
    %150 = arith.mulf %14, %149 : vector<8x128xf32>
    %151 = arith.addf %148, %150 : vector<8x128xf32>
    %152 = vector.broadcast %146 : f32 to vector<8x128xf32>
    %153 = arith.addf %151, %152 : vector<8x128xf32>
    %154 = math.tanh %153 : vector<8x128xf32>
    %cst_58 = arith.constant 0.000000e+00 : f32
    %155 = vector.broadcast %cst_58 : f32 to vector<128x32xf32>
    %c3_59 = arith.constant 3 : index
    %156 = memref.load %arg21[%c3_59] : memref<6xf32, #tpu.memory_space<smem>>
    %c6_60 = arith.constant 6 : index
    %157 = memref.load %arg19[%c6_60] : memref<12xf32, #tpu.memory_space<smem>>
    %158 = vector.broadcast %157 : f32 to vector<8x128xf32>
    %159 = arith.mulf %158, %143 : vector<8x128xf32>
    %c6_61 = arith.constant 6 : index
    %160 = memref.load %arg20[%c6_61] : memref<12xf32, #tpu.memory_space<smem>>
    %161 = vector.broadcast %160 : f32 to vector<8x128xf32>
    %162 = arith.addf %159, %161 : vector<8x128xf32>
    %163 = arith.mulf %143, %162 : vector<8x128xf32>
    %164 = vector.broadcast %156 : f32 to vector<8x128xf32>
    %165 = arith.addf %164, %163 : vector<8x128xf32>
    %c7_62 = arith.constant 7 : index
    %166 = memref.load %arg19[%c7_62] : memref<12xf32, #tpu.memory_space<smem>>
    %167 = vector.broadcast %166 : f32 to vector<8x128xf32>
    %168 = arith.mulf %167, %154 : vector<8x128xf32>
    %c7_63 = arith.constant 7 : index
    %169 = memref.load %arg20[%c7_63] : memref<12xf32, #tpu.memory_space<smem>>
    %170 = vector.broadcast %169 : f32 to vector<8x128xf32>
    %171 = arith.addf %168, %170 : vector<8x128xf32>
    %172 = arith.mulf %154, %171 : vector<8x128xf32>
    %173 = arith.addf %165, %172 : vector<8x128xf32>
    %174 = math.exp %173 : vector<8x128xf32>
    %175 = vector.shape_cast %174 : vector<8x128xf32> to vector<1x8x128xf32>
    %176 = vector.broadcast %175 : vector<1x8x128xf32> to vector<16x8x128xf32>
    %177 = vector.shape_cast %176 : vector<16x8x128xf32> to vector<128x128xf32>
    %178 = arith.mulf %8, %177 : vector<128x128xf32>
    %c3_64 = arith.constant 3 : index
    %c0_65 = arith.constant 0 : index
    %c0_66 = arith.constant 0 : index
    %179 = vector.load %arg8[%c3_64, %c0_65, %c0_66] : memref<6x32x32xf32, #tpu.memory_space<vmem>>, vector<1x32x32xf32>
    %180 = vector.shape_cast %179 : vector<1x32x32xf32> to vector<32x32xf32>
    %cst_67 = arith.constant dense<0.000000e+00> : vector<128x32xf32>
    %181 = tpu.matmul %132, %180, %cst_67 {dimension_numbers = #tpu.dot_dimension_numbers<[1], [0], [0], [1], [0, 0, 1, 1], [], []>} : vector<128x32xf32>, vector<32x32xf32>, vector<128x32xf32> -> vector<128x32xf32>
    %cst_68 = arith.constant dense<0.000000e+00> : vector<128x32xf32>
    %182 = tpu.matmul %178, %181, %cst_68 {dimension_numbers = #tpu.dot_dimension_numbers<[1], [0], [0], [1], [0, 0, 1, 1], [], []>} : vector<128x128xf32>, vector<128x32xf32>, vector<128x32xf32> -> vector<128x32xf32>
    %183 = arith.addf %155, %182 : vector<128x32xf32>
    %c4_69 = arith.constant 4 : index
    %184 = memref.load %arg21[%c4_69] : memref<6xf32, #tpu.memory_space<smem>>
    %c8 = arith.constant 8 : index
    %185 = memref.load %arg19[%c8] : memref<12xf32, #tpu.memory_space<smem>>
    %186 = vector.broadcast %185 : f32 to vector<8x128xf32>
    %187 = arith.mulf %186, %143 : vector<8x128xf32>
    %c8_70 = arith.constant 8 : index
    %188 = memref.load %arg20[%c8_70] : memref<12xf32, #tpu.memory_space<smem>>
    %189 = vector.broadcast %188 : f32 to vector<8x128xf32>
    %190 = arith.addf %187, %189 : vector<8x128xf32>
    %191 = arith.mulf %143, %190 : vector<8x128xf32>
    %192 = vector.broadcast %184 : f32 to vector<8x128xf32>
    %193 = arith.addf %192, %191 : vector<8x128xf32>
    %c9 = arith.constant 9 : index
    %194 = memref.load %arg19[%c9] : memref<12xf32, #tpu.memory_space<smem>>
    %195 = vector.broadcast %194 : f32 to vector<8x128xf32>
    %196 = arith.mulf %195, %154 : vector<8x128xf32>
    %c9_71 = arith.constant 9 : index
    %197 = memref.load %arg20[%c9_71] : memref<12xf32, #tpu.memory_space<smem>>
    %198 = vector.broadcast %197 : f32 to vector<8x128xf32>
    %199 = arith.addf %196, %198 : vector<8x128xf32>
    %200 = arith.mulf %154, %199 : vector<8x128xf32>
    %201 = arith.addf %193, %200 : vector<8x128xf32>
    %202 = math.exp %201 : vector<8x128xf32>
    %203 = vector.shape_cast %202 : vector<8x128xf32> to vector<1x8x128xf32>
    %204 = vector.broadcast %203 : vector<1x8x128xf32> to vector<16x8x128xf32>
    %205 = vector.shape_cast %204 : vector<16x8x128xf32> to vector<128x128xf32>
    %206 = arith.mulf %8, %205 : vector<128x128xf32>
    %c4_72 = arith.constant 4 : index
    %c0_73 = arith.constant 0 : index
    %c0_74 = arith.constant 0 : index
    %207 = vector.load %arg8[%c4_72, %c0_73, %c0_74] : memref<6x32x32xf32, #tpu.memory_space<vmem>>, vector<1x32x32xf32>
    %208 = vector.shape_cast %207 : vector<1x32x32xf32> to vector<32x32xf32>
    %cst_75 = arith.constant dense<0.000000e+00> : vector<128x32xf32>
    %209 = tpu.matmul %132, %208, %cst_75 {dimension_numbers = #tpu.dot_dimension_numbers<[1], [0], [0], [1], [0, 0, 1, 1], [], []>} : vector<128x32xf32>, vector<32x32xf32>, vector<128x32xf32> -> vector<128x32xf32>
    %cst_76 = arith.constant dense<0.000000e+00> : vector<128x32xf32>
    %210 = tpu.matmul %206, %209, %cst_76 {dimension_numbers = #tpu.dot_dimension_numbers<[1], [0], [0], [1], [0, 0, 1, 1], [], []>} : vector<128x128xf32>, vector<128x32xf32>, vector<128x32xf32> -> vector<128x32xf32>
    %211 = arith.addf %183, %210 : vector<128x32xf32>
    %c5_77 = arith.constant 5 : index
    %212 = memref.load %arg21[%c5_77] : memref<6xf32, #tpu.memory_space<smem>>
    %c10 = arith.constant 10 : index
    %213 = memref.load %arg19[%c10] : memref<12xf32, #tpu.memory_space<smem>>
    %214 = vector.broadcast %213 : f32 to vector<8x128xf32>
    %215 = arith.mulf %214, %143 : vector<8x128xf32>
    %c10_78 = arith.constant 10 : index
    %216 = memref.load %arg20[%c10_78] : memref<12xf32, #tpu.memory_space<smem>>
    %217 = vector.broadcast %216 : f32 to vector<8x128xf32>
    %218 = arith.addf %215, %217 : vector<8x128xf32>
    %219 = arith.mulf %143, %218 : vector<8x128xf32>
    %220 = vector.broadcast %212 : f32 to vector<8x128xf32>
    %221 = arith.addf %220, %219 : vector<8x128xf32>
    %c11 = arith.constant 11 : index
    %222 = memref.load %arg19[%c11] : memref<12xf32, #tpu.memory_space<smem>>
    %223 = vector.broadcast %222 : f32 to vector<8x128xf32>
    %224 = arith.mulf %223, %154 : vector<8x128xf32>
    %c11_79 = arith.constant 11 : index
    %225 = memref.load %arg20[%c11_79] : memref<12xf32, #tpu.memory_space<smem>>
    %226 = vector.broadcast %225 : f32 to vector<8x128xf32>
    %227 = arith.addf %224, %226 : vector<8x128xf32>
    %228 = arith.mulf %154, %227 : vector<8x128xf32>
    %229 = arith.addf %221, %228 : vector<8x128xf32>
    %230 = math.exp %229 : vector<8x128xf32>
    %231 = vector.shape_cast %230 : vector<8x128xf32> to vector<1x8x128xf32>
    %232 = vector.broadcast %231 : vector<1x8x128xf32> to vector<16x8x128xf32>
    %233 = vector.shape_cast %232 : vector<16x8x128xf32> to vector<128x128xf32>
    %234 = arith.mulf %8, %233 : vector<128x128xf32>
    %c5_80 = arith.constant 5 : index
    %c0_81 = arith.constant 0 : index
    %c0_82 = arith.constant 0 : index
    %235 = vector.load %arg8[%c5_80, %c0_81, %c0_82] : memref<6x32x32xf32, #tpu.memory_space<vmem>>, vector<1x32x32xf32>
    %236 = vector.shape_cast %235 : vector<1x32x32xf32> to vector<32x32xf32>
    %cst_83 = arith.constant dense<0.000000e+00> : vector<128x32xf32>
    %237 = tpu.matmul %132, %236, %cst_83 {dimension_numbers = #tpu.dot_dimension_numbers<[1], [0], [0], [1], [0, 0, 1, 1], [], []>} : vector<128x32xf32>, vector<32x32xf32>, vector<128x32xf32> -> vector<128x32xf32>
    %cst_84 = arith.constant dense<0.000000e+00> : vector<128x32xf32>
    %238 = tpu.matmul %234, %237, %cst_84 {dimension_numbers = #tpu.dot_dimension_numbers<[1], [0], [0], [1], [0, 0, 1, 1], [], []>} : vector<128x128xf32>, vector<128x32xf32>, vector<128x32xf32> -> vector<128x32xf32>
    %239 = arith.addf %211, %238 : vector<128x32xf32>
    %c1_85 = arith.constant 1 : index
    %c0_86 = arith.constant 0 : index
    %c0_87 = arith.constant 0 : index
    %240 = vector.load %arg9[%c1_85, %c0_86, %c0_87] : memref<2x1x32xf32, #tpu.memory_space<vmem>>, vector<1x1x32xf32>
    %241 = vector.shape_cast %240 : vector<1x1x32xf32> to vector<1x32xf32>
    %242 = vector.broadcast %241 : vector<1x32xf32> to vector<128x32xf32>
    %243 = arith.mulf %239, %242 : vector<128x32xf32>
    %c1_88 = arith.constant 1 : index
    %c0_89 = arith.constant 0 : index
    %c0_90 = arith.constant 0 : index
    %244 = vector.load %arg10[%c1_88, %c0_89, %c0_90] : memref<2x1x32xf32, #tpu.memory_space<vmem>>, vector<1x1x32xf32>
    %245 = vector.shape_cast %244 : vector<1x1x32xf32> to vector<1x32xf32>
    %246 = vector.broadcast %245 : vector<1x32xf32> to vector<128x32xf32>
    %247 = arith.addf %243, %246 : vector<128x32xf32>
    %cst_91 = arith.constant 0.000000e+00 : f32
    %248 = vector.broadcast %cst_91 : f32 to vector<128x32xf32>
    %249 = arith.maximumf %247, %248 : vector<128x32xf32>
    %250 = arith.addf %132, %249 : vector<128x32xf32>
    %c0_92 = arith.constant 0 : index
    %c0_93 = arith.constant 0 : index
    %251 = vector.load %arg5[%c0_92, %c0_93] : memref<16x128xf32, #tpu.memory_space<vmem>>, vector<16x128xf32>
    %cst_94 = arith.constant dense<0.000000e+00> : vector<16x32xf32>
    %252 = tpu.matmul %251, %250, %cst_94 {dimension_numbers = #tpu.dot_dimension_numbers<[1], [0], [0], [1], [0, 0, 1, 1], [], []>} : vector<16x128xf32>, vector<128x32xf32>, vector<16x32xf32> -> vector<16x32xf32>
    %c0_95 = arith.constant 0 : index
    %c0_96 = arith.constant 0 : index
    %253 = vector.load %arg11[%c0_95, %c0_96] : memref<32x16xf32, #tpu.memory_space<vmem>>, vector<32x16xf32>
    %cst_97 = arith.constant dense<0.000000e+00> : vector<16x16xf32>
    %254 = tpu.matmul %252, %253, %cst_97 {dimension_numbers = #tpu.dot_dimension_numbers<[1], [0], [0], [1], [0, 0, 1, 1], [], []>} : vector<16x32xf32>, vector<32x16xf32>, vector<16x16xf32> -> vector<16x16xf32>
    %c0_98 = arith.constant 0 : index
    %c0_99 = arith.constant 0 : index
    %255 = vector.load %arg12[%c0_98, %c0_99] : memref<1x16xf32, #tpu.memory_space<vmem>>, vector<1x16xf32>
    %256 = vector.broadcast %255 : vector<1x16xf32> to vector<16x16xf32>
    %257 = arith.addf %254, %256 : vector<16x16xf32>
    %cst_100 = arith.constant 0.000000e+00 : f32
    %258 = vector.broadcast %cst_100 : f32 to vector<16x16xf32>
    %259 = arith.maximumf %257, %258 : vector<16x16xf32>
    %c0_101 = arith.constant 0 : index
    %c0_102 = arith.constant 0 : index
    %260 = vector.load %arg13[%c0_101, %c0_102] : memref<16x8xf32, #tpu.memory_space<vmem>>, vector<16x8xf32>
    %cst_103 = arith.constant dense<0.000000e+00> : vector<16x8xf32>
    %261 = tpu.matmul %259, %260, %cst_103 {dimension_numbers = #tpu.dot_dimension_numbers<[1], [0], [0], [1], [0, 0, 1, 1], [], []>} : vector<16x16xf32>, vector<16x8xf32>, vector<16x8xf32> -> vector<16x8xf32>
    %c0_104 = arith.constant 0 : index
    %c0_105 = arith.constant 0 : index
    %262 = vector.load %arg14[%c0_104, %c0_105] : memref<1x8xf32, #tpu.memory_space<vmem>>, vector<1x8xf32>
    %263 = vector.broadcast %262 : vector<1x8xf32> to vector<16x8xf32>
    %264 = arith.addf %261, %263 : vector<16x8xf32>
    %cst_106 = arith.constant 0.000000e+00 : f32
    %265 = vector.broadcast %cst_106 : f32 to vector<16x8xf32>
    %266 = arith.maximumf %264, %265 : vector<16x8xf32>
    %c0_107 = arith.constant 0 : index
    %c0_108 = arith.constant 0 : index
    %267 = vector.load %arg15[%c0_107, %c0_108] : memref<8x128xf32, #tpu.memory_space<vmem>>, vector<8x128xf32>
    %cst_109 = arith.constant dense<0.000000e+00> : vector<16x128xf32>
    %268 = tpu.matmul %266, %267, %cst_109 {dimension_numbers = #tpu.dot_dimension_numbers<[1], [0], [0], [1], [0, 0, 1, 1], [], []>} : vector<16x8xf32>, vector<8x128xf32>, vector<16x128xf32> -> vector<16x128xf32>
    %c0_110 = arith.constant 0 : index
    %c0_111 = arith.constant 0 : index
    %269 = vector.load %arg16[%c0_110, %c0_111] : memref<1x128xf32, #tpu.memory_space<vmem>>, vector<1x128xf32>
    %270 = vector.broadcast %269 : vector<1x128xf32> to vector<16x128xf32>
    %271 = arith.addf %268, %270 : vector<16x128xf32>
    %c0_112 = arith.constant 0 : index
    %c0_113 = arith.constant 0 : index
    %c0_114 = arith.constant 0 : index
    %272 = vector.load %arg22[%c0_112, %c0_113, %c0_114] : memref<1x16x128xf32, #tpu.memory_space<vmem>>, vector<1x16x128xf32>
    %273 = vector.shape_cast %272 : vector<1x16x128xf32> to vector<16x128xf32>
    %274 = vector.shape_cast %271 : vector<16x128xf32> to vector<1x16x128xf32>
    tpu.vector_store %arg22[%c0_112, %c0_113, %c0_114], %274 {strides = array<i32>} : memref<1x16x128xf32, #tpu.memory_space<vmem>>, vector<1x16x128xf32>,
    return
  }
  func.func @transform_0(%arg0: i32) -> (i32, i32, i32) {
    %c0_i32 = arith.constant 0 : i32
    %c0_i32_0 = arith.constant 0 : i32
    %c0_i32_1 = arith.constant 0 : i32
    return %arg0, %c0_i32, %c0_i32_0 : i32, i32, i32
  }
  func.func @transform_1(%arg0: i32) -> (i32, i32, i32) {
    %c0_i32 = arith.constant 0 : i32
    %c0_i32_0 = arith.constant 0 : i32
    %c0_i32_1 = arith.constant 0 : i32
    return %arg0, %c0_i32, %c0_i32_0 : i32, i32, i32
  }
  func.func @transform_2(%arg0: i32) -> (i32, i32, i32) {
    %c0_i32 = arith.constant 0 : i32
    %c0_i32_0 = arith.constant 0 : i32
    %c0_i32_1 = arith.constant 0 : i32
    return %arg0, %c0_i32, %c0_i32_0 : i32, i32, i32
  }
  func.func @transform_3(%arg0: i32) -> (i32, i32, i32) {
    %c0_i32 = arith.constant 0 : i32
    %c0_i32_0 = arith.constant 0 : i32
    %c0_i32_1 = arith.constant 0 : i32
    return %arg0, %c0_i32, %c0_i32_0 : i32, i32, i32
  }
  func.func @transform_4(%arg0: i32) -> (i32, i32) {
    %c0_i32 = arith.constant 0 : i32
    %c0_i32_0 = arith.constant 0 : i32
    %c0_i32_1 = arith.constant 0 : i32
    return %c0_i32, %c0_i32_0 : i32, i32
  }
  func.func @transform_5(%arg0: i32) -> (i32, i32) {
    %c0_i32 = arith.constant 0 : i32
    %c0_i32_0 = arith.constant 0 : i32
    %c0_i32_1 = arith.constant 0 : i32
    return %c0_i32, %c0_i32_0 : i32, i32
  }
  func.func @transform_6(%arg0: i32) -> (i32, i32) {
    %c0_i32 = arith.constant 0 : i32
    %c0_i32_0 = arith.constant 0 : i32
    %c0_i32_1 = arith.constant 0 : i32
    return %c0_i32, %c0_i32_0 : i32, i32
  }
  func.func @transform_7(%arg0: i32) -> (i32, i32, i32) {
    %c0_i32 = arith.constant 0 : i32
    %c0_i32_0 = arith.constant 0 : i32
    %c0_i32_1 = arith.constant 0 : i32
    %c0_i32_2 = arith.constant 0 : i32
    return %c0_i32, %c0_i32_0, %c0_i32_1 : i32, i32, i32
  }
  func.func @transform_8(%arg0: i32) -> (i32, i32, i32) {
    %c0_i32 = arith.constant 0 : i32
    %c0_i32_0 = arith.constant 0 : i32
    %c0_i32_1 = arith.constant 0 : i32
    %c0_i32_2 = arith.constant 0 : i32
    return %c0_i32, %c0_i32_0, %c0_i32_1 : i32, i32, i32
  }
  func.func @transform_9(%arg0: i32) -> (i32, i32, i32) {
    %c0_i32 = arith.constant 0 : i32
    %c0_i32_0 = arith.constant 0 : i32
    %c0_i32_1 = arith.constant 0 : i32
    %c0_i32_2 = arith.constant 0 : i32
    return %c0_i32, %c0_i32_0, %c0_i32_1 : i32, i32, i32
  }
  func.func @transform_10(%arg0: i32) -> (i32, i32) {
    %c0_i32 = arith.constant 0 : i32
    %c0_i32_0 = arith.constant 0 : i32
    %c0_i32_1 = arith.constant 0 : i32
    return %c0_i32, %c0_i32_0 : i32, i32
  }
  func.func @transform_11(%arg0: i32) -> (i32, i32) {
    %c0_i32 = arith.constant 0 : i32
    %c0_i32_0 = arith.constant 0 : i32
    %c0_i32_1 = arith.constant 0 : i32
    return %c0_i32, %c0_i32_0 : i32, i32
  }
  func.func @transform_12(%arg0: i32) -> (i32, i32) {
    %c0_i32 = arith.constant 0 : i32
    %c0_i32_0 = arith.constant 0 : i32
    %c0_i32_1 = arith.constant 0 : i32
    return %c0_i32, %c0_i32_0 : i32, i32
  }
  func.func @transform_13(%arg0: i32) -> (i32, i32) {
    %c0_i32 = arith.constant 0 : i32
    %c0_i32_0 = arith.constant 0 : i32
    %c0_i32_1 = arith.constant 0 : i32
    return %c0_i32, %c0_i32_0 : i32, i32
  }
  func.func @transform_14(%arg0: i32) -> (i32, i32) {
    %c0_i32 = arith.constant 0 : i32
    %c0_i32_0 = arith.constant 0 : i32
    %c0_i32_1 = arith.constant 0 : i32
    return %c0_i32, %c0_i32_0 : i32, i32
  }
  func.func @transform_15(%arg0: i32) -> (i32, i32) {
    %c0_i32 = arith.constant 0 : i32
    %c0_i32_0 = arith.constant 0 : i32
    %c0_i32_1 = arith.constant 0 : i32
    return %c0_i32, %c0_i32_0 : i32, i32
  }
  func.func @transform_16(%arg0: i32) -> i32 {
    %c0_i32 = arith.constant 0 : i32
    %c0_i32_0 = arith.constant 0 : i32
    return %c0_i32 : i32
  }
  func.func @transform_17(%arg0: i32) -> i32 {
    %c0_i32 = arith.constant 0 : i32
    %c0_i32_0 = arith.constant 0 : i32
    return %c0_i32 : i32
  }
  func.func @transform_18(%arg0: i32) -> i32 {
    %c0_i32 = arith.constant 0 : i32
    %c0_i32_0 = arith.constant 0 : i32
    return %c0_i32 : i32
  }
  func.func @transform_19(%arg0: i32) -> i32 {
    %c0_i32 = arith.constant 0 : i32
    %c0_i32_0 = arith.constant 0 : i32
    return %c0_i32 : i32
  }
  func.func @transform_20(%arg0: i32) -> i32 {
    %c0_i32 = arith.constant 0 : i32
    %c0_i32_0 = arith.constant 0 : i32
    return %c0_i32 : i32
  }
  func.func @transform_21(%arg0: i32) -> (i32, i32, i32) {
    %c0_i32 = arith.constant 0 : i32
    %c0_i32_0 = arith.constant 0 : i32
    %c0_i32_1 = arith.constant 0 : i32
    return %arg0, %c0_i32, %c0_i32_0 : i32, i32, i32
  }
}

</mosaic_0001>

<bundles_post_ra>
// kernel: tpu_custom_call.1
= control target key start
LH: loop header
LB: loop body
LE: loop exit
PB: predicated region body
PF: predicated region fallthrough
CT: control target
= control target key end

     0   :  { %s6693_s0 = inlined_call_operand.vmem [shape: f32[4,128,8], index: 0, kind: input, shape index: {}]   ;;  %s6694_s1 = inlined_call_operand.vmem [shape: f32[4,128,128], index: 1, kind: input, shape index: {}]   ;;  %s6695_s2 = inlined_call_operand.vmem [shape: f32[4,1,128], index: 2, kind: input, shape index: {}]   ;;  %s6696_s3 = inlined_call_operand.vmem [shape: f32[4,8,128], index: 3, kind: input, shape index: {}]   ;;  %s6697_s4 = inlined_call_operand.vmem [shape: f32[16,128], index: 4, kind: input, shape index: {}]   ;;  %s6698_s5 = inlined_call_operand.vmem [shape: f32[8,32], index: 5, kind: input, shape index: {}]   ;;  %s6699_s6 = inlined_call_operand.vmem [shape: f32[1,32], index: 6, kind: input, shape index: {}]   ;;  %s6700_s7 = inlined_call_operand.hbm [shape: f32[6,32,32], index: 7, kind: input, shape index: {}]   ;;  %s6701_s8 = inlined_call_operand.vmem [shape: f32[2,1,32], index: 8, kind: input, shape index: {}]   ;;  %s6702_s9 = inlined_call_operand.vmem [shape: f32[2,1,32], index: 9, kind: input, shape index: {}]   ;;  %s6703_s10 = inlined_call_operand.vmem [shape: f32[32,16], index: 10, kind: input, shape index: {}]   ;;  %s6704_s11 = inlined_call_operand.vmem [shape: f32[1,16], index: 11, kind: input, shape index: {}]   ;;  %s6705_s12 = inlined_call_operand.vmem [shape: f32[16,8], index: 12, kind: input, shape index: {}]   ;;  %s6706_s13 = inlined_call_operand.vmem [shape: f32[1,8], index: 13, kind: input, shape index: {}]   ;;  %s6707_s14 = inlined_call_operand.vmem [shape: f32[8,128], index: 14, kind: input, shape index: {}]   ;;  %s6708_s15 = inlined_call_operand.vmem [shape: f32[1,128], index: 15, kind: input, shape index: {}]   ;;  %s6709_s16 = inlined_call_operand.vmem [shape: f32[8], index: 16, kind: input, shape index: {}]   ;;  %s6710_s17 = inlined_call_operand.vmem [shape: f32[4], index: 17, kind: input, shape index: {}]   ;;  %s6711_s18 = inlined_call_operand.vmem [shape: f32[12], index: 18, kind: input, shape index: {}]   ;;  %s6712_s19 = inlined_call_operand.vmem [shape: f32[12], index: 19, kind: input, shape index: {}]   ;;  %s6713_s20 = inlined_call_operand.vmem [shape: f32[6], index: 20, kind: input, shape index: {}]   ;;  %s6714_s21 = inlined_call_operand.hbm [shape: f32[4,16,128], index: 21, kind: output, shape index: {}]  }
   0x1   :  { %6753 = sst [smem:[#allocation41_spill]] %s6693_s0 }
   0x2   :  { %6754 = sst [smem:[#allocation42_spill]] %s6694_s1 }
   0x3   :  { %6755 = sst [smem:[#allocation43_spill]] %s6695_s2 }
   0x4   :  { %6756 = sst [smem:[#allocation44_spill]] %s6696_s3 }
   0x5   :  { %6757 = sst [smem:[#allocation45_spill]] %s6697_s4 }
   0x6   :  { %6758 = sst [smem:[#allocation46_spill]] %s6698_s5 }
   0x7   :  { %6759 = sst [smem:[#allocation47_spill]] %s6700_s7 }
   0x8   :  { %6760 = sst [smem:[#allocation48_spill]] %s6709_s16 }
   0x9   :  { %6761 = sst [smem:[#allocation49_spill]] %s6710_s17 }
   0xa   :  { %6762 = sst [smem:[#allocation50_spill]] %s6711_s18 }
   0xb   :  { %6763 = sst [smem:[#allocation51_spill]] %s6712_s19 }
   0xc   :  { %6764 = sst [smem:[#allocation52_spill]] %s6713_s20 }
   0xd   :  { %26 = vsyncpa [#allocation3], 0 }
   0xe   :  { %27 = vsyncpa [#allocation5], 0 }
   0xf   :  { %28 = vsyncpa [#allocation8], 0 }
  0x10   :  { %29 = vsyncpa [#allocation11], 0 }
  0x11   :  { %30 = vsyncpa [#allocation4], 0 }
  0x12   :  { %32 = vsyncpa [#allocation4 + $0x1], 0  ;;  %s5477_s2 = smov 0   ;;  %s5479_s25 = smov 0  }
  0x13   :  { %s5481_s26 = smov 0   ;;  %s5483_s27 = smov 0  }
  0x14 LB: > { %6765 = sst [smem:[#allocation19_spill]] %s5350_s26  ;;  %s5498_s3 = sadd.s32 4294967295, %s5354_s27   ;;  %s5354_s27 = sphi %s5483_s27, %s6835_s27   ;;  %s5350_s26 = sphi %s5481_s26, %s6837_s26   ;;  %s5346_s25 = sphi %s5479_s25, %s6839_s25   ;;  %s5342_s2 = sphi %s5477_s2, %s6838_s2  }
  0x15   : > { %s3869_s28 = sadd.s32 4294967294, %s5354_s27   ;;  %s5502_s29 = sadd.s32 1, %s5354_s27  }
  0x16   : > { %6766 = sst [smem:[#allocation20_spill]] %s5502_s29  ;;  %s506_s0 = sadd.s32 1, %s5350_s26 }
  0x17   : > { %s503_s4 = ssub.s32 %s5354_s27, %s5502_s29  ;;  %p516_p0 = scmp.ne.s32.totalorder %s5350_s26, %s5346_s25 }
  0x18   : > { %p504_p1 = scmp.eq.s32.totalorder %s503_s4, 0  ;;  %p517_p2 = scmp.eq.s32.totalorder %s5498_s3, 3 }
  0x19   : > { %p522_p3 = scmp.ne.s32.totalorder %s5346_s25, %s5342_s2  ;;  %p523_p4 = scmp.eq.s32.totalorder %s3869_s28, 3 }
  0x1a   : > { %s5513_s30 = scalar_select %p504_p1, %s5350_s26, %s506_s0  }
  0x1b   : > { %p5515_p5 = por %p517_p2, %p516_p0  ;;  %p5519_p6 = por %p523_p4, %p522_p3 }
  0x1c   : > { %6767 = sst [smem:[#allocation21_spill]] %s5513_s30  ;;  %p3870_p7 = scmp.ge.s32.totalorder %s5354_s27, 1 }
  0x1d   : > { %s6768_s5 = scalar_select %p5515_p5, 1, 0 }
  0x1e   : > { %s6769_s22 = scalar_select %p5519_p6, 1, 0 }
  0x1f   : > { %p530_p8 = scmp.lt.s32.totalorder %s5354_s27, 5  ;;  %p6720_p9 = scmp.eq.s32.totalorder %s5498_s3, 0 }
  0x20   : > { %6770 = sst [smem:[#allocation22_spill]] %s6769_s22  ;;  %s5356_s29 = smov [#allocation2]  }
  0x21   : > { %p5526_p10 = pnand %p3870_p7, %p530_p8  ;;  %s6772_s17 = sld [smem:[#allocation49_spill]] }
  0x22   : > { %s6773_s19 = sld [smem:[#allocation51_spill]]  ;;  %s551_s22 = sshll.u32 %s5356_s29, 4  ;;  %s5544_s22 = int_to_ptr.vmem [resolvable:$true] %s551_s22 }
  0x23   : > { %s6771_s23 = scalar_select %p5526_p10, 1, 0 }
  0x24   : > { %p5063_p11 = pneg %p5526_p10 }
  0x26   : > { %p5540_p12 = pnand %p6720_p9, %p5063_p11 }
  0x27   : > { %s600_s28 = sshll.u32 %s6772_s17, 4  ;;  %s601_s28 = int_to_ptr.vmem [resolvable:$true] %s600_s28 }
  0x28   : > { %s622_s30 = sshll.u32 %s6773_s19, 4  ;;  %s5177_s1 = scalar_lea.vmem %s601_s28, 16  ;;  %s623_s30 = int_to_ptr.vmem [resolvable:$true] %s622_s30 }
  0x29   : > { %p5178_p13 = scmp.ne.s32.totalorder %s601_s28, %s5177_s1  ;;  %p5548_p0 = pneg %p5540_p12 }
  0x2a   : > { %p5185_p3 = scmp.lt.s32.totalorder %s601_s28, %s601_s28  ;;  %p5186_p4 = scmp.lt.s32.totalorder %s5177_s1, %s5177_s1 }
  0x2b   : > { %p5180_p1 = pnand %p5548_p0, %p5178_p13 }
  0x2c   : > { %p5187_p7 = por %p5186_p4, %p5185_p3 }
  0x2d   : > { %p5181_p2 = pneg %p5180_p1 }
  0x2f   : > { %p5188_p8 = pnand %p5187_p7, %p5181_p2 }
  0x31   : > { %5191 = shalt.err (!%p5188_p8)
}
  0x32   : > { %s5357_s0 = smov [#allocation7]   ;;  %s5192_s29 = scalar_lea.vmem %s623_s30, 16 }
  0x33   : > { %5072 = dma.vmem_to_smem (!%p5540_p12), %s601_s28, 16, %s5357_s0, [#allocation8]  }
  0x34   : > { %p5193_p11 = scmp.ne.s32.totalorder %s623_s30, %s5192_s29  ;;  %p5200_p5 = scmp.lt.s32.totalorder %s623_s30, %s623_s30 }
  0x35   : > { %p5201_p10 = scmp.lt.s32.totalorder %s5192_s29, %s5192_s29 }
  0x36   : > { %p5195_p9 = pnand %p5193_p11, %p5548_p0 }
  0x37   : > { %p5202_p13 = por %p5201_p10, %p5200_p5 }
  0x38   : > { %p5196_p6 = pneg %p5195_p9 }
  0x3a   : > { %p5203_p1 = pnand %p5202_p13, %p5196_p6 }
  0x3c   : > { %5206 = shalt.err (!%p5203_p1)
}
  0x3d   : > { %s5358_s4 = smov [#allocation10]   ;;  %s6776_s16 = sld [smem:[#allocation48_spill]] }
  0x3e   : > { %5078 = dma.vmem_to_smem (!%p5540_p12), %s623_s30, 16, %s5358_s4, [#allocation11]  }
  0x3f   : > { %s5218_s17 = scalar_lea.vmem %s5544_s22, 3072  ;;  %p5226_p5 = scmp.lt.s32.totalorder %s5544_s22, %s5544_s22 }
  0x40   : > { %p5219_p2 = scmp.ne.s32.totalorder %s5544_s22, %s5218_s17  ;;  %p5227_p6 = scmp.lt.s32.totalorder %s5218_s17, %s5218_s17 }
  0x42   : > { %p5221_p9 = pnand %p5219_p2, %p5548_p0  ;;  %p5228_p10 = por %p5227_p6, %p5226_p5 }
  0x43   : > { %s589_s0 = sshll.u32 %s6776_s16, 4  ;;  %s590_s0 = int_to_ptr.vmem [resolvable:$true] %s589_s0 }
  0x44   : > { %p5222_p3 = pneg %p5221_p9 }
  0x46   : > { %p5229_p4 = pnand %p5228_p10, %p5222_p3 }
  0x48   : > { %5232 = shalt.err (!%p5229_p4)
}
  0x49   : > { %s5359_s29 = smov 128   ;;  %s5360_s30 = smov 8  }
  0x4a   : > { %s6777_s7 = sld [smem:[#allocation47_spill]]  ;;  %s5233_s28 = scalar_lea.vmem %s590_s0, 16 }
  0x4b   : > { %p5234_p7 = scmp.ne.s32.totalorder %s590_s0, %s5233_s28  ;;  %p5241_p13 = scmp.lt.s32.totalorder %s590_s0, %s590_s0 }
  0x4c   : > { %p5242_p1 = scmp.lt.s32.totalorder %s5233_s28, %s5233_s28 }
  0x4d   : > { %p5236_p8 = pnand %p5234_p7, %p5548_p0 }
  0x4e   : > { %p5243_p2 = por %p5242_p1, %p5241_p13 }
  0x4f   : > { %p5237_p11 = pneg %p5236_p8 }
  0x50   : > { %5066 = dma.hbm_to_vmem [thread:$0]  (!%p5540_p12), %s6777_s7, 3072, %s5544_s22, [#allocation3], %s5359_s29, %s5359_s29, %s5360_s30  }
  0x51   : > { %p5244_p9 = pnand %p5243_p2, %p5237_p11 }
  0x53   : > { %5247 = shalt.err (!%p5244_p9)
}
  0x54   : > { %s5361_s17 = smov [#allocation6]   ;;  %s6778_s18 = sld [smem:[#allocation50_spill]] }
  0x55   : > { %5069 = dma.vmem_to_smem (!%p5540_p12), %s590_s0, 16, %s5361_s17, [#allocation5]  }
  0x56   : > { %s6779_s20 = sld [smem:[#allocation52_spill]] }
  0x5a   : > { %s611_s22 = sshll.u32 %s6778_s18, 4  ;;  %s612_s22 = int_to_ptr.vmem [resolvable:$true] %s611_s22 }
  0x5b   : > { %s5248_s1 = scalar_lea.vmem %s612_s22, 16  ;;  %p5256_p10 = scmp.lt.s32.totalorder %s612_s22, %s612_s22 }
  0x5c   : > { %s633_s4 = sshll.u32 %s6779_s20, 4  ;;  %p5249_p3 = scmp.ne.s32.totalorder %s612_s22, %s5248_s1  ;;  %s634_s4 = int_to_ptr.vmem [resolvable:$true] %s633_s4 }
  0x5d   : > { %p5257_p4 = scmp.lt.s32.totalorder %s5248_s1, %s5248_s1 }
  0x5e   : > { %p5251_p5 = pnand %p5249_p3, %p5548_p0 }
  0x5f   : > { %p5258_p7 = por %p5257_p4, %p5256_p10 }
  0x60   : > { %p5252_p6 = pneg %p5251_p5 }
  0x62   : > { %p5259_p8 = pnand %p5258_p7, %p5252_p6 }
  0x64   : > { %5262 = shalt.err (!%p5259_p8)
}
  0x65   : > { %s5362_s0 = smov [#allocation9]   ;;  %s5263_s16 = scalar_lea.vmem %s634_s4, 16 }
  0x66   : > { %5075 = dma.vmem_to_smem (!%p5540_p12), %s612_s22, 16, %s5362_s0, [#allocation8]  }
  0x67   : > { %p5264_p11 = scmp.ne.s32.totalorder %s634_s4, %s5263_s16  ;;  %p5271_p2 = scmp.lt.s32.totalorder %s634_s4, %s634_s4 }
  0x68   : > { %p5272_p9 = scmp.lt.s32.totalorder %s5263_s16, %s5263_s16 }
  0x69   : > { %p5266_p13 = pnand %p5264_p11, %p5548_p0 }
  0x6a   : > { %p5273_p3 = por %p5272_p9, %p5271_p2 }
  0x6b   : > { %p5267_p1 = pneg %p5266_p13 }
  0x6d   : > { %p5274_p5 = pnand %p5273_p3, %p5267_p1 }
  0x6f   : > { %5277 = shalt.err (!%p5274_p5)
}
  0x70   : > { %s5363_s19 = smov [#allocation12]   ;;  %p6780_p6 = scmp.ne.s32.totalorder %s6771_s23, 0 }
  0x71   : > { %5081 = dma.vmem_to_smem (!%p5540_p12), %s634_s4, 16, %s5363_s19, [#allocation11]  }
  0x72   : > { %675 = sbr.rel (%p6780_p6) target bundleno = 2701 (0xa8d), region = 104 }
  0x77   : > { %p6781_p10 = scmp.eq.s32.totalorder %s5498_s3, 0 }
  0x79   : > { %5321 = dma.done.wait (%p6781_p10), [#allocation3], 3072   ;;  %p6782_p4 = pmov %p6781_p10 }
  0x7b   : > { %5323 = vsyncadd (%p6782_p4), [#allocation3], 4294964224  ;;  %p6783_p0 = pmov %p6782_p4 }
  0x7d   : > { %5325 = dma.done.wait (%p6783_p0), [#allocation5], 16   ;;  %p6784_p7 = pmov %p6783_p0 }
  0x7e   : > { %p6785_p8 = pmov %p6783_p0 }
  0x7f   : > { %5327 = vsyncadd (%p6784_p7), [#allocation5], 4294967280 }
  0x80   : > { %5329 = dma.done.wait (%p6785_p8), [#allocation8], 32   ;;  %p6786_p12 = pmov %p6783_p0 }
  0x81   : > { %p6787_p11 = pmov %p6783_p0 }
  0x82   : > { %5331 = vsyncadd (%p6786_p12), [#allocation8], 4294967264 }
  0x83   : > { %5333 = dma.done.wait (%p6787_p11), [#allocation11], 32   ;;  %p6788_p13 = pmov %p6783_p0 }
  0x85   : > { %5335 = vsyncadd (%p6788_p13), [#allocation11], 4294967264 }
  0x86   : > { %701 = sfence }
  0x87   : > { %s6789_s24 = sld [smem:[#allocation46_spill]]  ;;  %p768_p1 = scmp.lt.s32.totalorder %s5498_s3, 3  ;;  %v1323_v1 = vld [vmem:[#allocation2 + $0x38] sm:$0xff]  ;;  %vm809_vm0 = vcmask 64512   ;;  %v1322_v10 = vld [vmem:[#allocation2 + $0x30] sm:$0xff]  ;;  %v1321_v14 = vld [vmem:[#allocation2 + $0x28] sm:$0xff] }
  0x88   : > { %s1027_s28 = sld [smem:[#allocation6]]  ;;  %v1088_v2 = vld [vmem:[#allocation2 + $0x18] sm:$0xff]  ;;  %v1320_v18 = vld [vmem:[#allocation2 + $0x20] sm:$0xff]  ;;  %vm1089_vm1 = vcmask 261120   ;;  %vm3523_vm2 = vcmask 130048   ;;  %p6832_p9 = scmp.ne.s32.totalorder %s6768_s5, 0 }
  0x89   : > { %s3909_s17 = sld [smem:[#allocation6 + $0x2]]  ;;  %4451 = vmatprep.subr.mxu1 %v1088_v2 }
  0x8a   : > { %s5616_s22 = scalar_select %p768_p1, %s5498_s3, 3  ;;  %4452 = vmatpush3.msra.mxu1 %v1088_v2 }
  0x8b   : > { %s5618_s29 = sld [smem:[#allocation7]] }
  0x8c   : > { %s6723_s30 = sshll.u32 %s5616_s22, 7  ;;  %s6790_s0 = sld [smem:[#allocation43_spill]] }
  0x8d   : > { %v801_v0 = vld [vmem:[%s6789_s24] sm:$0xff]  ;;  %s6791_s23 = sld [smem:[#allocation41_spill]]  ;;  %s3890_s7 = sshll.u32 %s5616_s22, 3 }
  0x8e   : > { %4425 = vmatprep.subr.mxu0 %v801_v0  ;;  %v1030_v5 = vstv %s1027_s28  ;;  %s3910_s18 = sld [smem:[#allocation6 + $0x1]] }
  0x8f   : > { %4426 = vmatpush3.msra.mxu0 %v801_v0  ;;  %v1032_v9 = vstv %s3909_s17  ;;  %s5645_s26 = sld [smem:[#allocation7 + $0x1]] }
  0x90   : > { %4483 = vmatprep.subr.mxu0 %v1323_v1  ;;  %s3954_s28 = sld [smem:[#allocation10 + $0x4]] }
  0x91   : > { %v1035_v15 = vstv %s5618_s29  ;;  %s5669_s17 = sld [smem:[#allocation9 + $0x5]] }
  0x92   : > { %s780_s16 = scalar_lea.vmem %s6790_s0, %s5616_s22  ;;  %s6792_s0 = sld [smem:[#allocation44_spill]] }
  0x93   : > { %s5630_s24 = scalar_lea.vmem %s6791_s23, %s6723_s30  ;;  %v5632_v3 = vld [vmem:[%s780_s16] ss:$0 sm:$0xff]  ;;  %s3911_s16 = sld [smem:[#allocation6 + $0x3]] }
  0x94   : > { %v785_v4 = vld [vmem:[%s5630_s24] sm:$0xff]  ;;  %v786_v6 = vld [vmem:[%s5630_s24 + $0x8] sm:$0xff]  ;;  %v787_v7 = vld [vmem:[%s5630_s24 + $0x10] sm:$0xff]  ;;  %v1031_v8 = vmul.f32 %v5632_v3, %v1030_v5  ;;  %v1041_v19 = vstv %s3910_s18  ;;  %s3953_s18 = sld [smem:[#allocation9 + $0x4]] }
  0x95   : > { %4427 = vmatprep.mubr.msk.f32.mxu0 %vm809_vm0, %v785_v4  ;;  %v788_v13 = vld [vmem:[%s5630_s24 + $0x18] sm:$0xff]  ;;  %v789_v16 = vld [vmem:[%s5630_s24 + $0x20] sm:$0xff]  ;;  %v1042_v21 = vmul.f32 %v5632_v3, %v1041_v19  ;;  %v790_v23 = vld [vmem:[%s5630_s24 + $0x28] sm:$0xff]  ;;  %v1046_v26 = vstv %s5645_s26  ;;  %s5672_s29 = sld [smem:[#allocation10 + $0x5]] }
  0x96   : > { %4428 = vmatmul.mubr.msk.f32.vlgmr.msra.gmra.mxu0 %vm809_vm0, %v786_v6  ;;  %v791_v25 = vld [vmem:[%s5630_s24 + $0x30] sm:$0xff]  ;;  %v792_v28 = vld [vmem:[%s5630_s24 + $0x38] sm:$0xff]  ;;  %v793_v30 = vld [vmem:[%s5630_s24 + $0x40] sm:$0xff]  ;;  %s3975_s23 = sld [smem:[#allocation6 + $0x4]]  ;;  %v1764_v37 = vstv %s3954_s28 }
  0x97   : > { %4430 = vmatprep.mubr.msk.f32.mxu0 %vm809_vm0, %v787_v7  ;;  %4484 = vmatpush3.msra.mxu0 %v1323_v1  ;;  %v794_v31 = vld [vmem:[%s5630_s24 + $0x48] sm:$0xff]  ;;  %v795_v32 = vld [vmem:[%s5630_s24 + $0x50] sm:$0xff]  ;;  %s3976_s4 = sld [smem:[#allocation6 + $0x6]]  ;;  %v796_v33 = vld [vmem:[%s5630_s24 + $0x58] sm:$0xff]  ;;  %v1770_v43 = vstv %s5669_s17 }
  0x98   : > { %s784_s19 = scalar_lea.vmem %s6792_s0, %s3890_s7  ;;  %4485 = vmatprep.subr.mxu0 %v1322_v10  ;;  %s5664_s7 = sld [smem:[#allocation12 + $0x2]]  ;;  %v797_v35 = vld [vmem:[%s5630_s24 + $0x60] sm:$0xff]  ;;  %v798_v39 = vld [vmem:[%s5630_s24 + $0x68] sm:$0xff]  ;;  %v799_v41 = vld [vmem:[%s5630_s24 + $0x70] sm:$0xff] }
  0x99   : > { %v5643_v11 = vld [vmem:[%s784_s19] sm:$0xff]  ;;  %4486 = vmatpush3.msra.mxu0 %v1322_v10  ;;  %v1043_v22 = vstv %s3911_s16  ;;  %s5677_s1 = sld [smem:[#allocation7 + $0x2]]  ;;  %v800_v51 = vld [vmem:[%s5630_s24 + $0x78] sm:$0xff] }
  0x9a   : > { %v1033_v12 = vmul.f32 %v1032_v9, %v5643_v11  ;;  %4431 = vmatmul.mubr.msk.f32.gmra.mxu0 %vm809_vm0, %v788_v13  ;;  %4487 = vmatprep.subr.mxu0 %v1321_v14  ;;  %v1044_v24 = vmul.f32 %v1043_v22, %v5643_v11  ;;  %v1761_v34 = vstv %s3953_s18  ;;  %s3978_s0 = sld [smem:[#allocation6 + $0x5]] }
  0x9b   : > { %4433 = vmatprep.mubr.msk.f32.mxu0 %vm809_vm0, %v789_v16  ;;  %4488 = vmatpush3.msra.mxu0 %v1321_v14  ;;  %s3979_s19 = sld [smem:[#allocation6 + $0x7]]  ;;  %v1773_v49 = vstv %s5672_s29 }
  0x9c   : > { %v1034_v17 = vadd.f32 %v1033_v12, %v1031_v8  ;;  %4489 = vmatprep.subr.mxu0 %v1320_v18  ;;  %v1045_v27 = vadd.f32 %v1044_v24, %v1042_v21  ;;  %v2187_v40 = vstv %s3975_s23  ;;  %s3980_s16 = sld [smem:[#allocation7 + $0x3]] }
  0x9d   : > { %4490 = vmatpush3.msra.mxu0 %v1320_v18  ;;  %v2188_v44 = vmul.f32 %v5632_v3, %v2187_v40  ;;  %v2189_v45 = vstv %s3976_s4  ;;  %s5704_s26 = sld [smem:[#allocation12 + $0x3]] }
  0x9e   : > { %v1036_v20 = vadd.f32 %v1035_v15, %v1034_v17  ;;  %4434 = vmatmul.mubr.msk.f32.gmra.mxu0 %vm809_vm0, %v790_v23  ;;  %v1047_v29 = vadd.f32 %v1046_v26, %v1045_v27  ;;  %v1767_v48 = vstv %s5664_s7  ;;  %v2190_v50 = vmul.f32 %v2189_v45, %v5643_v11  ;;  %s3982_s24 = sld [smem:[#allocation9 + $0x6]]  ;;  %v1087_v45 = vld [vmem:[#allocation2 + $0x10] sm:$0xff] }
  0x9f   : > { %4436 = vmatprep.mubr.msk.f32.mxu0 %vm809_vm0, %v791_v25  ;;  %v2192_v53 = vstv %s5677_s1  ;;  %s3983_s7 = sld [smem:[#allocation10 + $0x6]]  ;;  %4453 = vmatprep.subr.mxu1 %v1087_v45 }
  0xa0   : > { %5141 = vtanh.f32 %v1036_v20  ;;  %v2198_v54 = vstv %s3978_s0  ;;  %v2191_v55 = vadd.f32 %v2190_v50, %v2188_v44  ;;  %s4003_s18 = sld [smem:[#allocation9 + $0x8]]  ;;  %4454 = vmatpush3.msra.mxu1 %v1087_v45  ;;  %v3891_v50 = vld [vmem:[%s6699_s6] ss:$0 sm:$0xff] }
  0xa1   : > { %5143 = vtanh.f32 %v1047_v29  ;;  %v2199_v58 = vmul.f32 %v5632_v3, %v2198_v54  ;;  %v2200_v60 = vstv %s3979_s19  ;;  %s4024_s28 = sld [smem:[#allocation9 + $0xa]] }
  0xa2   : > { %4437 = vmatmul.mubr.msk.f32.gmra.mxu0 %vm809_vm0, %v792_v28  ;;  %v2193_v59 = vadd.f32 %v2192_v53, %v2191_v55  ;;  %v2201_v62 = vmul.f32 %v2200_v60, %v5643_v11  ;;  %v2203_v1 = vstv %s3980_s16  ;;  %s4004_s17 = sld [smem:[#allocation10 + $0x8]] }
  0xa3   : > { %4439 = vmatprep.mubr.msk.f32.mxu0 %vm809_vm0, %v793_v30  ;;  %s4025_s29 = sld [smem:[#allocation10 + $0xa]]  ;;  %v2214_v21 = vstv %s5704_s26 }
  0xa4   : > { %5145 = vtanh.f32 %v2193_v59  ;;  %v2202_v0 = vadd.f32 %v2201_v62, %v2199_v58  ;;  %s5708_s23 = sld [smem:[#allocation9 + $0x7]]  ;;  %v2208_v3 = vstv %s3982_s24 }
  0xa5   : > { %s5710_s4 = sld [smem:[#allocation10 + $0x7]]  ;;  %v2211_v7 = vstv %s3983_s7 }
  0xa6   : > { %4440 = vmatmul.mubr.msk.f32.gmra.mxu0 %vm809_vm0, %v794_v31  ;;  %v2204_v2 = vadd.f32 %v2203_v1, %v2202_v0  ;;  %s5712_s1 = sld [smem:[#allocation12 + $0x4]]  ;;  %v2442_v4 = vstv %s4003_s18 }
  0xa7   : > { %4442 = vmatprep.mubr.msk.f32.mxu0 %vm809_vm0, %v795_v32  ;;  %s5714_s0 = sld [smem:[#allocation9 + $0x9]]  ;;  %v2918_v5 = vstv %s4024_s28 }
  0xa8   : > { %5147 = vtanh.f32 %v2204_v2  ;;  %s5716_s19 = sld [smem:[#allocation10 + $0x9]]  ;;  %v2445_v8 = vstv %s4004_s17 }
  0xa9   : > { %s4026_s16 = sld [smem:[#allocation9 + $0xb]]  ;;  %v2921_v9 = vstv %s4025_s29 }
  0xaa   : > { %4443 = vmatmul.mubr.msk.f32.gmra.mxu0 %vm809_vm0, %v796_v33  ;;  %s5718_s30 = sld [smem:[#allocation12 + $0x5]]  ;;  %v2217_v16 = vstv %s5708_s23 }
  0xab   : > { %4445 = vmatprep.mubr.msk.f32.mxu0 %vm809_vm0, %v797_v35  ;;  %s4027_s20 = sld [smem:[#allocation10 + $0xb]]  ;;  %v2220_v25 = vstv %s5710_s4 }
  0xac   : > { %v2448_v22 = vstv %s5712_s1  ;;  %s1050_s26 = sld [smem:[#allocation9]] }
  0xad   : > { %v5680_v36 = vpop.eup %5141  ;;  %v2451_v19 = vstv %s5714_s0  ;;  %s3932_s24 = sld [smem:[#allocation9 + $0x2]]  ;;  %s6796_s0 = sshll.u32 %s5616_s22, 7 }
  0xae   : > { %v1762_v38 = vmul.f32 %v5680_v36, %v1761_v34  ;;  %4446 = vmatmul.mubr.msk.f32.gmra.mxu0 %vm809_vm0, %v798_v39  ;;  %v5690_v46 = vpop.eup %5143  ;;  %v2454_v26 = vstv %s5716_s19  ;;  %s1053_s7 = sld [smem:[#allocation10]]  ;;  %s765_s22 = sand.u32 1, %s5346_s25  }
  0xaf   : > { %4448 = vmatprep.mubr.msk.f32.mxu0 %vm809_vm0, %v799_v41  ;;  %v1771_v52 = vmul.f32 %v5690_v46, %v1770_v43  ;;  %v2927_v20 = vstv %s4026_s16  ;;  %s3913_s18 = sld [smem:[#allocation9 + $0x1]] }
  0xb0   : > { %v1765_v42 = vadd.f32 %v1764_v37, %v1762_v38  ;;  %v2924_v27 = vstv %s5718_s30  ;;  %s3933_s28 = sld [smem:[#allocation10 + $0x2]] }
  0xb1   : > { %v1774_v57 = vadd.f32 %v1773_v49, %v1771_v52  ;;  %v5146_v6 = vpop.eup %5145  ;;  %v2930_v28 = vstv %s4027_s20  ;;  %s3934_s17 = sld [smem:[#allocation9 + $0x3]] }
  0xb2   : > { %v1766_v47 = vmul.f32 %v5680_v36, %v1765_v42  ;;  %4449 = vmatmul.mubr.msk.f32.gmra.mxu0 %vm809_vm0, %v800_v51  ;;  %v2209_v10 = vmul.f32 %v5146_v6, %v2208_v3  ;;  %v2443_v11 = vmul.f32 %v5146_v6, %v2442_v4  ;;  %v2919_v12 = vmul.f32 %v5146_v6, %v2918_v5  ;;  %s3914_s29 = sld [smem:[#allocation10 + $0x1]] }
  0xb3   : > { %v1775_v61 = vmul.f32 %v5690_v46, %v1774_v57  ;;  %s3935_s23 = sld [smem:[#allocation10 + $0x3]] }
  0xb4   : > { %v1768_v56 = vadd.f32 %v1767_v48, %v1766_v47  ;;  %v2212_v13 = vadd.f32 %v2211_v7, %v2209_v10  ;;  %v2446_v14 = vadd.f32 %v2445_v8, %v2443_v11  ;;  %v2922_v15 = vadd.f32 %v2921_v9, %v2919_v12  ;;  %v1086_v47 = vld [vmem:[#allocation2 + $0x8] sm:$0xff]  ;;  %v1085_v48 = vld [vmem:[#allocation2] sm:$0xff]  ;;  %s1049_s4 = sld [smem:[#allocation12]] }
  0xb5   : > { %v5148_v24 = vpop.eup %5147  ;;  %4455 = vmatprep.subr.mxu1 %v1086_v47  ;;  %s3931_s1 = sld [smem:[#allocation12 + $0x1]] }
  0xb6   : > { %v5706_v63 = vadd.f32 %v1775_v61, %v1768_v56  ;;  %v2213_v17 = vmul.f32 %v5146_v6, %v2212_v13  ;;  %v2447_v18 = vmul.f32 %v5146_v6, %v2446_v14  ;;  %v2923_v23 = vmul.f32 %v5146_v6, %v2922_v15  ;;  %4456 = vmatpush3.msra.mxu1 %v1086_v47  ;;  %s6797_s20 = sld [smem:[#allocation42_spill]] }
  0xb7   : > { %v2218_v29 = vmul.f32 %v5148_v24, %v2217_v16  ;;  %v2452_v30 = vmul.f32 %v5148_v24, %v2451_v19  ;;  %v2928_v31 = vmul.f32 %v5148_v24, %v2927_v20  ;;  %4457 = vmatprep.subr.mxu1 %v1085_v48  ;;  %v1051_v19 = vstv %s1050_s26  ;;  %s3885_s26 = sshll.u32 %s765_s22, 4 }
  0xb8   : > { %v2215_v32 = vadd.f32 %v2214_v21, %v2213_v17  ;;  %v2449_v33 = vadd.f32 %v2448_v22, %v2447_v18  ;;  %v2925_v37 = vadd.f32 %v2924_v27, %v2923_v23  ;;  %4458 = vmatpush3.msra.mxu1 %v1085_v48  ;;  %v1285_v20 = vstv %s3932_s24 }
  0xb9   : > { %v2221_v34 = vadd.f32 %v2220_v25, %v2218_v29  ;;  %v2455_v35 = vadd.f32 %v2454_v26, %v2452_v30  ;;  %v2931_v38 = vadd.f32 %v2930_v28, %v2928_v31  ;;  %v1052_v21 = vmul.f32 %v5680_v36, %v1051_v19 }
  0xba   : > { %v1054_v22 = vstv %s1053_s7  ;;  %v1060_v23 = vstv %s3913_s18  ;;  %v1288_v25 = vstv %s3933_s28  ;;  %v1294_v26 = vstv %s3934_s17  ;;  %s6830_s17 = sld [smem:[#allocation45_spill]]  ;;  %s767_s18 = scalar_lea.vmem [#allocation13], %s3885_s26 }
  0xbb   : > { %v2222_v39 = vmul.f32 %v5148_v24, %v2221_v34  ;;  %v2456_v40 = vmul.f32 %v5148_v24, %v2455_v35  ;;  %v2932_v41 = vmul.f32 %v5148_v24, %v2931_v38  ;;  %v1286_v24 = vmul.f32 %v5680_v36, %v1285_v20  ;;  %s3712_s28 = sshll.u32 %s767_s18, 4  ;;  %s6646_s28 = int_to_ptr.vmem [resolvable:$true] %s3712_s28 }
  0xbc   : > { %v1055_v27 = vadd.f32 %v1054_v22, %v1052_v21  ;;  %v1061_v28 = vmul.f32 %v5690_v46, %v1060_v23  ;;  %v1063_v29 = vstv %s3914_s29  ;;  %v1295_v31 = vmul.f32 %v5690_v46, %v1294_v26  ;;  %s5847_s30 = scalar_lea.vmem %s6797_s20, %s6796_s0  ;;  %s4064_s29 = sshll.u32 %s5498_s3, 8 }
  0xbd   : > { %v5727_v42 = vadd.f32 %v2222_v39, %v2215_v32  ;;  %v5729_v43 = vadd.f32 %v2456_v40, %v2449_v33  ;;  %v5731_v44 = vadd.f32 %v2932_v41, %v2925_v37  ;;  %v1289_v30 = vadd.f32 %v1288_v25, %v1286_v24  ;;  %s6653_s0 = scalar_lea.sflag [#allocation4], %s765_s22  ;;  %s5278_s19 = scalar_lea.vmem %s6646_s28, 256 }
  0xbe   : > { %v1297_v32 = vstv %s3935_s23  ;;  %v1056_v33 = vmul.f32 %v5680_v36, %v1055_v27  ;;  %v1064_v34 = vadd.f32 %v1063_v29, %v1061_v28  ;;  %v1057_v35 = vstv %s1049_s4  ;;  %p5279_p2 = scmp.ne.s32.totalorder %s6646_s28, %s5278_s19  ;;  %s5364_s3 = smov [#allocation13]  }
  0xbf   : > { %6793 = vst [vmem:[#allocation23_spill] sm:$0xff] %v5727_v42  ;;  %6794 = vst [vmem:[#allocation24_spill] sm:$0xff] %v5729_v43  ;;  %v1290_v37 = vmul.f32 %v5680_v36, %v1289_v30  ;;  %v1298_v38 = vadd.f32 %v1297_v32, %v1295_v31  ;;  %v1291_v39 = vstv %s3931_s1  ;;  %s6651_s1 = scalar_lea.hbm %s6714_s21, %s4064_s29  ;;  %s5282_s16 = sshll.u32 %s5364_s3, 4  ;;  %s5283_s16 = int_to_ptr.vmem [resolvable:$false] %s5282_s16 }
  0xc0   : > { %6795 = vst [vmem:[#allocation25_spill] sm:$0xff] %v5731_v44  ;;  %v1058_v40 = vadd.f32 %v1057_v35, %v1056_v33  ;;  %v1065_v41 = vmul.f32 %v5690_v46, %v1064_v34  ;;  %p5280_p3 = pnand %p5279_p2, %p6832_p9  ;;  %s5284_s20 = scalar_lea.vmem %s5283_s16, 512 }
  0xc1   : > { %v1292_v45 = vadd.f32 %v1291_v39, %v1290_v37  ;;  %v1299_v47 = vmul.f32 %v5690_v46, %v1298_v38  ;;  %p5285_p6 = scmp.lt.s32.totalorder %s6646_s28, %s5283_s16  ;;  %p5286_p10 = scmp.lt.s32.totalorder %s5284_s20, %s5278_s19 }
  0xc2   : > { %v1066_v48 = vadd.f32 %v1065_v41, %v1058_v40  ;;  %v5895_v41 = vld [vmem:[%s5847_s30 + $0x8] sm:$0xff]  ;;  %p5281_p5 = pneg %p5280_p3 }
  0xc3   : > { %p5287_p4 = por %p5286_p10, %p5285_p6 }
  0xc5   : > { %p5288_p0 = pnand %p5287_p4, %p5281_p5 }
 0x156   : > { %v4429_v49 = vpop.f32.mrf.mxu0 }
 0x157   : > { %v5738_v53 = vadd.f32 %v4429_v49, %v3891_v50  ;;  %v1300_v49 = vadd.f32 %v1299_v47, %v1292_v45  ;;  %v5900_v45 = vld [vmem:[%s5847_s30 + $0x10] sm:$0xff] }
 0x158   : > { %v924_v51 = vpop.f32.mrf.mxu0 }
 0x159   : > { %v5736_v52 = vadd.f32 %v3891_v50, %v924_v51  ;;  %v1301_v51 = vmul.f32 1.442695, %v1300_v49 }
 0x15a   : > { %v4432_v54 = vpop.f32.mrf.mxu0 }
 0x15b   : > { %4459 = vmatprep.mubr.msk.f32.mxu1 %vm1089_vm1, %v5736_v52  ;;  %4491 = vmatprep.mubr.msk.f32.mxu0 %vm1089_vm1, %v5736_v52  ;;  %v5750_v57 = vadd.f32 %v4432_v54, %v3891_v50 }
 0x15c   : > { %v934_v55 = vpop.f32.mrf.mxu0  ;;  %4460 = vmatmul.mubr.msk.f32.vlgmr.msra.gmra.mxu1 %vm1089_vm1, %v5738_v53  ;;  %4492 = vmatmul.mubr.msk.f32.vlgmr.msra.gmra.mxu0 %vm1089_vm1, %v5738_v53 }
 0x15d   : > { %v5748_v56 = vadd.f32 %v3891_v50, %v934_v55  ;;  %v5852_v55 = vld [vmem:[%s5847_s30] sm:$0xff] }
 0x15e   : > { %v4435_v58 = vpop.f32.mrf.mxu0  ;;  %6798 = vst [vmem:[#allocation26_spill] sm:$0xff] %v5852_v55 }
 0x15f   : > { %4462 = vmatprep.mubr.msk.f32.mxu1 %vm1089_vm1, %v5748_v56  ;;  %4494 = vmatprep.mubr.msk.f32.mxu0 %vm1089_vm1, %v5748_v56  ;;  %v5762_v61 = vadd.f32 %v4435_v58, %v3891_v50 }
 0x160   : > { %v944_v59 = vpop.f32.mrf.mxu0  ;;  %4463 = vmatmul.mubr.msk.f32.gmra.mxu1 %vm1089_vm1, %v5750_v57  ;;  %4495 = vmatmul.mubr.msk.f32.gmra.mxu0 %vm1089_vm1, %v5750_v57 }
 0x161   : > { %v5760_v60 = vadd.f32 %v3891_v50, %v944_v59 }
 0x162   : > { %v4438_v62 = vpop.f32.mrf.mxu0 }
 0x163   : > { %4465 = vmatprep.mubr.msk.f32.mxu1 %vm1089_vm1, %v5760_v60  ;;  %4497 = vmatprep.mubr.msk.f32.mxu0 %vm1089_vm1, %v5760_v60  ;;  %v5774_v2 = vadd.f32 %v4438_v62, %v3891_v50 }
 0x164   : > { %v954_v0 = vpop.f32.mrf.mxu0  ;;  %4466 = vmatmul.mubr.msk.f32.gmra.mxu1 %vm1089_vm1, %v5762_v61  ;;  %4498 = vmatmul.mubr.msk.f32.gmra.mxu0 %vm1089_vm1, %v5762_v61 }
 0x165   : > { %v5772_v1 = vadd.f32 %v3891_v50, %v954_v0 }
 0x166   : > { %v4441_v3 = vpop.f32.mrf.mxu0 }
 0x167   : > { %4468 = vmatprep.mubr.msk.f32.mxu1 %vm1089_vm1, %v5772_v1  ;;  %4500 = vmatprep.mubr.msk.f32.mxu0 %vm1089_vm1, %v5772_v1  ;;  %v5786_v6 = vadd.f32 %v4441_v3, %v3891_v50 }
 0x168   : > { %v964_v4 = vpop.f32.mrf.mxu0  ;;  %4469 = vmatmul.mubr.msk.f32.gmra.mxu1 %vm1089_vm1, %v5774_v2  ;;  %4501 = vmatmul.mubr.msk.f32.gmra.mxu0 %vm1089_vm1, %v5774_v2 }
 0x169   : > { %v5784_v5 = vadd.f32 %v3891_v50, %v964_v4 }
 0x16a   : > { %v4444_v7 = vpop.f32.mrf.mxu0 }
 0x16b   : > { %4471 = vmatprep.mubr.msk.f32.mxu1 %vm1089_vm1, %v5784_v5  ;;  %4503 = vmatprep.mubr.msk.f32.mxu0 %vm1089_vm1, %v5784_v5  ;;  %v5798_v10 = vadd.f32 %v4444_v7, %v3891_v50 }
 0x16c   : > { %v974_v8 = vpop.f32.mrf.mxu0  ;;  %4472 = vmatmul.mubr.msk.f32.gmra.mxu1 %vm1089_vm1, %v5786_v6  ;;  %4504 = vmatmul.mubr.msk.f32.gmra.mxu0 %vm1089_vm1, %v5786_v6 }
 0x16d   : > { %v5796_v9 = vadd.f32 %v3891_v50, %v974_v8 }
 0x16e   : > { %v4447_v11 = vpop.f32.mrf.mxu0 }
 0x16f   : > { %4474 = vmatprep.mubr.msk.f32.mxu1 %vm1089_vm1, %v5796_v9  ;;  %4506 = vmatprep.mubr.msk.f32.mxu0 %vm1089_vm1, %v5796_v9  ;;  %v5810_v14 = vadd.f32 %v4447_v11, %v3891_v50 }
 0x170   : > { %v984_v12 = vpop.f32.mrf.mxu0  ;;  %4475 = vmatmul.mubr.msk.f32.gmra.mxu1 %vm1089_vm1, %v5798_v10  ;;  %4507 = vmatmul.mubr.msk.f32.gmra.mxu0 %vm1089_vm1, %v5798_v10 }
 0x171   : > { %v5808_v13 = vadd.f32 %v3891_v50, %v984_v12 }
 0x172   : > { %v4450_v15 = vpop.f32.mrf.mxu0 }
 0x173   : > { %4477 = vmatprep.mubr.msk.f32.mxu1 %vm1089_vm1, %v5808_v13  ;;  %4509 = vmatprep.mubr.msk.f32.mxu0 %vm1089_vm1, %v5808_v13  ;;  %v5822_v18 = vadd.f32 %v4450_v15, %v3891_v50 }
 0x174   : > { %v994_v16 = vpop.f32.mrf.mxu0  ;;  %4478 = vmatmul.mubr.msk.f32.gmra.mxu1 %vm1089_vm1, %v5810_v14  ;;  %4510 = vmatmul.mubr.msk.f32.gmra.mxu0 %vm1089_vm1, %v5810_v14 }
 0x175   : > { %v5820_v17 = vadd.f32 %v3891_v50, %v994_v16  ;;  %v1067_v50 = vmul.f32 1.442695, %v1066_v48 }
 0x177   : > { %4480 = vmatprep.mubr.msk.f32.mxu1 %vm1089_vm1, %v5820_v17  ;;  %4512 = vmatprep.mubr.msk.f32.mxu0 %vm1089_vm1, %v5820_v17  ;;  %5149 = vpow2.f32 %v1067_v50  ;;  %v5915_v50 = vld [vmem:[%s5847_s30 + $0x18] sm:$0xff] }
 0x178   : > { %4481 = vmatmul.mubr.msk.f32.gmra.mxu1 %vm1089_vm1, %v5822_v18  ;;  %4513 = vmatmul.mubr.msk.f32.gmra.mxu0 %vm1089_vm1, %v5822_v18  ;;  %5151 = vpow2.f32 %v1301_v51  ;;  %6799 = vst [vmem:[#allocation27_spill] sm:$0xff] %v5915_v50  ;;  %v1799_v51 = vld [vmem:[#allocation2 + $0x58] sm:$0xff] }
 0x184   : > { %v5840_v54 = vpop.eup %5149 }
 0x185   : > { %v5849_v36 = vpop.eup %5151  ;;  %v1069_v58 = vmul.f32 %v5840_v54, %v5852_v55  ;;  %v1070_v48 = vmul.f32 %v5840_v54, %v5895_v41 }
 0x186   : > { %v1303_v46 = vmul.f32 %v5849_v36, %v5852_v55  ;;  %v1304_v47 = vmul.f32 %v5849_v36, %v5895_v41  ;;  %v1305_v49 = vmul.f32 %v5849_v36, %v5900_v45 }
 0x187   : > { %4603 = vmatprep.mubr.f32.mxu0 %v1069_v58  ;;  %v5922_v58 = vld [vmem:[%s5847_s30 + $0x20] sm:$0xff] }
 0x188   : > { %4547 = vmatprep.mubr.f32.mxu1 %v1303_v46  ;;  %v1071_v46 = vmul.f32 %v5840_v54, %v5900_v45  ;;  %6800 = vst [vmem:[#allocation28_spill] sm:$0xff] %v5922_v58 }
 0x21c   : > { %v5858_v59 = vpop.f32.mrf.mxu1  ;;  %v5860_v62 = vpop.f32.mrf.mxu0 }
 0x21e   : > { %v5862_v0 = vpop.f32.mrf.mxu1  ;;  %v5864_v3 = vpop.f32.mrf.mxu0 }
 0x220   : > { %v5866_v4 = vpop.f32.mrf.mxu1  ;;  %v5868_v7 = vpop.f32.mrf.mxu0 }
 0x222   : > { %v5870_v8 = vpop.f32.mrf.mxu1  ;;  %v5872_v11 = vpop.f32.mrf.mxu0 }
 0x224   : > { %v5874_v12 = vpop.f32.mrf.mxu1  ;;  %v5876_v15 = vpop.f32.mrf.mxu0 }
 0x226   : > { %v5878_v16 = vpop.f32.mrf.mxu1  ;;  %v5880_v19 = vpop.f32.mrf.mxu0 }
 0x228   : > { %v4470_v20 = vpop.f32.mrf.mxu1  ;;  %v4502_v21 = vpop.f32.mrf.mxu0 }
 0x22a   : > { %v1234_v22 = vpop.f32.mrf.mxu1  ;;  %v1420_v23 = vpop.f32.mrf.mxu0 }
 0x22c   : > { %v4473_v24 = vpop.f32.mrf.mxu1  ;;  %v4505_v25 = vpop.f32.mrf.mxu0 }
 0x22e   : > { %v1244_v26 = vpop.f32.mrf.mxu1  ;;  %v1430_v27 = vpop.f32.mrf.mxu0 }
 0x230   : > { %v4476_v28 = vpop.f32.mrf.mxu1  ;;  %v4508_v29 = vpop.f32.mrf.mxu0 }
 0x232   : > { %v1254_v30 = vpop.f32.mrf.mxu1  ;;  %v1440_v31 = vpop.f32.mrf.mxu0 }
 0x234   : > { %v4479_v32 = vpop.f32.mrf.mxu1  ;;  %v4511_v33 = vpop.f32.mrf.mxu0 }
 0x236   : > { %v1264_v34 = vpop.f32.mrf.mxu1  ;;  %v1450_v35 = vpop.f32.mrf.mxu0 }
 0x238   : > { %v4482_v37 = vpop.f32.mrf.mxu1  ;;  %v4514_v38 = vpop.f32.mrf.mxu0 }
 0x239   : > { %4515 = vmatprep.subr.mxu1 %v4514_v38  ;;  %4571 = vmatprep.subr.mxu0 %v4482_v37 }
 0x23a   : > { %v1274_v39 = vpop.f32.mrf.mxu1  ;;  %v1460_v40 = vpop.f32.mrf.mxu0  ;;  %4516 = vmatpush3.msra.mxu1 %v4514_v38  ;;  %4572 = vmatpush3.msra.mxu0 %v4482_v37 }
 0x23b   : > { %4517 = vmatprep.subr.mxu1 %v1460_v40  ;;  %4573 = vmatprep.subr.mxu0 %v1274_v39 }
 0x23c   : > { %4518 = vmatpush3.msra.mxu1 %v1460_v40  ;;  %4574 = vmatpush3.msra.mxu0 %v1274_v39  ;;  %v5991_v40 = vld [vmem:[%s5847_s30 + $0x68] sm:$0xff] }
 0x23d   : > { %4519 = vmatprep.subr.mxu1 %v4511_v33  ;;  %4575 = vmatprep.subr.mxu0 %v4479_v32  ;;  %6809 = vst [vmem:[#allocation37_spill] sm:$0xff] %v5991_v40 }
 0x23e   : > { %4520 = vmatpush3.msra.mxu1 %v4511_v33  ;;  %4576 = vmatpush3.msra.mxu0 %v4479_v32  ;;  %v5977_v33 = vld [vmem:[%s5847_s30 + $0x58] sm:$0xff] }
 0x23f   : > { %4521 = vmatprep.subr.mxu1 %v1450_v35  ;;  %4577 = vmatprep.subr.mxu0 %v1264_v34  ;;  %6807 = vst [vmem:[#allocation35_spill] sm:$0xff] %v5977_v33  ;;  %v1080_v37 = vmul.f32 %v5840_v54, %v5977_v33 }
 0x240   : > { %4522 = vmatpush3.msra.mxu1 %v1450_v35  ;;  %4578 = vmatpush3.msra.mxu0 %v1264_v34  ;;  %v5980_v34 = vld [vmem:[%s5847_s30 + $0x60] sm:$0xff]  ;;  %v1314_v35 = vmul.f32 %v5849_v36, %v5977_v33 }
 0x241   : > { %4523 = vmatprep.subr.mxu1 %v4508_v29  ;;  %4579 = vmatprep.subr.mxu0 %v4476_v28  ;;  %6808 = vst [vmem:[#allocation36_spill] sm:$0xff] %v5980_v34  ;;  %v1315_v38 = vmul.f32 %v5849_v36, %v5980_v34  ;;  %v1081_v39 = vmul.f32 %v5840_v54, %v5980_v34 }
 0x242   : > { %4524 = vmatpush3.msra.mxu1 %v4508_v29  ;;  %4580 = vmatpush3.msra.mxu0 %v4476_v28  ;;  %v5966_v28 = vld [vmem:[%s5847_s30 + $0x50] sm:$0xff] }
 0x243   : > { %4525 = vmatprep.subr.mxu1 %v1440_v31  ;;  %4581 = vmatprep.subr.mxu0 %v1254_v30  ;;  %6806 = vst [vmem:[#allocation34_spill] sm:$0xff] %v5966_v28  ;;  %v1079_v32 = vmul.f32 %v5840_v54, %v5966_v28 }
 0x244   : > { %4526 = vmatpush3.msra.mxu1 %v1440_v31  ;;  %4582 = vmatpush3.msra.mxu0 %v1254_v30  ;;  %v1313_v31 = vmul.f32 %v5849_v36, %v5966_v28 }
 0x245   : > { %4527 = vmatprep.subr.mxu1 %v4505_v25  ;;  %4583 = vmatprep.subr.mxu0 %v4473_v24 }
 0x246   : > { %4528 = vmatpush3.msra.mxu1 %v4505_v25  ;;  %4584 = vmatpush3.msra.mxu0 %v4473_v24  ;;  %v1796_v24 = vld [vmem:[#allocation2 + $0x40] sm:$0xff] }
 0x247   : > { %4529 = vmatprep.subr.mxu1 %v1430_v27  ;;  %4585 = vmatprep.subr.mxu0 %v1244_v26 }
 0x248   : > { %4530 = vmatpush3.msra.mxu1 %v1430_v27  ;;  %4586 = vmatpush3.msra.mxu0 %v1244_v26  ;;  %v5963_v27 = vld [vmem:[%s5847_s30 + $0x48] sm:$0xff] }
 0x249   : > { %4531 = vmatprep.subr.mxu1 %v4502_v21  ;;  %4587 = vmatprep.subr.mxu0 %v4470_v20  ;;  %6805 = vst [vmem:[#allocation33_spill] sm:$0xff] %v5963_v27  ;;  %v1312_v29 = vmul.f32 %v5849_v36, %v5963_v27  ;;  %v1078_v30 = vmul.f32 %v5840_v54, %v5963_v27 }
 0x24a   : > { %4532 = vmatpush3.msra.mxu1 %v4502_v21  ;;  %4588 = vmatpush3.msra.mxu0 %v4470_v20  ;;  %v5949_v20 = vld [vmem:[%s5847_s30 + $0x38] sm:$0xff]  ;;  %v5952_v21 = vld [vmem:[%s5847_s30 + $0x40] sm:$0xff] }
 0x24b   : > { %4533 = vmatprep.subr.mxu1 %v1420_v23  ;;  %4589 = vmatprep.subr.mxu0 %v1234_v22  ;;  %6803 = vst [vmem:[#allocation31_spill] sm:$0xff] %v5949_v20  ;;  %6804 = vst [vmem:[#allocation32_spill] sm:$0xff] %v5952_v21  ;;  %v1311_v25 = vmul.f32 %v5849_v36, %v5952_v21  ;;  %v1077_v26 = vmul.f32 %v5840_v54, %v5952_v21 }
 0x24c   : > { %4534 = vmatpush3.msra.mxu1 %v1420_v23  ;;  %4590 = vmatpush3.msra.mxu0 %v1234_v22  ;;  %v1310_v22 = vmul.f32 %v5849_v36, %v5949_v20  ;;  %v1076_v23 = vmul.f32 %v5840_v54, %v5949_v20 }
 0x24d   : > { %4535 = vmatprep.subr.mxu1 %v5876_v15  ;;  %4591 = vmatprep.subr.mxu0 %v5874_v12 }
 0x24e   : > { %4536 = vmatpush3.msra.mxu1 %v5876_v15  ;;  %4592 = vmatpush3.msra.mxu0 %v5874_v12  ;;  %v1797_v15 = vld [vmem:[#allocation2 + $0x48] sm:$0xff] }
 0x24f   : > { %4537 = vmatprep.subr.mxu1 %v5880_v19  ;;  %4593 = vmatprep.subr.mxu0 %v5878_v16 }
 0x250   : > { %4538 = vmatpush3.msra.mxu1 %v5880_v19  ;;  %4594 = vmatpush3.msra.mxu0 %v5878_v16 }
 0x251   : > { %4539 = vmatprep.subr.mxu1 %v5868_v7  ;;  %4595 = vmatprep.subr.mxu0 %v5866_v4 }
 0x252   : > { %4540 = vmatpush3.msra.mxu1 %v5868_v7  ;;  %4596 = vmatpush3.msra.mxu0 %v5866_v4  ;;  %v1798_v4 = vld [vmem:[#allocation2 + $0x50] sm:$0xff]  ;;  %v1307_v7 = vmul.f32 %v5849_v36, %v5922_v58 }
 0x253   : > { %4541 = vmatprep.subr.mxu1 %v5872_v11  ;;  %4597 = vmatprep.subr.mxu0 %v5870_v8 }
 0x254   : > { %4542 = vmatpush3.msra.mxu1 %v5872_v11  ;;  %4598 = vmatpush3.msra.mxu0 %v5870_v8  ;;  %v5935_v8 = vld [vmem:[%s5847_s30 + $0x28] sm:$0xff] }
 0x255   : > { %4543 = vmatprep.subr.mxu1 %v5860_v62  ;;  %4599 = vmatprep.subr.mxu0 %v5858_v59  ;;  %6801 = vst [vmem:[#allocation29_spill] sm:$0xff] %v5935_v8  ;;  %v1308_v11 = vmul.f32 %v5849_v36, %v5935_v8  ;;  %v1074_v12 = vmul.f32 %v5840_v54, %v5935_v8 }
 0x256   : > { %4544 = vmatpush3.msra.mxu1 %v5860_v62  ;;  %4600 = vmatpush3.msra.mxu0 %v5858_v59  ;;  %v1306_v59 = vmul.f32 %v5849_v36, %v5915_v50  ;;  %v1072_v62 = vmul.f32 %v5840_v54, %v5915_v50 }
 0x257   : > { %4545 = vmatprep.subr.mxu1 %v5864_v3  ;;  %4601 = vmatprep.subr.mxu0 %v5862_v0 }
 0x258   : > { %4546 = vmatpush3.msra.mxu1 %v5864_v3  ;;  %4602 = vmatpush3.msra.mxu0 %v5862_v0  ;;  %v1073_v3 = vmul.f32 %v5840_v54, %v5922_v58  ;;  %v5938_v0 = vld [vmem:[%s5847_s30 + $0x30] sm:$0xff] }
 0x259   : > { %4548 = vmatmul.mubr.f32.vlgmr.msra.gmra.mxu1 %v1304_v47  ;;  %4604 = vmatmul.mubr.f32.vlgmr.msra.gmra.mxu0 %v1070_v48  ;;  %6802 = vst [vmem:[#allocation30_spill] sm:$0xff] %v5938_v0  ;;  %v1309_v16 = vmul.f32 %v5849_v36, %v5938_v0  ;;  %v1075_v19 = vmul.f32 %v5840_v54, %v5938_v0  ;;  %v5994_v47 = vld [vmem:[%s5847_s30 + $0x70] sm:$0xff] }
 0x25a   : > { %4627 = vmatprep.subr.mxu1 %v1799_v51  ;;  %4550 = vmatprep.mubr.f32.mxu1 %v1305_v49  ;;  %6810 = vst [vmem:[#allocation38_spill] sm:$0xff] %v5994_v47  ;;  %v1316_v48 = vmul.f32 %v5849_v36, %v5991_v40  ;;  %v1082_v49 = vmul.f32 %v5840_v54, %v5991_v40 }
 0x25b   : > { %4628 = vmatpush3.msra.mxu1 %v1799_v51  ;;  %4606 = vmatprep.mubr.f32.mxu0 %v1071_v46  ;;  %v1317_v51 = vmul.f32 %v5849_v36, %v5994_v47  ;;  %v1083_v46 = vmul.f32 %v5840_v54, %v5994_v47 }
 0x25c   : > { %4629 = vmatprep.subr.mxu1 %v1798_v4 }
 0x25d   : > { %4551 = vmatmul.mubr.f32.gmra.mxu1 %v1306_v59  ;;  %4607 = vmatmul.mubr.f32.gmra.mxu0 %v1072_v62  ;;  %v6005_v59 = vld [vmem:[%s5847_s30 + $0x78] sm:$0xff] }
 0x25e   : > { %4553 = vmatprep.mubr.f32.mxu1 %v1307_v7  ;;  %4609 = vmatprep.mubr.f32.mxu0 %v1073_v3  ;;  %6811 = vst [vmem:[#allocation39_spill] sm:$0xff] %v6005_v59  ;;  %v1318_v62 = vmul.f32 %v5849_v36, %v6005_v59 }
 0x25f   : > { %4630 = vmatpush3.msra.mxu1 %v1798_v4  ;;  %v1084_v4 = vmul.f32 %v5840_v54, %v6005_v59  ;;  %v1777_v54 = vmul.f32 1.442695, %v5706_v63 }
 0x260   : > { %4631 = vmatprep.subr.mxu1 %v1797_v15 }
 0x261   : > { %4554 = vmatmul.mubr.f32.gmra.mxu1 %v1308_v11  ;;  %4610 = vmatmul.mubr.f32.gmra.mxu0 %v1074_v12  ;;  %5153 = vpow2.f32 %v1777_v54 }
 0x262   : > { %4556 = vmatprep.mubr.f32.mxu1 %v1309_v16  ;;  %4612 = vmatprep.mubr.f32.mxu0 %v1075_v19 }
 0x263   : > { %4632 = vmatpush3.msra.mxu1 %v1797_v15 }
 0x264   : > { %4633 = vmatprep.subr.mxu1 %v1796_v24 }
 0x265   : > { %4557 = vmatmul.mubr.f32.gmra.mxu1 %v1310_v22  ;;  %4613 = vmatmul.mubr.f32.gmra.mxu0 %v1076_v23 }
 0x266   : > { %4559 = vmatprep.mubr.f32.mxu1 %v1311_v25  ;;  %4615 = vmatprep.mubr.f32.mxu0 %v1077_v26 }
 0x267   : > { %4634 = vmatpush3.msra.mxu1 %v1796_v24 }
 0x269   : > { %4560 = vmatmul.mubr.f32.gmra.mxu1 %v1312_v29  ;;  %4616 = vmatmul.mubr.f32.gmra.mxu0 %v1078_v30 }
 0x26a   : > { %4562 = vmatprep.mubr.f32.mxu1 %v1313_v31  ;;  %4618 = vmatprep.mubr.f32.mxu0 %v1079_v32 }
 0x26d   : > { %4563 = vmatmul.mubr.f32.gmra.mxu1 %v1314_v35  ;;  %4619 = vmatmul.mubr.f32.gmra.mxu0 %v1080_v37 }
 0x26e   : > { %4565 = vmatprep.mubr.f32.mxu1 %v1315_v38  ;;  %4621 = vmatprep.mubr.f32.mxu0 %v1081_v39  ;;  %v6044_v36 = vpop.eup %5153 }
 0x26f   : > { %v1779_v7 = vmul.f32 %v6044_v36, %v5852_v55 }
 0x271   : > { %4566 = vmatmul.mubr.f32.gmra.mxu1 %v1316_v48  ;;  %4622 = vmatmul.mubr.f32.gmra.mxu0 %v1082_v49 }
 0x272   : > { %4568 = vmatprep.mubr.f32.mxu1 %v1317_v51  ;;  %4624 = vmatprep.mubr.f32.mxu0 %v1083_v46 }
 0x275   : > { %4569 = vmatmul.mubr.f32.gmra.mxu1 %v1318_v62  ;;  %4625 = vmatmul.mubr.f32.gmra.mxu0 %v1084_v4 }
 0x276   : > { %4635 = vmatprep.mubr.msk.f32.mxu1 %vm1089_vm1, %v5736_v52  ;;  %4691 = vmatprep.mubr.f32.mxu0 %v1779_v7 }
 0x279   : > { %4636 = vmatmul.mubr.msk.f32.vlgmr.msra.gmra.mxu1 %vm1089_vm1, %v5738_v53 }
 0x27a   : > { %4638 = vmatprep.mubr.msk.f32.mxu1 %vm1089_vm1, %v5748_v56 }
 0x27d   : > { %4639 = vmatmul.mubr.msk.f32.gmra.mxu1 %vm1089_vm1, %v5750_v57 }
 0x27e   : > { %4641 = vmatprep.mubr.msk.f32.mxu1 %vm1089_vm1, %v5760_v60 }
 0x281   : > { %4642 = vmatmul.mubr.msk.f32.gmra.mxu1 %vm1089_vm1, %v5762_v61 }
 0x282   : > { %4644 = vmatprep.mubr.msk.f32.mxu1 %vm1089_vm1, %v5772_v1 }
 0x285   : > { %4645 = vmatmul.mubr.msk.f32.gmra.mxu1 %vm1089_vm1, %v5774_v2 }
 0x286   : > { %4647 = vmatprep.mubr.msk.f32.mxu1 %vm1089_vm1, %v5784_v5 }
 0x289   : > { %4648 = vmatmul.mubr.msk.f32.gmra.mxu1 %vm1089_vm1, %v5786_v6 }
 0x28a   : > { %4650 = vmatprep.mubr.msk.f32.mxu1 %vm1089_vm1, %v5796_v9 }
 0x28d   : > { %4651 = vmatmul.mubr.msk.f32.gmra.mxu1 %vm1089_vm1, %v5798_v10 }
 0x28e   : > { %4653 = vmatprep.mubr.msk.f32.mxu1 %vm1089_vm1, %v5808_v13 }
 0x291   : > { %4654 = vmatmul.mubr.msk.f32.gmra.mxu1 %vm1089_vm1, %v5810_v14 }
 0x292   : > { %4656 = vmatprep.mubr.msk.f32.mxu1 %vm1089_vm1, %v5820_v17 }
 0x295   : > { %4657 = vmatmul.mubr.msk.f32.gmra.mxu1 %vm1089_vm1, %v5822_v18 }
 0x319   : > { %v6048_v3 = vpop.f32.mrf.mxu1 }
 0x31b   : > { %v6050_v11 = vpop.f32.mrf.mxu1 }
 0x31d   : > { %v6052_v12 = vpop.f32.mrf.mxu1 }
 0x31f   : > { %v6054_v15 = vpop.f32.mrf.mxu1 }
 0x321   : > { %v6056_v16 = vpop.f32.mrf.mxu1 }
 0x323   : > { %v6058_v19 = vpop.f32.mrf.mxu1 }
 0x325   : > { %v6060_v63 = vpop.f32.mrf.mxu1 }
 0x327   : > { %v6062_v22 = vpop.f32.mrf.mxu1 }
 0x329   : > { %v6064_v23 = vpop.f32.mrf.mxu1 }
 0x32b   : > { %v6066_v24 = vpop.f32.mrf.mxu1 }
 0x32d   : > { %v6068_v25 = vpop.f32.mrf.mxu1 }
 0x32f   : > { %v6070_v26 = vpop.f32.mrf.mxu1 }
 0x331   : > { %v6072_v29 = vpop.f32.mrf.mxu1 }
 0x333   : > { %v6074_v30 = vpop.f32.mrf.mxu1 }
 0x335   : > { %v6076_v31 = vpop.f32.mrf.mxu1 }
 0x337   : > { %v6078_v32 = vpop.f32.mrf.mxu1 }
 0x339   : > { %v4637_v35 = vpop.f32.mrf.mxu1 }
 0x33b   : > { %v1866_v37 = vpop.f32.mrf.mxu1 }
 0x33d   : > { %v4640_v38 = vpop.f32.mrf.mxu1 }
 0x33f   : > { %v1876_v39 = vpop.f32.mrf.mxu1 }
 0x341   : > { %v4643_v48 = vpop.f32.mrf.mxu1 }
 0x343   : > { %v1886_v49 = vpop.f32.mrf.mxu1 }
 0x345   : > { %v4646_v51 = vpop.f32.mrf.mxu1 }
 0x347   : > { %v1896_v46 = vpop.f32.mrf.mxu1 }
 0x349   : > { %v4649_v62 = vpop.f32.mrf.mxu1 }
 0x34b   : > { %v1906_v4 = vpop.f32.mrf.mxu1 }
 0x34d   : > { %v4652_v54 = vpop.f32.mrf.mxu1 }
 0x34f   : > { %v1916_v7 = vpop.f32.mrf.mxu1 }
 0x351   : > { %v4655_v44 = vpop.f32.mrf.mxu1 }
 0x353   : > { %v1926_v55 = vpop.f32.mrf.mxu1 }
 0x355   : > { %v4658_v43 = vpop.f32.mrf.mxu1 }
 0x356   : > { %4659 = vmatprep.subr.mxu0 %v4658_v43 }
 0x357   : > { %v1936_v42 = vpop.f32.mrf.mxu1  ;;  %4660 = vmatpush3.msra.mxu0 %v4658_v43  ;;  %v1781_v43 = vmul.f32 %v6044_v36, %v5900_v45 }
 0x358   : > { %4661 = vmatprep.subr.mxu0 %v1936_v42 }
 0x359   : > { %4662 = vmatpush3.msra.mxu0 %v1936_v42  ;;  %v1780_v42 = vmul.f32 %v6044_v36, %v5895_v41 }
 0x35a   : > { %4663 = vmatprep.subr.mxu0 %v4655_v44 }
 0x35b   : > { %4664 = vmatpush3.msra.mxu0 %v4655_v44  ;;  %v2480_v44 = vld [vmem:[#allocation2 + $0x98] sm:$0xff] }
 0x35c   : > { %4665 = vmatprep.subr.mxu0 %v1926_v55 }
 0x35d   : > { %4666 = vmatpush3.msra.mxu0 %v1926_v55  ;;  %v2479_v55 = vld [vmem:[#allocation2 + $0x90] sm:$0xff] }
 0x35e   : > { %4667 = vmatprep.subr.mxu0 %v4652_v54 }
 0x35f   : > { %4668 = vmatpush3.msra.mxu0 %v4652_v54  ;;  %v1791_v54 = vmul.f32 %v6044_v36, %v5980_v34 }
 0x360   : > { %4669 = vmatprep.subr.mxu0 %v1916_v7 }
 0x361   : > { %4670 = vmatpush3.msra.mxu0 %v1916_v7  ;;  %v1792_v7 = vmul.f32 %v6044_v36, %v5991_v40 }
 0x362   : > { %4671 = vmatprep.subr.mxu0 %v4649_v62 }
 0x363   : > { %4672 = vmatpush3.msra.mxu0 %v4649_v62  ;;  %v1789_v62 = vmul.f32 %v6044_v36, %v5966_v28 }
 0x364   : > { %4673 = vmatprep.subr.mxu0 %v1906_v4 }
 0x365   : > { %4674 = vmatpush3.msra.mxu0 %v1906_v4  ;;  %v1790_v4 = vmul.f32 %v6044_v36, %v5977_v33  ;;  %v6134_v33 = vld [vmem:[%s6702_s9] ss:$0 sm:$0xff] }
 0x366   : > { %4675 = vmatprep.subr.mxu0 %v4646_v51 }
 0x367   : > { %4676 = vmatpush3.msra.mxu0 %v4646_v51  ;;  %v1787_v51 = vmul.f32 %v6044_v36, %v5952_v21 }
 0x368   : > { %4677 = vmatprep.subr.mxu0 %v1896_v46 }
 0x369   : > { %4678 = vmatpush3.msra.mxu0 %v1896_v46  ;;  %v1788_v46 = vmul.f32 %v6044_v36, %v5963_v27 }
 0x36a   : > { %4679 = vmatprep.subr.mxu0 %v4643_v48 }
 0x36b   : > { %4680 = vmatpush3.msra.mxu0 %v4643_v48  ;;  %v1782_v48 = vmul.f32 %v6044_v36, %v5915_v50 }
 0x36c   : > { %4681 = vmatprep.subr.mxu0 %v1886_v49 }
 0x36d   : > { %4682 = vmatpush3.msra.mxu0 %v1886_v49  ;;  %v1786_v49 = vmul.f32 %v6044_v36, %v5949_v20 }
 0x36e   : > { %4683 = vmatprep.subr.mxu0 %v4640_v38 }
 0x36f   : > { %4684 = vmatpush3.msra.mxu0 %v4640_v38  ;;  %v1783_v38 = vmul.f32 %v6044_v36, %v5922_v58 }
 0x370   : > { %4685 = vmatprep.subr.mxu0 %v1876_v39 }
 0x371   : > { %4686 = vmatpush3.msra.mxu0 %v1876_v39  ;;  %v2478_v39 = vld [vmem:[#allocation2 + $0x88] sm:$0xff] }
 0x372   : > { %4687 = vmatprep.subr.mxu0 %v4637_v35 }
 0x373   : > { %4688 = vmatpush3.msra.mxu0 %v4637_v35  ;;  %v1784_v35 = vmul.f32 %v6044_v36, %v5935_v8 }
 0x374   : > { %4689 = vmatprep.subr.mxu0 %v1866_v37 }
 0x375   : > { %4690 = vmatpush3.msra.mxu0 %v1866_v37  ;;  %v1785_v37 = vmul.f32 %v6044_v36, %v5938_v0 }
 0x376   : > { %4692 = vmatmul.mubr.f32.vlgmr.msra.gmra.mxu0 %v1780_v42  ;;  %4747 = vmatprep.subr.mxu0 %v2480_v44  ;;  %v1793_v42 = vmul.f32 %v6044_v36, %v5994_v47  ;;  %v6128_v47 = vld [vmem:[%s6701_s8] ss:$0 sm:$0xff] }
 0x377   : > { %4694 = vmatprep.mubr.f32.mxu0 %v1781_v43  ;;  %4748 = vmatpush3.msra.mxu0 %v2480_v44  ;;  %v1794_v43 = vmul.f32 %v6044_v36, %v6005_v59  ;;  %v2246_v44 = vld [vmem:[#allocation2 + $0x78] sm:$0xff] }
 0x378   : > { %4749 = vmatprep.subr.mxu0 %v2479_v55  ;;  %4715 = vmatprep.subr.mxu1 %v2246_v44 }
 0x379   : > { %4750 = vmatpush3.msra.mxu0 %v2479_v55  ;;  %4716 = vmatpush3.msra.mxu1 %v2246_v44  ;;  %v2245_v55 = vld [vmem:[#allocation2 + $0x70] sm:$0xff] }
 0x37a   : > { %4695 = vmatmul.mubr.f32.gmra.mxu0 %v1782_v48  ;;  %4751 = vmatprep.subr.mxu0 %v2478_v39  ;;  %v2244_v48 = vld [vmem:[#allocation2 + $0x68] sm:$0xff] }
 0x37b   : > { %4697 = vmatprep.mubr.f32.mxu0 %v1783_v38  ;;  %4752 = vmatpush3.msra.mxu0 %v2478_v39  ;;  %v2477_v38 = vld [vmem:[#allocation2 + $0x80] sm:$0xff] }
 0x37c   : > { %4717 = vmatprep.subr.mxu1 %v2245_v55  ;;  %4753 = vmatprep.subr.mxu0 %v2477_v38  ;;  %v2243_v39 = vld [vmem:[#allocation2 + $0x60] sm:$0xff] }
 0x37d   : > { %4718 = vmatpush3.msra.mxu1 %v2245_v55  ;;  %4754 = vmatpush3.msra.mxu0 %v2477_v38 }
 0x37e   : > { %4698 = vmatmul.mubr.f32.gmra.mxu0 %v1784_v35  ;;  %4719 = vmatprep.subr.mxu1 %v2244_v48  ;;  %v4605_v35 = vpop.f32.mrf.mxu0 }
 0x37f   : > { %4700 = vmatprep.mubr.f32.mxu0 %v1785_v37  ;;  %4720 = vmatpush3.msra.mxu1 %v2244_v48 }
 0x380   : > { %4721 = vmatprep.subr.mxu1 %v2243_v39  ;;  %v1680_v37 = vpop.f32.mrf.mxu0 }
 0x381   : > { %4722 = vmatpush3.msra.mxu1 %v2243_v39  ;;  %v1686_v39 = vadd.f32 %v4605_v35, %v6048_v3  ;;  %v1681_v40 = vadd.f32 %v1680_v37, %v6050_v11 }
 0x382   : > { %4701 = vmatmul.mubr.f32.gmra.mxu0 %v1786_v49  ;;  %v4608_v36 = vpop.f32.mrf.mxu0 }
 0x383   : > { %4703 = vmatprep.mubr.f32.mxu0 %v1787_v51  ;;  %v1696_v27 = vadd.f32 %v4608_v36, %v6052_v12 }
 0x384   : > { %v1690_v49 = vpop.f32.mrf.mxu0 }
 0x385   : > { %v1691_v20 = vadd.f32 %v1690_v49, %v6054_v15 }
 0x386   : > { %4704 = vmatmul.mubr.f32.gmra.mxu0 %v1788_v46  ;;  %v4611_v51 = vpop.f32.mrf.mxu0 }
 0x387   : > { %4706 = vmatprep.mubr.f32.mxu0 %v1789_v62  ;;  %v1706_v50 = vadd.f32 %v4611_v51, %v6056_v16 }
 0x388   : > { %v1700_v46 = vpop.f32.mrf.mxu0 }
 0x38a   : > { %4707 = vmatmul.mubr.f32.gmra.mxu0 %v1790_v4  ;;  %v4614_v62 = vpop.f32.mrf.mxu0 }
 0x38b   : > { %4709 = vmatprep.mubr.f32.mxu0 %v1791_v54 }
 0x38c   : > { %v1710_v4 = vpop.f32.mrf.mxu0 }
 0x38e   : > { %4710 = vmatmul.mubr.f32.gmra.mxu0 %v1792_v7  ;;  %v4617_v54 = vpop.f32.mrf.mxu0 }
 0x38f   : > { %4712 = vmatprep.mubr.f32.mxu0 %v1793_v42 }
 0x390   : > { %v6110_v7 = vpop.f32.mrf.mxu0 }
 0x392   : > { %4713 = vmatmul.mubr.f32.gmra.mxu0 %v1794_v43  ;;  %v6112_v42 = vpop.f32.mrf.mxu0 }
 0x394   : > { %v6114_v43 = vpop.f32.mrf.mxu0 }
 0x396   : > { %v6116_v44 = vpop.f32.mrf.mxu0 }
 0x398   : > { %v6118_v55 = vpop.f32.mrf.mxu0 }
 0x39a   : > { %v6120_v48 = vpop.f32.mrf.mxu0 }
 0x39c   : > { %v6122_v38 = vpop.f32.mrf.mxu0 }
 0x436   : > { %v4693_v59 = vpop.f32.mrf.mxu0 }
 0x437   : > { %v2091_v34 = vadd.f32 %v4693_v59, %v1686_v39 }
 0x438   : > { %v2011_v28 = vpop.f32.mrf.mxu0 }
 0x439   : > { %v2114_v21 = vmul.f32 %v6128_v47, %v2091_v34  ;;  %v2090_v3 = vadd.f32 %v2011_v28, %v1681_v40  ;;  %v1701_v28 = vadd.f32 %v1700_v46, %v6058_v19  ;;  %v1711_v46 = vadd.f32 %v1710_v4, %v6062_v22 }
 0x43a   : > { %v4696_v35 = vpop.f32.mrf.mxu0 }
 0x43b   : > { %v2137_v0 = vadd.f32 %v6134_v33, %v2114_v21  ;;  %v2113_v8 = vmul.f32 %v6128_v47, %v2090_v3  ;;  %v2093_v11 = vadd.f32 %v4696_v35, %v1696_v27  ;;  %v1716_v27 = vadd.f32 %v4614_v62, %v6060_v63 }
 0x43c   : > { %v2021_v59 = vpop.f32.mrf.mxu0 }
 0x43d   : > { %v2136_v37 = vadd.f32 %v6134_v33, %v2113_v8  ;;  %v2116_v39 = vmul.f32 %v6128_v47, %v2093_v11  ;;  %v2092_v58 = vadd.f32 %v2021_v59, %v1691_v20  ;;  %v2153_v12 = vmax.f32 %v2137_v0, 0.0 }
 0x43e   : > { %v4699_v36 = vpop.f32.mrf.mxu0 }
 0x43f   : > { %v2152_v34 = vmax.f32 %v2136_v37, 0.0  ;;  %v2139_v40 = vadd.f32 %v6134_v33, %v2116_v39  ;;  %v2115_v21 = vmul.f32 %v6128_v47, %v2092_v58  ;;  %v2095_v15 = vadd.f32 %v4699_v36, %v1706_v50 }
 0x440   : > { %v2031_v49 = vpop.f32.mrf.mxu0  ;;  %v6153_v0 = vadd.f32 %v2153_v12, %v5738_v53 }
 0x441   : > { %v6149_v8 = vadd.f32 %v2152_v34, %v5736_v52  ;;  %v2138_v20 = vadd.f32 %v6134_v33, %v2115_v21  ;;  %v2094_v3 = vadd.f32 %v2031_v49, %v1701_v28  ;;  %v2155_v16 = vmax.f32 %v2139_v40, 0.0 }
 0x442   : > { %v2118_v19 = vmul.f32 %v6128_v47, %v2095_v15  ;;  %v4702_v51 = vpop.f32.mrf.mxu0  ;;  %v1726_v52 = vadd.f32 %v4617_v54, %v6064_v23 }
 0x443   : > { %6812 = vst [vmem:[#allocation40_spill] sm:$0xff] %v6149_v8  ;;  %v2154_v58 = vmax.f32 %v2138_v20, 0.0  ;;  %v2117_v50 = vmul.f32 %v6128_v47, %v2094_v3  ;;  %v2097_v35 = vadd.f32 %v4702_v51, %v1716_v27  ;;  %4723 = vmatprep.mubr.msk.f32.mxu1 %vm1089_vm1, %v6149_v8  ;;  %4755 = vmatprep.mubr.msk.f32.mxu0 %vm1089_vm1, %v6149_v8 }
 0x444   : > { %v2141_v53 = vadd.f32 %v6134_v33, %v2118_v19  ;;  %v2041_v63 = vpop.f32.mrf.mxu0  ;;  %4724 = vmatmul.mubr.msk.f32.vlgmr.msra.gmra.mxu1 %vm1089_vm1, %v6153_v0  ;;  %4756 = vmatmul.mubr.msk.f32.vlgmr.msra.gmra.mxu0 %vm1089_vm1, %v6153_v0  ;;  %v6174_v59 = vadd.f32 %v2155_v16, %v5750_v57  ;;  %v1736_v57 = vadd.f32 %v6112_v42, %v6068_v25 }
 0x445   : > { %v6169_v22 = vadd.f32 %v2154_v58, %v5748_v56  ;;  %v2140_v62 = vadd.f32 %v6134_v33, %v2117_v50  ;;  %v2120_v4 = vmul.f32 %v6128_v47, %v2097_v35  ;;  %v2096_v11 = vadd.f32 %v2041_v63, %v1711_v46 }
 0x446   : > { %v2157_v23 = vmax.f32 %v2141_v53, 0.0  ;;  %v4705_v54 = vpop.f32.mrf.mxu0  ;;  %v1721_v56 = vadd.f32 %v6110_v7, %v6066_v24  ;;  %v1731_v27 = vadd.f32 %v6114_v43, %v6070_v26  ;;  %v1746_v26 = vadd.f32 %v6116_v44, %v6072_v29 }
 0x447   : > { %v2156_v37 = vmax.f32 %v2140_v62, 0.0  ;;  %v2143_v39 = vadd.f32 %v6134_v33, %v2120_v4  ;;  %v2119_v12 = vmul.f32 %v6128_v47, %v2096_v11  ;;  %v2099_v36 = vadd.f32 %v4705_v54, %v1726_v52  ;;  %4726 = vmatprep.mubr.msk.f32.mxu1 %vm1089_vm1, %v6169_v22  ;;  %4758 = vmatprep.mubr.msk.f32.mxu0 %vm1089_vm1, %v6169_v22 }
 0x448   : > { %v2051_v28 = vpop.f32.mrf.mxu0  ;;  %4727 = vmatmul.mubr.msk.f32.gmra.mxu1 %vm1089_vm1, %v6174_v59  ;;  %4759 = vmatmul.mubr.msk.f32.gmra.mxu0 %vm1089_vm1, %v6174_v59  ;;  %v6196_v15 = vadd.f32 %v2157_v23, %v5762_v61  ;;  %v1741_v50 = vadd.f32 %v6118_v55, %v6074_v30  ;;  %v1756_v53 = vadd.f32 %v6120_v48, %v6076_v31 }
 0x449   : > { %v6191_v34 = vadd.f32 %v2156_v37, %v5760_v60  ;;  %v2142_v40 = vadd.f32 %v6134_v33, %v2119_v12  ;;  %v2122_v21 = vmul.f32 %v6128_v47, %v2099_v36  ;;  %v2159_v24 = vmax.f32 %v2143_v39, 0.0 }
 0x44a   : > { %v2098_v7 = vadd.f32 %v2051_v28, %v1721_v56  ;;  %v4708_v49 = vpop.f32.mrf.mxu0  ;;  %v1751_v63 = vadd.f32 %v6122_v38, %v6078_v32 }
 0x44b   : > { %v2158_v20 = vmax.f32 %v2142_v40, 0.0  ;;  %v2145_v3 = vadd.f32 %v6134_v33, %v2122_v21  ;;  %v2101_v25 = vadd.f32 %v4708_v49, %v1736_v57  ;;  %4729 = vmatprep.mubr.msk.f32.mxu1 %vm1089_vm1, %v6191_v34  ;;  %4761 = vmatprep.mubr.msk.f32.mxu0 %vm1089_vm1, %v6191_v34  ;;  %v6217_v19 = vadd.f32 %v2159_v24, %v5774_v2  ;;  %v6814_v24 = vld [vmem:[#allocation24_spill] sm:$0xff] }
 0x44c   : > { %v2121_v60 = vmul.f32 %v6128_v47, %v2098_v7  ;;  %v2061_v61 = vpop.f32.mrf.mxu0  ;;  %4730 = vmatmul.mubr.msk.f32.gmra.mxu1 %vm1089_vm1, %v6196_v15  ;;  %4762 = vmatmul.mubr.msk.f32.gmra.mxu0 %vm1089_vm1, %v6196_v15  ;;  %v2458_v7 = vmul.f32 1.442695, %v6814_v24  ;;  %v2955_v24 = vld [vmem:[#allocation2 + $0xb0] sm:$0xff] }
 0x44d   : > { %v6213_v42 = vadd.f32 %v2158_v20, %v5772_v1  ;;  %v2124_v43 = vmul.f32 %v6128_v47, %v2101_v25  ;;  %v2100_v16 = vadd.f32 %v2061_v61, %v1731_v27  ;;  %v2161_v51 = vmax.f32 %v2145_v3, 0.0  ;;  %v6815_v27 = vld [vmem:[#allocation26_spill] sm:$0xff] }
 0x44e   : > { %v2144_v46 = vadd.f32 %v6134_v33, %v2121_v60  ;;  %v4711_v58 = vpop.f32.mrf.mxu0 }
 0x44f   : > { %v2147_v35 = vadd.f32 %v6134_v33, %v2124_v43  ;;  %v2123_v29 = vmul.f32 %v6128_v47, %v2100_v16  ;;  %v2103_v44 = vadd.f32 %v4711_v58, %v1746_v26  ;;  %4732 = vmatprep.mubr.msk.f32.mxu1 %vm1089_vm1, %v6213_v42  ;;  %4764 = vmatprep.mubr.msk.f32.mxu0 %vm1089_vm1, %v6213_v42 }
 0x450   : > { %v2160_v1 = vmax.f32 %v2144_v46, 0.0  ;;  %v2071_v2 = vpop.f32.mrf.mxu0  ;;  %4733 = vmatmul.mubr.msk.f32.gmra.mxu1 %vm1089_vm1, %v6217_v19  ;;  %4765 = vmatmul.mubr.msk.f32.gmra.mxu0 %vm1089_vm1, %v6217_v19  ;;  %v6239_v62 = vadd.f32 %v2161_v51, %v5786_v6 }
 0x451   : > { %v2146_v52 = vadd.f32 %v6134_v33, %v2123_v29  ;;  %v2126_v30 = vmul.f32 %v6128_v47, %v2103_v44  ;;  %v2102_v55 = vadd.f32 %v2071_v2, %v1741_v50  ;;  %v2163_v23 = vmax.f32 %v2147_v35, 0.0 }
 0x452   : > { %v6242_v4 = vadd.f32 %v2160_v1, %v5784_v5  ;;  %v4714_v11 = vpop.f32.mrf.mxu0 }
 0x453   : > { %v2162_v54 = vmax.f32 %v2146_v52, 0.0  ;;  %v2149_v37 = vadd.f32 %v6134_v33, %v2126_v30  ;;  %v2125_v39 = vmul.f32 %v6128_v47, %v2102_v55  ;;  %v2105_v12 = vadd.f32 %v4714_v11, %v1756_v53 }
 0x454   : > { %4735 = vmatprep.mubr.msk.f32.mxu1 %vm1089_vm1, %v6242_v4  ;;  %4767 = vmatprep.mubr.msk.f32.mxu0 %vm1089_vm1, %v6242_v4  ;;  %v2081_v31 = vpop.f32.mrf.mxu0  ;;  %v6260_v38 = vadd.f32 %v2163_v23, %v5798_v10 }
 0x455   : > { %v6251_v6 = vadd.f32 %v2162_v54, %v5796_v9  ;;  %v2148_v5 = vadd.f32 %v6134_v33, %v2125_v39  ;;  %v2104_v32 = vadd.f32 %v2081_v31, %v1751_v63  ;;  %4736 = vmatmul.mubr.msk.f32.gmra.mxu1 %vm1089_vm1, %v6239_v62  ;;  %4768 = vmatmul.mubr.msk.f32.gmra.mxu0 %vm1089_vm1, %v6239_v62  ;;  %v2165_v36 = vmax.f32 %v2149_v37, 0.0 }
 0x456   : > { %v2128_v48 = vmul.f32 %v6128_v47, %v2105_v12 }
 0x457   : > { %v2164_v56 = vmax.f32 %v2148_v5, 0.0  ;;  %v2127_v28 = vmul.f32 %v6128_v47, %v2104_v32  ;;  %4738 = vmatprep.mubr.msk.f32.mxu1 %vm1089_vm1, %v6251_v6  ;;  %4770 = vmatprep.mubr.msk.f32.mxu0 %vm1089_vm1, %v6251_v6  ;;  %v6277_v10 = vadd.f32 %v2165_v36, %v5810_v14 }
 0x458   : > { %v2151_v9 = vadd.f32 %v6134_v33, %v2128_v48 }
 0x459   : > { %v6269_v57 = vadd.f32 %v2164_v56, %v5808_v13  ;;  %v2150_v40 = vadd.f32 %v6134_v33, %v2127_v28  ;;  %4739 = vmatmul.mubr.msk.f32.gmra.mxu1 %vm1089_vm1, %v6260_v38  ;;  %4771 = vmatmul.mubr.msk.f32.gmra.mxu0 %vm1089_vm1, %v6260_v38 }
 0x45a   : > { %v2167_v47 = vmax.f32 %v2151_v9, 0.0 }
 0x45b   : > { %v2166_v21 = vmax.f32 %v2150_v40, 0.0  ;;  %4741 = vmatprep.mubr.msk.f32.mxu1 %vm1089_vm1, %v6269_v57  ;;  %4773 = vmatprep.mubr.msk.f32.mxu0 %vm1089_vm1, %v6269_v57 }
 0x45c   : > { %v6291_v14 = vadd.f32 %v2167_v47, %v5822_v18  ;;  %v2956_v47 = vld [vmem:[#allocation2 + $0xb8] sm:$0xff] }
 0x45d   : > { %v6284_v13 = vadd.f32 %v2166_v21, %v5820_v17  ;;  %4742 = vmatmul.mubr.msk.f32.gmra.mxu1 %vm1089_vm1, %v6277_v10  ;;  %4774 = vmatmul.mubr.msk.f32.gmra.mxu0 %vm1089_vm1, %v6277_v10  ;;  %v6813_v17 = vld [vmem:[#allocation23_spill] sm:$0xff] }
 0x45e   : > { %v2224_v33 = vmul.f32 1.442695, %v6813_v17 }
 0x45f   : > { %4744 = vmatprep.mubr.msk.f32.mxu1 %vm1089_vm1, %v6284_v13  ;;  %4776 = vmatprep.mubr.msk.f32.mxu0 %vm1089_vm1, %v6284_v13 }
 0x460   : > { %5155 = vpow2.f32 %v2224_v33 }
 0x461   : > { %4745 = vmatmul.mubr.msk.f32.gmra.mxu1 %vm1089_vm1, %v6291_v14  ;;  %4777 = vmatmul.mubr.msk.f32.gmra.mxu0 %vm1089_vm1, %v6291_v14  ;;  %5157 = vpow2.f32 %v2458_v7  ;;  %v6817_v7 = vld [vmem:[#allocation28_spill] sm:$0xff] }
 0x46d   : > { %v6303_v18 = vpop.eup %5155 }
 0x46e   : > { %v6305_v49 = vpop.eup %5157  ;;  %v2226_v3 = vmul.f32 %v6303_v18, %v6815_v27  ;;  %v2227_v9 = vmul.f32 %v6303_v18, %v5895_v41  ;;  %v2228_v21 = vmul.f32 %v6303_v18, %v5900_v45 }
 0x46f   : > { %v2460_v20 = vmul.f32 %v6305_v49, %v6815_v27  ;;  %v2461_v28 = vmul.f32 %v6305_v49, %v5895_v41  ;;  %v2462_v40 = vmul.f32 %v6305_v49, %v5900_v45  ;;  %v6816_v41 = vld [vmem:[#allocation27_spill] sm:$0xff]  ;;  %v2464_v27 = vmul.f32 %v6305_v49, %v6817_v7 }
 0x470   : > { %4867 = vmatprep.mubr.f32.mxu0 %v2226_v3  ;;  %v2463_v17 = vmul.f32 %v6305_v49, %v6816_v41  ;;  %v2229_v33 = vmul.f32 %v6303_v18, %v6816_v41  ;;  %v2230_v45 = vmul.f32 %v6303_v18, %v6817_v7 }
 0x471   : > { %4811 = vmatprep.mubr.f32.mxu1 %v2460_v20  ;;  %v6818_v20 = vld [vmem:[#allocation29_spill] sm:$0xff] }
 0x472   : > { %v2465_v3 = vmul.f32 %v6305_v49, %v6818_v20 }
 0x504   : > { %v6311_v25 = vpop.f32.mrf.mxu1  ;;  %v6313_v60 = vpop.f32.mrf.mxu0 }
 0x506   : > { %v6315_v61 = vpop.f32.mrf.mxu1  ;;  %v6317_v26 = vpop.f32.mrf.mxu0 }
 0x508   : > { %v6319_v43 = vpop.f32.mrf.mxu1  ;;  %v6321_v16 = vpop.f32.mrf.mxu0 }
 0x50a   : > { %v6323_v51 = vpop.f32.mrf.mxu1  ;;  %v6325_v46 = vpop.f32.mrf.mxu0 }
 0x50c   : > { %v6327_v58 = vpop.f32.mrf.mxu1  ;;  %v6329_v50 = vpop.f32.mrf.mxu0 }
 0x50e   : > { %v6331_v35 = vpop.f32.mrf.mxu1  ;;  %v6333_v29 = vpop.f32.mrf.mxu0 }
 0x510   : > { %v4734_v44 = vpop.f32.mrf.mxu1  ;;  %v4766_v1 = vpop.f32.mrf.mxu0 }
 0x512   : > { %v2391_v2 = vpop.f32.mrf.mxu1  ;;  %v2577_v52 = vpop.f32.mrf.mxu0 }
 0x515   : > { %v4737_v30 = vpop.f32.mrf.mxu1  ;;  %v4769_v55 = vpop.f32.mrf.mxu0 }
 0x517   : > { %v2401_v53 = vpop.f32.mrf.mxu1  ;;  %v2587_v63 = vpop.f32.mrf.mxu0 }
 0x519   : > { %v4740_v11 = vpop.f32.mrf.mxu1  ;;  %v4772_v23 = vpop.f32.mrf.mxu0 }
 0x51b   : > { %v2411_v54 = vpop.f32.mrf.mxu1  ;;  %v2597_v37 = vpop.f32.mrf.mxu0 }
 0x51d   : > { %v4743_v39 = vpop.f32.mrf.mxu1  ;;  %v4775_v12 = vpop.f32.mrf.mxu0 }
 0x51f   : > { %v2421_v31 = vpop.f32.mrf.mxu1  ;;  %v2607_v5 = vpop.f32.mrf.mxu0 }
 0x521   : > { %v4746_v32 = vpop.f32.mrf.mxu1  ;;  %v4778_v48 = vpop.f32.mrf.mxu0 }
 0x522   : > { %4779 = vmatprep.subr.mxu1 %v4778_v48  ;;  %4835 = vmatprep.subr.mxu0 %v4746_v32 }
 0x523   : > { %v2431_v36 = vpop.f32.mrf.mxu1  ;;  %v2617_v56 = vpop.f32.mrf.mxu0  ;;  %4780 = vmatpush3.msra.mxu1 %v4778_v48  ;;  %4836 = vmatpush3.msra.mxu0 %v4746_v32 }
 0x524   : > { %4781 = vmatprep.subr.mxu1 %v2617_v56  ;;  %4837 = vmatprep.subr.mxu0 %v2431_v36 }
 0x525   : > { %4782 = vmatpush3.msra.mxu1 %v2617_v56  ;;  %4838 = vmatpush3.msra.mxu0 %v2431_v36  ;;  %v6828_v36 = vld [vmem:[#allocation39_spill] sm:$0xff] }
 0x526   : > { %4783 = vmatprep.subr.mxu1 %v4775_v12  ;;  %4839 = vmatprep.subr.mxu0 %v4743_v39  ;;  %v2475_v56 = vmul.f32 %v6305_v49, %v6828_v36 }
 0x527   : > { %4784 = vmatpush3.msra.mxu1 %v4775_v12  ;;  %4840 = vmatpush3.msra.mxu0 %v4743_v39  ;;  %v6826_v39 = vld [vmem:[#allocation37_spill] sm:$0xff] }
 0x528   : > { %4785 = vmatprep.subr.mxu1 %v2607_v5  ;;  %4841 = vmatprep.subr.mxu0 %v2421_v31  ;;  %v2473_v12 = vmul.f32 %v6305_v49, %v6826_v39 }
 0x529   : > { %4786 = vmatpush3.msra.mxu1 %v2607_v5  ;;  %4842 = vmatpush3.msra.mxu0 %v2421_v31  ;;  %v2239_v31 = vmul.f32 %v6303_v18, %v6826_v39  ;;  %v6827_v5 = vld [vmem:[#allocation38_spill] sm:$0xff] }
 0x52a   : > { %4787 = vmatprep.subr.mxu1 %v4772_v23  ;;  %4843 = vmatprep.subr.mxu0 %v4740_v11  ;;  %v2474_v32 = vmul.f32 %v6305_v49, %v6827_v5  ;;  %v2240_v48 = vmul.f32 %v6303_v18, %v6827_v5 }
 0x52b   : > { %4788 = vmatpush3.msra.mxu1 %v4772_v23  ;;  %4844 = vmatpush3.msra.mxu0 %v4740_v11  ;;  %v6825_v23 = vld [vmem:[#allocation36_spill] sm:$0xff] }
 0x52c   : > { %4789 = vmatprep.subr.mxu1 %v2597_v37  ;;  %4845 = vmatprep.subr.mxu0 %v2411_v54 }
 0x52d   : > { %4790 = vmatpush3.msra.mxu1 %v2597_v37  ;;  %4846 = vmatpush3.msra.mxu0 %v2411_v54  ;;  %v2472_v54 = vmul.f32 %v6305_v49, %v6825_v23  ;;  %v2238_v37 = vmul.f32 %v6303_v18, %v6825_v23 }
 0x52e   : > { %4791 = vmatprep.subr.mxu1 %v4769_v55  ;;  %4847 = vmatprep.subr.mxu0 %v4737_v30 }
 0x52f   : > { %4792 = vmatpush3.msra.mxu1 %v4769_v55  ;;  %4848 = vmatpush3.msra.mxu0 %v4737_v30 }
 0x530   : > { %4793 = vmatprep.subr.mxu1 %v2587_v63  ;;  %4849 = vmatprep.subr.mxu0 %v2401_v53 }
 0x531   : > { %4794 = vmatpush3.msra.mxu1 %v2587_v63  ;;  %4850 = vmatpush3.msra.mxu0 %v2401_v53  ;;  %v6824_v53 = vld [vmem:[#allocation35_spill] sm:$0xff] }
 0x532   : > { %4795 = vmatprep.subr.mxu1 %v4766_v1  ;;  %4851 = vmatprep.subr.mxu0 %v4734_v44  ;;  %v2471_v63 = vmul.f32 %v6305_v49, %v6824_v53  ;;  %v2237_v11 = vmul.f32 %v6303_v18, %v6824_v53 }
 0x533   : > { %4796 = vmatpush3.msra.mxu1 %v4766_v1  ;;  %4852 = vmatpush3.msra.mxu0 %v4734_v44  ;;  %v6822_v44 = vld [vmem:[#allocation33_spill] sm:$0xff] }
 0x534   : > { %4797 = vmatprep.subr.mxu1 %v2577_v52  ;;  %4853 = vmatprep.subr.mxu0 %v2391_v2  ;;  %v2469_v1 = vmul.f32 %v6305_v49, %v6822_v44 }
 0x535   : > { %4798 = vmatpush3.msra.mxu1 %v2577_v52  ;;  %4854 = vmatpush3.msra.mxu0 %v2391_v2  ;;  %v2235_v2 = vmul.f32 %v6303_v18, %v6822_v44  ;;  %v6823_v52 = vld [vmem:[#allocation34_spill] sm:$0xff] }
 0x536   : > { %4799 = vmatprep.subr.mxu1 %v6329_v50  ;;  %4855 = vmatprep.subr.mxu0 %v6327_v58  ;;  %v2470_v30 = vmul.f32 %v6305_v49, %v6823_v52  ;;  %v2236_v55 = vmul.f32 %v6303_v18, %v6823_v52 }
 0x537   : > { %4800 = vmatpush3.msra.mxu1 %v6329_v50  ;;  %4856 = vmatpush3.msra.mxu0 %v6327_v58  ;;  %v2953_v58 = vld [vmem:[#allocation2 + $0xa0] sm:$0xff]  ;;  %v6821_v50 = vld [vmem:[#allocation32_spill] sm:$0xff] }
 0x538   : > { %4801 = vmatprep.subr.mxu1 %v6333_v29  ;;  %4857 = vmatprep.subr.mxu0 %v6331_v35 }
 0x539   : > { %4802 = vmatpush3.msra.mxu1 %v6333_v29  ;;  %4858 = vmatpush3.msra.mxu0 %v6331_v35  ;;  %v2468_v35 = vmul.f32 %v6305_v49, %v6821_v50  ;;  %v2234_v29 = vmul.f32 %v6303_v18, %v6821_v50 }
 0x53a   : > { %4803 = vmatprep.subr.mxu1 %v6321_v16  ;;  %4859 = vmatprep.subr.mxu0 %v6319_v43 }
 0x53b   : > { %4804 = vmatpush3.msra.mxu1 %v6321_v16  ;;  %4860 = vmatpush3.msra.mxu0 %v6319_v43  ;;  %v6820_v16 = vld [vmem:[#allocation31_spill] sm:$0xff] }
 0x53c   : > { %4805 = vmatprep.subr.mxu1 %v6325_v46  ;;  %4861 = vmatprep.subr.mxu0 %v6323_v51 }
 0x53d   : > { %4806 = vmatpush3.msra.mxu1 %v6325_v46  ;;  %4862 = vmatpush3.msra.mxu0 %v6323_v51  ;;  %v2467_v51 = vmul.f32 %v6305_v49, %v6820_v16  ;;  %v2233_v46 = vmul.f32 %v6303_v18, %v6820_v16 }
 0x53e   : > { %4807 = vmatprep.subr.mxu1 %v6313_v60  ;;  %4863 = vmatprep.subr.mxu0 %v6311_v25 }
 0x53f   : > { %4808 = vmatpush3.msra.mxu1 %v6313_v60  ;;  %4864 = vmatpush3.msra.mxu0 %v6311_v25  ;;  %v2231_v25 = vmul.f32 %v6303_v18, %v6818_v20  ;;  %v2954_v60 = vld [vmem:[#allocation2 + $0xa8] sm:$0xff] }
 0x540   : > { %4809 = vmatprep.subr.mxu1 %v6317_v26  ;;  %4865 = vmatprep.subr.mxu0 %v6315_v61 }
 0x541   : > { %4810 = vmatpush3.msra.mxu1 %v6317_v26  ;;  %4866 = vmatpush3.msra.mxu0 %v6315_v61  ;;  %v6819_v61 = vld [vmem:[#allocation30_spill] sm:$0xff] }
 0x542   : > { %4812 = vmatmul.mubr.f32.vlgmr.msra.gmra.mxu1 %v2461_v28  ;;  %4868 = vmatmul.mubr.f32.vlgmr.msra.gmra.mxu0 %v2227_v9  ;;  %v2466_v26 = vmul.f32 %v6305_v49, %v6819_v61  ;;  %v2232_v43 = vmul.f32 %v6303_v18, %v6819_v61  ;;  %v2241_v28 = vmul.f32 %v6303_v18, %v6828_v36  ;;  %v6829_v18 = vld [vmem:[#allocation25_spill] sm:$0xff] }
 0x543   : > { %4891 = vmatprep.subr.mxu1 %v2956_v47  ;;  %4814 = vmatprep.mubr.f32.mxu1 %v2462_v40  ;;  %v2934_v49 = vmul.f32 1.442695, %v6829_v18  ;;  %v5161_v40 = vld [vmem:[%s5847_s30] sm:$0xff] }
 0x544   : > { %4892 = vmatpush3.msra.mxu1 %v2956_v47  ;;  %4870 = vmatprep.mubr.f32.mxu0 %v2228_v21 }
 0x545   : > { %4893 = vmatprep.subr.mxu1 %v2955_v24  ;;  %5159 = vpow2.f32 %v2934_v49  ;;  %v5162_v49 = vld [vmem:[%s5847_s30 + $0x8] sm:$0xff] }
 0x546   : > { %4815 = vmatmul.mubr.f32.gmra.mxu1 %v2463_v17  ;;  %4871 = vmatmul.mubr.f32.gmra.mxu0 %v2229_v33 }
 0x547   : > { %4817 = vmatprep.mubr.f32.mxu1 %v2464_v27  ;;  %4873 = vmatprep.mubr.f32.mxu0 %v2230_v45 }
 0x548   : > { %4894 = vmatpush3.msra.mxu1 %v2955_v24 }
 0x549   : > { %4895 = vmatprep.subr.mxu1 %v2954_v60 }
 0x54a   : > { %4818 = vmatmul.mubr.f32.gmra.mxu1 %v2465_v3  ;;  %4874 = vmatmul.mubr.f32.gmra.mxu0 %v2231_v25 }
 0x54b   : > { %4820 = vmatprep.mubr.f32.mxu1 %v2466_v26  ;;  %4876 = vmatprep.mubr.f32.mxu0 %v2232_v43 }
 0x54c   : > { %4896 = vmatpush3.msra.mxu1 %v2954_v60 }
 0x54d   : > { %4897 = vmatprep.subr.mxu1 %v2953_v58 }
 0x54e   : > { %4821 = vmatmul.mubr.f32.gmra.mxu1 %v2467_v51  ;;  %4877 = vmatmul.mubr.f32.gmra.mxu0 %v2233_v46 }
 0x54f   : > { %4823 = vmatprep.mubr.f32.mxu1 %v2468_v35  ;;  %4879 = vmatprep.mubr.f32.mxu0 %v2234_v29 }
 0x550   : > { %4898 = vmatpush3.msra.mxu1 %v2953_v58 }
 0x552   : > { %4824 = vmatmul.mubr.f32.gmra.mxu1 %v2469_v1  ;;  %4880 = vmatmul.mubr.f32.gmra.mxu0 %v2235_v2  ;;  %v6452_v9 = vpop.eup %5159 }
 0x553   : > { %4826 = vmatprep.mubr.f32.mxu1 %v2470_v30  ;;  %4882 = vmatprep.mubr.f32.mxu0 %v2236_v55  ;;  %v2936_v47 = vmul.f32 %v5161_v40, %v6452_v9  ;;  %v2937_v40 = vmul.f32 %v5162_v49, %v6452_v9 }
 0x556   : > { %4827 = vmatmul.mubr.f32.gmra.mxu1 %v2471_v63  ;;  %4883 = vmatmul.mubr.f32.gmra.mxu0 %v2237_v11 }
 0x557   : > { %4829 = vmatprep.mubr.f32.mxu1 %v2472_v54  ;;  %4885 = vmatprep.mubr.f32.mxu0 %v2238_v37 }
 0x55a   : > { %4830 = vmatmul.mubr.f32.gmra.mxu1 %v2473_v12  ;;  %4886 = vmatmul.mubr.f32.gmra.mxu0 %v2239_v31 }
 0x55b   : > { %4832 = vmatprep.mubr.f32.mxu1 %v2474_v32  ;;  %4888 = vmatprep.mubr.f32.mxu0 %v2240_v48 }
 0x55e   : > { %4833 = vmatmul.mubr.f32.gmra.mxu1 %v2475_v56  ;;  %4889 = vmatmul.mubr.f32.gmra.mxu0 %v2241_v28 }
 0x55f   : > { %4899 = vmatprep.mubr.msk.f32.mxu1 %vm1089_vm1, %v6149_v8  ;;  %4955 = vmatprep.mubr.f32.mxu0 %v2936_v47  ;;  %v5163_v47 = vld [vmem:[%s5847_s30 + $0x10] sm:$0xff] }
 0x562   : > { %4900 = vmatmul.mubr.msk.f32.vlgmr.msra.gmra.mxu1 %vm1089_vm1, %v6153_v0 }
 0x563   : > { %4902 = vmatprep.mubr.msk.f32.mxu1 %vm1089_vm1, %v6169_v22 }
 0x566   : > { %4903 = vmatmul.mubr.msk.f32.gmra.mxu1 %vm1089_vm1, %v6174_v59 }
 0x567   : > { %4905 = vmatprep.mubr.msk.f32.mxu1 %vm1089_vm1, %v6191_v34 }
 0x56a   : > { %4906 = vmatmul.mubr.msk.f32.gmra.mxu1 %vm1089_vm1, %v6196_v15 }
 0x56b   : > { %4908 = vmatprep.mubr.msk.f32.mxu1 %vm1089_vm1, %v6213_v42 }
 0x56e   : > { %4909 = vmatmul.mubr.msk.f32.gmra.mxu1 %vm1089_vm1, %v6217_v19 }
 0x56f   : > { %4911 = vmatprep.mubr.msk.f32.mxu1 %vm1089_vm1, %v6242_v4 }
 0x572   : > { %4912 = vmatmul.mubr.msk.f32.gmra.mxu1 %vm1089_vm1, %v6239_v62 }
 0x573   : > { %4914 = vmatprep.mubr.msk.f32.mxu1 %vm1089_vm1, %v6251_v6 }
 0x576   : > { %4915 = vmatmul.mubr.msk.f32.gmra.mxu1 %vm1089_vm1, %v6260_v38 }
 0x577   : > { %4917 = vmatprep.mubr.msk.f32.mxu1 %vm1089_vm1, %v6269_v57 }
 0x57a   : > { %4918 = vmatmul.mubr.msk.f32.gmra.mxu1 %vm1089_vm1, %v6277_v10 }
 0x57b   : > { %4920 = vmatprep.mubr.msk.f32.mxu1 %vm1089_vm1, %v6284_v13 }
 0x57e   : > { %4921 = vmatmul.mubr.msk.f32.gmra.mxu1 %vm1089_vm1, %v6291_v14 }
 0x602   : > { %v4813_v21 = vpop.f32.mrf.mxu1  ;;  %v4869_v41 = vpop.f32.mrf.mxu0 }
 0x603   : > { %v6456_v17 = vadd.f32 %v4869_v41, %v4813_v21  ;;  %v2938_v21 = vmul.f32 %v5163_v47, %v6452_v9  ;;  %v5164_v41 = vld [vmem:[%s5847_s30 + $0x18] sm:$0xff] }
 0x604   : > { %v2692_v33 = vpop.f32.mrf.mxu1  ;;  %v2837_v24 = vpop.f32.mrf.mxu0 }
 0x605   : > { %v6458_v7 = vadd.f32 %v2837_v24, %v2692_v33  ;;  %v2939_v33 = vmul.f32 %v5164_v41, %v6452_v9  ;;  %v5165_v24 = vld [vmem:[%s5847_s30 + $0x20] sm:$0xff] }
 0x606   : > { %v4816_v27 = vpop.f32.mrf.mxu1  ;;  %v4872_v45 = vpop.f32.mrf.mxu0 }
 0x607   : > { %v6460_v20 = vadd.f32 %v4872_v45, %v4816_v27  ;;  %v2940_v27 = vmul.f32 %v5165_v24, %v6452_v9  ;;  %v5166_v45 = vld [vmem:[%s5847_s30 + $0x28] sm:$0xff] }
 0x608   : > { %v2702_v3 = vpop.f32.mrf.mxu1  ;;  %v2847_v25 = vpop.f32.mrf.mxu0 }
 0x609   : > { %v6462_v60 = vadd.f32 %v2847_v25, %v2702_v3  ;;  %v2941_v3 = vmul.f32 %v5166_v45, %v6452_v9  ;;  %v5167_v25 = vld [vmem:[%s5847_s30 + $0x30] sm:$0xff] }
 0x60a   : > { %v4819_v61 = vpop.f32.mrf.mxu1  ;;  %v4875_v26 = vpop.f32.mrf.mxu0 }
 0x60b   : > { %v6464_v43 = vadd.f32 %v4875_v26, %v4819_v61  ;;  %v2942_v61 = vmul.f32 %v5167_v25, %v6452_v9  ;;  %v5168_v26 = vld [vmem:[%s5847_s30 + $0x38] sm:$0xff] }
 0x60c   : > { %v2712_v16 = vpop.f32.mrf.mxu1  ;;  %v2857_v51 = vpop.f32.mrf.mxu0 }
 0x60d   : > { %v6466_v46 = vadd.f32 %v2857_v51, %v2712_v16  ;;  %v2943_v16 = vmul.f32 %v5168_v26, %v6452_v9  ;;  %v5169_v51 = vld [vmem:[%s5847_s30 + $0x40] sm:$0xff] }
 0x60e   : > { %v6468_v58 = vpop.f32.mrf.mxu1  ;;  %v4878_v49 = vpop.f32.mrf.mxu0 }
 0x610   : > { %v6470_v50 = vpop.f32.mrf.mxu1 }
 0x612   : > { %v6472_v35 = vpop.f32.mrf.mxu1 }
 0x614   : > { %v6474_v29 = vpop.f32.mrf.mxu1 }
 0x616   : > { %v6476_v44 = vpop.f32.mrf.mxu1 }
 0x618   : > { %v6478_v1 = vpop.f32.mrf.mxu1 }
 0x61a   : > { %v6480_v2 = vpop.f32.mrf.mxu1 }
 0x61c   : > { %v6482_v52 = vpop.f32.mrf.mxu1 }
 0x61e   : > { %v6484_v30 = vpop.f32.mrf.mxu1 }
 0x620   : > { %v6486_v55 = vpop.f32.mrf.mxu1 }
 0x622   : > { %v4901_v53 = vpop.f32.mrf.mxu1 }
 0x624   : > { %v3023_v63 = vpop.f32.mrf.mxu1 }
 0x626   : > { %v4904_v11 = vpop.f32.mrf.mxu1 }
 0x628   : > { %v3033_v23 = vpop.f32.mrf.mxu1 }
 0x62a   : > { %v4907_v54 = vpop.f32.mrf.mxu1 }
 0x62c   : > { %v3043_v37 = vpop.f32.mrf.mxu1 }
 0x62e   : > { %v4910_v39 = vpop.f32.mrf.mxu1 }
 0x630   : > { %v3053_v12 = vpop.f32.mrf.mxu1 }
 0x632   : > { %v4913_v31 = vpop.f32.mrf.mxu1 }
 0x634   : > { %v3063_v5 = vpop.f32.mrf.mxu1 }
 0x636   : > { %v4916_v32 = vpop.f32.mrf.mxu1 }
 0x638   : > { %v3073_v48 = vpop.f32.mrf.mxu1 }
 0x63a   : > { %v4919_v36 = vpop.f32.mrf.mxu1 }
 0x63c   : > { %v3083_v56 = vpop.f32.mrf.mxu1 }
 0x63e   : > { %v4922_v28 = vpop.f32.mrf.mxu1 }
 0x63f   : > { %4923 = vmatprep.subr.mxu0 %v4922_v28 }
 0x640   : > { %v3093_v18 = vpop.f32.mrf.mxu1  ;;  %4924 = vmatpush3.msra.mxu0 %v4922_v28 }
 0x641   : > { %4925 = vmatprep.subr.mxu0 %v3093_v18 }
 0x642   : > { %4926 = vmatpush3.msra.mxu0 %v3093_v18  ;;  %v3343_v18 = vld [vmem:[%s6830_s17] sm:$0xff] }
 0x643   : > { %4927 = vmatprep.subr.mxu0 %v4919_v36  ;;  %5011 = vmatprep.mubr.f32.mxu1 %v3343_v18  ;;  %v6537_v18 = vld [vmem:[%s6701_s8 + $0x1] ss:$0 sm:$0xff] }
 0x644   : > { %4928 = vmatpush3.msra.mxu0 %v4919_v36 }
 0x645   : > { %4929 = vmatprep.subr.mxu0 %v3083_v56 }
 0x646   : > { %4930 = vmatpush3.msra.mxu0 %v3083_v56  ;;  %v5176_v56 = vld [vmem:[%s5847_s30 + $0x78] sm:$0xff] }
 0x647   : > { %4931 = vmatprep.subr.mxu0 %v4916_v32  ;;  %v2951_v28 = vmul.f32 %v5176_v56, %v6452_v9 }
 0x648   : > { %4932 = vmatpush3.msra.mxu0 %v4916_v32 }
 0x649   : > { %4933 = vmatprep.subr.mxu0 %v3073_v48 }
 0x64a   : > { %4934 = vmatpush3.msra.mxu0 %v3073_v48  ;;  %v5175_v48 = vld [vmem:[%s5847_s30 + $0x70] sm:$0xff] }
 0x64b   : > { %4935 = vmatprep.subr.mxu0 %v4913_v31  ;;  %v2950_v36 = vmul.f32 %v5175_v48, %v6452_v9 }
 0x64c   : > { %4936 = vmatpush3.msra.mxu0 %v4913_v31 }
 0x64d   : > { %4937 = vmatprep.subr.mxu0 %v3063_v5 }
 0x64e   : > { %4938 = vmatpush3.msra.mxu0 %v3063_v5  ;;  %v5174_v5 = vld [vmem:[%s5847_s30 + $0x68] sm:$0xff] }
 0x64f   : > { %4939 = vmatprep.subr.mxu0 %v4910_v39  ;;  %v2949_v32 = vmul.f32 %v5174_v5, %v6452_v9 }
 0x650   : > { %4940 = vmatpush3.msra.mxu0 %v4910_v39 }
 0x651   : > { %4941 = vmatprep.subr.mxu0 %v3053_v12 }
 0x652   : > { %4942 = vmatpush3.msra.mxu0 %v3053_v12  ;;  %v5173_v12 = vld [vmem:[%s5847_s30 + $0x60] sm:$0xff] }
 0x653   : > { %4943 = vmatprep.subr.mxu0 %v4907_v54  ;;  %v2948_v31 = vmul.f32 %v5173_v12, %v6452_v9 }
 0x654   : > { %4944 = vmatpush3.msra.mxu0 %v4907_v54 }
 0x655   : > { %4945 = vmatprep.subr.mxu0 %v3043_v37 }
 0x656   : > { %4946 = vmatpush3.msra.mxu0 %v3043_v37  ;;  %v5172_v37 = vld [vmem:[%s5847_s30 + $0x58] sm:$0xff] }
 0x657   : > { %4947 = vmatprep.subr.mxu0 %v4904_v11  ;;  %v2947_v39 = vmul.f32 %v5172_v37, %v6452_v9 }
 0x658   : > { %4948 = vmatpush3.msra.mxu0 %v4904_v11 }
 0x659   : > { %4949 = vmatprep.subr.mxu0 %v3033_v23 }
 0x65a   : > { %4950 = vmatpush3.msra.mxu0 %v3033_v23  ;;  %v5171_v23 = vld [vmem:[%s5847_s30 + $0x50] sm:$0xff] }
 0x65b   : > { %4951 = vmatprep.subr.mxu0 %v4901_v53  ;;  %v2946_v54 = vmul.f32 %v5171_v23, %v6452_v9 }
 0x65c   : > { %4952 = vmatpush3.msra.mxu0 %v4901_v53  ;;  %v2944_v53 = vmul.f32 %v5169_v51, %v6452_v9 }
 0x65d   : > { %4953 = vmatprep.subr.mxu0 %v3023_v63 }
 0x65e   : > { %4954 = vmatpush3.msra.mxu0 %v3023_v63  ;;  %v5170_v63 = vld [vmem:[%s5847_s30 + $0x48] sm:$0xff] }
 0x65f   : > { %4956 = vmatmul.mubr.f32.vlgmr.msra.gmra.mxu0 %v2937_v40  ;;  %v2945_v11 = vmul.f32 %v5170_v63, %v6452_v9  ;;  %v2867_v40 = vpop.f32.mrf.mxu0 }
 0x660   : > { %4958 = vmatprep.mubr.f32.mxu0 %v2938_v21 }
 0x661   : > { %v4881_v47 = vpop.f32.mrf.mxu0 }
 0x663   : > { %4959 = vmatmul.mubr.f32.gmra.mxu0 %v2939_v33  ;;  %v2877_v21 = vpop.f32.mrf.mxu0 }
 0x664   : > { %4961 = vmatprep.mubr.f32.mxu0 %v2940_v27 }
 0x665   : > { %v4884_v41 = vpop.f32.mrf.mxu0 }
 0x666   : > { %v2893_v48 = vadd.f32 %v4884_v41, %v6476_v44 }
 0x667   : > { %4962 = vmatmul.mubr.f32.gmra.mxu0 %v2941_v3  ;;  %v2887_v33 = vpop.f32.mrf.mxu0 }
 0x668   : > { %4964 = vmatprep.mubr.f32.mxu0 %v2942_v61 }
 0x669   : > { %v4887_v24 = vpop.f32.mrf.mxu0 }
 0x66b   : > { %4965 = vmatmul.mubr.f32.gmra.mxu0 %v2943_v16  ;;  %v2897_v27 = vpop.f32.mrf.mxu0 }
 0x66c   : > { %4967 = vmatprep.mubr.f32.mxu0 %v2944_v53 }
 0x66d   : > { %v4890_v45 = vpop.f32.mrf.mxu0 }
 0x66f   : > { %4968 = vmatmul.mubr.f32.gmra.mxu0 %v2945_v11  ;;  %v2907_v3 = vpop.f32.mrf.mxu0 }
 0x670   : > { %4970 = vmatprep.mubr.f32.mxu0 %v2946_v54 }
 0x673   : > { %4971 = vmatmul.mubr.f32.gmra.mxu0 %v2947_v39  ;;  %v2903_v39 = vadd.f32 %v4887_v24, %v6480_v2  ;;  %v2908_v2 = vadd.f32 %v2907_v3, %v6486_v55 }
 0x674   : > { %4973 = vmatprep.mubr.f32.mxu0 %v2948_v31  ;;  %v2898_v31 = vadd.f32 %v2897_v27, %v6482_v52 }
 0x677   : > { %4974 = vmatmul.mubr.f32.gmra.mxu0 %v2949_v32 }
 0x678   : > { %4976 = vmatprep.mubr.f32.mxu0 %v2950_v36  ;;  %v2913_v36 = vadd.f32 %v4890_v45, %v6484_v30  ;;  %v2878_v45 = vadd.f32 %v2877_v21, %v6474_v29 }
 0x67b   : > { %4977 = vmatmul.mubr.f32.gmra.mxu0 %v2951_v28  ;;  %v2888_v28 = vadd.f32 %v2887_v33, %v6478_v1 }
 0x71f   : > { %v6521_v25 = vpop.f32.mrf.mxu0 }
 0x721   : > { %v6523_v9 = vpop.f32.mrf.mxu0 }
 0x723   : > { %v6525_v61 = vpop.f32.mrf.mxu0 }
 0x725   : > { %v6527_v26 = vpop.f32.mrf.mxu0 }
 0x727   : > { %v4963_v16 = vpop.f32.mrf.mxu0 }
 0x729   : > { %v3188_v51 = vpop.f32.mrf.mxu0 }
 0x72b   : > { %v4966_v53 = vpop.f32.mrf.mxu0 }
 0x72d   : > { %v3198_v63 = vpop.f32.mrf.mxu0 }
 0x72f   : > { %v4969_v11 = vpop.f32.mrf.mxu0 }
 0x731   : > { %v3208_v23 = vpop.f32.mrf.mxu0 }
 0x733   : > { %v4972_v54 = vpop.f32.mrf.mxu0 }
 0x734   : > { %v3258_v24 = vadd.f32 %v4972_v54, %v2893_v48  ;;  %v2873_v54 = vadd.f32 %v4878_v49, %v6468_v58 }
 0x735   : > { %v3218_v37 = vpop.f32.mrf.mxu0 }
 0x736   : > { %v3257_v41 = vadd.f32 %v3218_v37, %v2888_v28  ;;  %v3282_v3 = vmul.f32 %v6537_v18, %v3258_v24  ;;  %v3255_v37 = vadd.f32 %v3208_v23, %v2878_v45 }
 0x737   : > { %v4975_v12 = vpop.f32.mrf.mxu0 }
 0x738   : > { %v3260_v5 = vadd.f32 %v4975_v12, %v2903_v39  ;;  %v2883_v39 = vadd.f32 %v4881_v47, %v6472_v35  ;;  %v6548_v12 = vld [vmem:[%s6702_s9 + $0x1] ss:$0 sm:$0xff]  ;;  %v3279_v49 = vmul.f32 %v6537_v18, %v3255_v37 }
 0x739   : > { %v3228_v32 = vpop.f32.mrf.mxu0 }
 0x73a   : > { %v3259_v56 = vadd.f32 %v3228_v32, %v2898_v31  ;;  %v3284_v52 = vmul.f32 %v6537_v18, %v3260_v5  ;;  %v3256_v55 = vadd.f32 %v4969_v11, %v2883_v39  ;;  %v3281_v31 = vmul.f32 %v6537_v18, %v3257_v41 }
 0x73b   : > { %v4978_v8 = vpop.f32.mrf.mxu0  ;;  %v2868_v11 = vadd.f32 %v2867_v40, %v6470_v50  ;;  %v3254_v32 = vadd.f32 %v4966_v53, %v2873_v54  ;;  %v3252_v50 = vadd.f32 %v4963_v16, %v6464_v43  ;;  %v3250_v43 = vadd.f32 %v6525_v61, %v6460_v20 }
 0x73c   : > { %v3262_v27 = vadd.f32 %v4978_v8, %v2913_v36  ;;  %v3283_v30 = vmul.f32 %v6537_v18, %v3259_v56  ;;  %v3308_v8 = vadd.f32 %v6548_v12, %v3284_v52  ;;  %v3280_v48 = vmul.f32 %v6537_v18, %v3256_v55 }
 0x73d   : > { %v3238_v44 = vpop.f32.mrf.mxu0  ;;  %v3306_v36 = vadd.f32 %v6548_v12, %v3282_v3  ;;  %v3253_v58 = vadd.f32 %v3198_v63, %v2868_v11  ;;  %v3305_v23 = vadd.f32 %v6548_v12, %v3281_v31  ;;  %v3278_v40 = vmul.f32 %v6537_v18, %v3254_v32 }
 0x73e   : > { %v3286_v1 = vmul.f32 %v6537_v18, %v3262_v27  ;;  %v3261_v33 = vadd.f32 %v3238_v44, %v2908_v2  ;;  %v3307_v29 = vadd.f32 %v6548_v12, %v3283_v30  ;;  %v3324_v56 = vmax.f32 %v3308_v8, 0.0 }
 0x73f   : > { %v3304_v53 = vadd.f32 %v6548_v12, %v3280_v48  ;;  %v3322_v27 = vmax.f32 %v3306_v36, 0.0  ;;  %v3251_v63 = vadd.f32 %v3188_v51, %v6466_v46  ;;  %v3277_v39 = vmul.f32 %v6537_v18, %v3253_v58  ;;  %v3420_v36 = vld [vmem:[%s6703_s10] sm:$0xff] }
 0x740   : > { %v3310_v35 = vadd.f32 %v6548_v12, %v3286_v1  ;;  %v3285_v47 = vmul.f32 %v6537_v18, %v3261_v33  ;;  %v3323_v24 = vmax.f32 %v3307_v29, 0.0  ;;  %v3303_v44 = vadd.f32 %v6548_v12, %v3279_v49  ;;  %v3514_v58 = vld [vmem:[%s6705_s12] sm:$0xff] }
 0x741   : > { %v3321_v41 = vmax.f32 %v3305_v23, 0.0  ;;  %v3276_v16 = vmul.f32 %v6537_v18, %v3252_v50  ;;  %v3302_v30 = vadd.f32 %v6548_v12, %v3278_v40  ;;  %v3338_v46 = vadd.f32 %v3322_v27, %v6260_v38  ;;  %v4048_v49 = vld [vmem:[%s6704_s11] ss:$0 sm:$0xff] }
 0x742   : > { %v3326_v21 = vmax.f32 %v3310_v35, 0.0  ;;  %v3309_v5 = vadd.f32 %v6548_v12, %v3285_v47  ;;  %v3249_v51 = vadd.f32 %v6527_v26, %v6462_v60  ;;  %v3275_v1 = vmul.f32 %v6537_v18, %v3251_v63  ;;  %v3607_v27 = vld [vmem:[%s6707_s14] sm:$0xff] }
 0x743   : > { %v3319_v33 = vmax.f32 %v3303_v44, 0.0  ;;  %v3337_v20 = vadd.f32 %v3321_v41, %v6251_v6  ;;  %v3248_v61 = vadd.f32 %v6521_v25, %v6456_v17  ;;  %v3274_v45 = vmul.f32 %v6537_v18, %v3250_v43 }
 0x744   : > { %v3325_v28 = vmax.f32 %v3309_v5, 0.0  ;;  %v3342_v2 = vadd.f32 %v3326_v21, %v6291_v14  ;;  %v3340_v14 = vadd.f32 %v3324_v56, %v6277_v10  ;;  %v3320_v10 = vmax.f32 %v3304_v53, 0.0 }
 0x745   : > { %v3300_v38 = vadd.f32 %v6548_v12, %v3276_v16  ;;  %v3318_v55 = vmax.f32 %v3302_v30, 0.0  ;;  %v3247_v26 = vadd.f32 %v6523_v9, %v6458_v7  ;;  %v3273_v3 = vmul.f32 %v6537_v18, %v3249_v51  ;;  %v4054_v16 = vld [vmem:[%s6708_s15] ss:$0 sm:$0xff] }
 0x746   : > { %4979 = vmatprep.subr.mxu1 %v3342_v2  ;;  %v3341_v52 = vadd.f32 %v3325_v28, %v6284_v13  ;;  %v3339_v13 = vadd.f32 %v3323_v24, %v6269_v57  ;;  %v3301_v57 = vadd.f32 %v6548_v12, %v3277_v39  ;;  %v3336_v60 = vadd.f32 %v3320_v10, %v6239_v62 }
 0x747   : > { %4980 = vmatpush3.msra.mxu1 %v3342_v2  ;;  %v3299_v6 = vadd.f32 %v6548_v12, %v3275_v1  ;;  %v3335_v17 = vadd.f32 %v3319_v33, %v6242_v4  ;;  %v3272_v25 = vmul.f32 %v6537_v18, %v3248_v61  ;;  %v3298_v35 = vadd.f32 %v6548_v12, %v3274_v45  ;;  %v3515_v2 = vld [vmem:[%s6705_s12 + $0x8] sm:$0xff] }
 0x748   : > { %4981 = vmatprep.subr.mxu1 %v3341_v52  ;;  %v3317_v8 = vmax.f32 %v3301_v57, 0.0  ;;  %v3316_v47 = vmax.f32 %v3300_v38, 0.0  ;;  %v3334_v62 = vadd.f32 %v3318_v55, %v6217_v19  ;;  %v3271_v7 = vmul.f32 %v6537_v18, %v3247_v26 }
 0x749   : > { %4982 = vmatpush3.msra.mxu1 %v3341_v52  ;;  %v3297_v9 = vadd.f32 %v6548_v12, %v3273_v3  ;;  %v3315_v54 = vmax.f32 %v3299_v6, 0.0  ;;  %v3296_v4 = vadd.f32 %v6548_v12, %v3272_v25  ;;  %v3314_v31 = vmax.f32 %v3298_v35, 0.0 }
 0x74a   : > { %4983 = vmatprep.subr.mxu1 %v3340_v14  ;;  %v3333_v37 = vadd.f32 %v3317_v8, %v6213_v42  ;;  %v3332_v29 = vadd.f32 %v3316_v47, %v6196_v15  ;;  %v3295_v21 = vadd.f32 %v6548_v12, %v3271_v7  ;;  %v6831_v12 = vld [vmem:[#allocation40_spill] sm:$0xff] }
 0x74b   : > { %4984 = vmatpush3.msra.mxu1 %v3340_v14  ;;  %v3313_v19 = vmax.f32 %v3297_v9, 0.0  ;;  %v3331_v18 = vadd.f32 %v3315_v54, %v6191_v34  ;;  %v3312_v5 = vmax.f32 %v3296_v4, 0.0  ;;  %v3330_v11 = vadd.f32 %v3314_v31, %v6174_v59  ;;  %v3344_v34 = vld [vmem:[%s6830_s17 + $0x8] sm:$0xff]  ;;  %v3423_v59 = vld [vmem:[%s6703_s10 + $0x18] sm:$0xff]  ;;  %v4051_v14 = vld [vmem:[%s6706_s13] ss:$0 sm:$0xff] }
 0x74c   : > { %4985 = vmatprep.subr.mxu1 %v3339_v13  ;;  %v3311_v42 = vmax.f32 %v3295_v21, 0.0 }
 0x74d   : > { %4986 = vmatpush3.msra.mxu1 %v3339_v13  ;;  %v3329_v32 = vadd.f32 %v3313_v19, %v6169_v22  ;;  %v3328_v15 = vadd.f32 %v3312_v5, %v6153_v0  ;;  %v3422_v22 = vld [vmem:[%s6703_s10 + $0x10] sm:$0xff]  ;;  %v3421_v0 = vld [vmem:[%s6703_s10 + $0x8] sm:$0xff] }
 0x74e   : > { %4987 = vmatprep.subr.mxu1 %v3338_v46  ;;  %v3327_v48 = vadd.f32 %v3311_v42, %v6831_v12 }
 0x74f   : > { %4988 = vmatpush3.msra.mxu1 %v3338_v46 }
 0x750   : > { %4989 = vmatprep.subr.mxu1 %v3337_v20 }
 0x751   : > { %4990 = vmatpush3.msra.mxu1 %v3337_v20 }
 0x752   : > { %4991 = vmatprep.subr.mxu1 %v3336_v60 }
 0x753   : > { %4992 = vmatpush3.msra.mxu1 %v3336_v60 }
 0x754   : > { %4993 = vmatprep.subr.mxu1 %v3335_v17 }
 0x755   : > { %4994 = vmatpush3.msra.mxu1 %v3335_v17 }
 0x756   : > { %4995 = vmatprep.subr.mxu1 %v3334_v62 }
 0x757   : > { %4996 = vmatpush3.msra.mxu1 %v3334_v62 }
 0x758   : > { %4997 = vmatprep.subr.mxu1 %v3333_v37 }
 0x759   : > { %4998 = vmatpush3.msra.mxu1 %v3333_v37 }
 0x75a   : > { %4999 = vmatprep.subr.mxu1 %v3332_v29 }
 0x75b   : > { %5000 = vmatpush3.msra.mxu1 %v3332_v29 }
 0x75c   : > { %5001 = vmatprep.subr.mxu1 %v3331_v18 }
 0x75d   : > { %5002 = vmatpush3.msra.mxu1 %v3331_v18 }
 0x75e   : > { %5003 = vmatprep.subr.mxu1 %v3330_v11 }
 0x75f   : > { %5004 = vmatpush3.msra.mxu1 %v3330_v11 }
 0x760   : > { %5005 = vmatprep.subr.mxu1 %v3329_v32 }
 0x761   : > { %5006 = vmatpush3.msra.mxu1 %v3329_v32 }
 0x762   : > { %5007 = vmatprep.subr.mxu1 %v3328_v15 }
 0x763   : > { %5008 = vmatpush3.msra.mxu1 %v3328_v15 }
 0x764   : > { %5009 = vmatprep.subr.mxu1 %v3327_v48 }
 0x765   : > { %5010 = vmatpush3.msra.mxu1 %v3327_v48 }
 0x766   : > { %5012 = vmatmul.mubr.f32.vlgmr.msra.gmra.mxu1 %v3344_v34  ;;  %5014 = vmatprep.subr.mxu1 %v3423_v59 }
 0x767   : > { %5015 = vmatpush3.msra.mxu1 %v3423_v59 }
 0x768   : > { %5016 = vmatprep.subr.mxu1 %v3422_v22 }
 0x769   : > { %5017 = vmatpush3.msra.mxu1 %v3422_v22 }
 0x76a   : > { %5018 = vmatprep.subr.mxu1 %v3421_v0 }
 0x76b   : > { %5019 = vmatpush3.msra.mxu1 %v3421_v0 }
 0x76c   : > { %5020 = vmatprep.subr.mxu1 %v3420_v36 }
 0x76d   : > { %5021 = vmatpush3.msra.mxu1 %v3420_v36 }
 0x76e   : > { %5025 = vmatprep.subr.mxu1 %v3515_v2 }
 0x826   : > { %v5013_v56 = vpop.f32.mrf.mxu1 }
 0x828   : > { %v3411_v28 = vpop.f32.mrf.mxu1 }
 0x829   : > { %5022 = vmatprep.mubr.msk.f32.mxu1 %vm1089_vm1, %v3411_v28 }
 0x82a   : > { %5023 = vmatmul.mubr.msk.f32.vlgmr.msra.gmra.mxu1 %vm1089_vm1, %v5013_v56 }
 0x82b   : > { %5026 = vmatpush3.msra.mxu1 %v3515_v2 }
 0x82c   : > { %5027 = vmatprep.subr.mxu1 %v3514_v58 }
 0x82d   : > { %5028 = vmatpush3.msra.mxu1 %v3514_v58 }
 0x82e   : > { %5032 = vmatprep.subr.mxu1 %v3607_v27 }
 0x8ea   : > { %v5024_v23 = vpop.f32.mrf.mxu1 }
 0x8eb   : > { %v3509_v24 = vadd.f32 %v5024_v23, %v4048_v49 }
 0x8ec   : > { %v3503_v52 = vpop.f32.mrf.mxu1 }
 0x8ed   : > { %v3504_v50 = vadd.f32 %v4048_v49, %v3503_v52  ;;  %v3513_v53 = vmax.f32 %v3509_v24, 0.0 }
 0x8ef   : > { %v3512_v40 = vmax.f32 %v3504_v50, 0.0 }
 0x8f1   : > { %5029 = vmatprep.mubr.msk.f32.mxu1 %vm3523_vm2, %v3512_v40 }
 0x8f2   : > { %5030 = vmatmul.mubr.msk.f32.vlgmr.msra.gmra.mxu1 %vm3523_vm2, %v3513_v53 }
 0x8f3   : > { %5033 = vmatpush3.msra.mxu1 %v3607_v27 }
 0x9b2   : > { %v5031_v63 = vpop.f32.mrf.mxu1 }
 0x9b3   : > { %v3602_v39 = vadd.f32 %v5031_v63, %v4051_v14 }
 0x9b4   : > { %v3596_v44 = vpop.f32.mrf.mxu1 }
 0x9b5   : > { %v3597_v41 = vadd.f32 %v4051_v14, %v3596_v44  ;;  %v3606_v43 = vmax.f32 %v3602_v39, 0.0 }
 0x9b7   : > { %v3605_v13 = vmax.f32 %v3597_v41, 0.0 }
 0x9b9   : > { %5034 = vmatprep.mubr.msk.f32.mxu1 %vm809_vm0, %v3605_v13 }
 0x9ba   : > { %5035 = vmatmul.mubr.msk.f32.vlgmr.msra.gmra.mxu1 %vm809_vm0, %v3606_v43 }
 0xa7a   : > { %v5036_v30 = vpop.f32.mrf.mxu1 }
 0xa7b   : > { %v3693_v10 = vadd.f32 %v5036_v30, %v4054_v16 }
 0xa7c   : > { %v3687_v46 = vpop.f32.mrf.mxu1 }
 0xa7d   : > { %3697 = vst [vmem:[%s767_s18 + $0x8] sm:$0xff] %v3693_v10  ;;  %v3688_v51 = vadd.f32 %v4054_v16, %v3687_v46 }
 0xa7f   : > { %3696 = vst [vmem:[%s767_s18] sm:$0xff] %v3688_v51 }
 0xa80   : > { %5291 = shalt.err (!%p5288_p0)
}
 0xa81   : > { %s5292_s30 = scalar_lea.hbm %s6651_s1, 256  ;;  %s5296_s24 = scalar_lea.hbm %s6714_s21, 1024 }
 0xa82   : > { %p5293_p7 = scmp.ne.s32.totalorder %s6651_s1, %s5292_s30  ;;  %p5297_p11 = scmp.lt.s32.totalorder %s6651_s1, %s6714_s21 }
 0xa83   : > { %p5298_p13 = scmp.lt.s32.totalorder %s5296_s24, %s5292_s30 }
 0xa84   : > { %p5294_p8 = pnand %p5293_p7, %p6832_p9 }
 0xa85   : > { %p5299_p1 = por %p5298_p13, %p5297_p11 }
 0xa86   : > { %p5295_p12 = pneg %p5294_p8 }
 0xa88   : > { %p5300_p2 = pnand %p5299_p1, %p5295_p12 }
 0xa8a   : > { %5303 = shalt.err (!%p5300_p2)
}
 0xa8b   : > { %s5365_s29 = smov 128   ;;  %s5366_s23 = smov 8  }
 0xa8c   : > { %5061 = dma.vmem_to_hbm [thread:$0]  (%p6832_p9), %s6646_s28, 256, %s6651_s1, %s6653_s0, %s5365_s29, %s5365_s29, %s5366_s23  }
 0xa8d PF: > { %s6833_s4 = sld [smem:[#allocation22_spill]]  ;;  %p5098_p3 = scmp.ge.s32.totalorder %s5354_s27, 2 }
 0xa8e   : > { %s3727_s19 = sand.u32 1, %s5342_s2  }
 0xa8f   : > { %s3728_s3 = scalar_lea.sflag [#allocation4], %s3727_s19 }
 0xa93   : > { %p6834_p5 = scmp.ne.s32.totalorder %s6833_s4, 0 }
 0xa95   : > { %p5083_p6 = pnand %p5098_p3, %p6834_p5 }
 0xa97   : > { %p5084_p10 = pneg %p5083_p6 }
 0xa99   : > { %5337 = dma.done.wait (%p5084_p10), %s3728_s3, 256  }
 0xa9a   : > { %5339 = vsyncadd (%p5084_p10), %s3728_s3, 4294967040  ;;  %s6835_s27 = sld [smem:[#allocation20_spill]]  ;;  %s6838_s2 = smov %s5346_s25 }
 0xa9b   : > { %s6836_s16 = sld [smem:[#allocation19_spill]] }
 0xa9c   : > { %s6837_s26 = sld [smem:[#allocation21_spill]] }
 0xaa0   : > { %p35_p4 = scmp.ge.s32.totalorder %s6835_s27, 6  }
 0xaa1   : > { %s6839_s25 = smov %s6836_s16 }
 0xaa2   :  { %37 = sbr.rel (!%p35_p4) target bundleno = 20 (0x14), region = 181 }
 0xaa7   :  { %3733 = vsyncpa [#allocation3], 1 }
 0xaa8   :  { %3735 = vsyncpa [#allocation3 + $0x1], 1 }
 0xaa9   :  { %3736 = vsyncpa [#allocation4], 1 }
 0xaaa   :  { %3738 = vsyncpa [#allocation4 + $0x1], 1 }
 0xaab   :  { %3739 = vsyncpa [#allocation5], 1 }
 0xaac   :  { %3741 = vsyncpa [#allocation5 + $0x1], 1 }
 0xaad   :  { %3742 = vsyncpa [#allocation8], 1 }
 0xaae   :  { %3743 = vsyncpa [#allocation11], 1 }

</bundles_post_ra>
